<compile_context>
chip_gen: v7x
topology: tpu7x:2x2x1
jax: 0.10.0
libtpu: 0.0.40
codegen_flags: <defaults>
</compile_context>

<pallas_src>
import functools
import math

import jax
import jax.numpy as jnp
from jax import lax
from jax.experimental import pallas as pl
from jax.experimental.pallas import tpu as pltpu

# Use full f32 precision for the pure-JAX reference matmuls so the correctness
# check is not dominated by XLA's default bf16-pass matmul behavior.
jax.config.update("jax_default_matmul_precision", "float32")


def _round_up(x, m):
    return (x + m - 1) // m * m


def _gelu_tanh(x):
    # TODO(synk): PyTorch nn.GELU() is the exact erf form; tanh approximation used here
    # for TPU-safe lowering (EUP tanh). The in-script reference uses the same formula.
    return 0.5 * x * (1.0 + jnp.tanh(0.7978845608028654 * (x + 0.044715 * x * x * x)))


# ---------------------------------------------------------------------------
# Kernel 1: tiled linear  y = act(x @ W + b)
# ---------------------------------------------------------------------------
def _make_linear_kernel(act):
    def kernel(x_ref, w_ref, b_ref, o_ref, acc_ref):
        @pl.when(pl.program_id(2) == 0)
        def _init():
            acc_ref[...] = jnp.zeros_like(acc_ref)

        acc_ref[...] += jnp.dot(x_ref[...], w_ref[...],
                                preferred_element_type=jnp.float32)

        @pl.when(pl.program_id(2) == pl.num_programs(2) - 1)
        def _finalize():
            y = acc_ref[...] + b_ref[...].astype(jnp.float32)
            if act == "gelu":
                y = _gelu_tanh(y)
            o_ref[...] = y.astype(o_ref.dtype)

    return kernel


def pallas_linear(x2d, w, b, act=None, tm=256, tn=512, tk=512):
    """x2d: (M, K), w: (K, N), b: (N,) -> (M, N); optional fused GELU epilogue."""
    M, K = x2d.shape
    N = w.shape[1]

    # (8, 128)-aligned tiles, clamped for small dims; 256/512 multiples feed the MXU.
    tm = min(tm, _round_up(M, 8))
    tn = min(tn, _round_up(N, 128))
    tk = min(tk, _round_up(K, 128))
    Mp, Kp, Np = _round_up(M, tm), _round_up(K, tk), _round_up(N, tn)

    xp = x2d if (Mp == M and Kp == K) else jnp.pad(x2d, ((0, Mp - M), (0, Kp - K)))
    wp = w if (Kp == K and Np == N) else jnp.pad(w, ((0, Kp - K), (0, Np - N)))
    bp = b if Np == N else jnp.pad(b, (0, Np - N))

    out = pl.pallas_call(
        _make_linear_kernel(act),
        out_shape=jax.ShapeDtypeStruct((Mp, Np), x2d.dtype),
        grid=(Mp // tm, Np // tn, Kp // tk),
        in_specs=[
            pl.BlockSpec((tm, tk), lambda i, j, k: (i, k)),
            pl.BlockSpec((tk, tn), lambda i, j, k: (k, j)),
            pl.BlockSpec((1, tn), lambda i, j, k: (0, j)),
        ],
        out_specs=pl.BlockSpec((tm, tn), lambda i, j, k: (i, j)),
        scratch_shapes=[pltpu.VMEM((tm, tn), jnp.float32)],
        compiler_params=pltpu.CompilerParams(
            dimension_semantics=("parallel", "parallel", "arbitrary")),
    )(xp, wp, bp.reshape(1, Np))

    if Mp != M or Np != N:
        out = out[:M, :N]
    return out


# ---------------------------------------------------------------------------
# Kernel 2: LayerNorm over the channel dim, rows tiled along the grid
# ---------------------------------------------------------------------------
def _make_layernorm_kernel(eps):
    def kernel(x_ref, g_ref, b_ref, o_ref):
        x = x_ref[...].astype(jnp.float32)
        mu = jnp.mean(x, axis=-1, keepdims=True)
        xc = x - mu
        var = jnp.mean(xc * xc, axis=-1, keepdims=True)
        y = xc * lax.rsqrt(var + eps)
        y = y * g_ref[...].astype(jnp.float32) + b_ref[...].astype(jnp.float32)
        o_ref[...] = y.astype(o_ref.dtype)

    return kernel


def pallas_layernorm(x2d, g, b, eps=1e-5, tm=512):
    M, C = x2d.shape
    tm = min(tm, _round_up(M, 8))
    Mp = _round_up(M, tm)
    xp = x2d if Mp == M else jnp.pad(x2d, ((0, Mp - M), (0, 0)))
    out = pl.pallas_call(
        _make_layernorm_kernel(eps),
        out_shape=jax.ShapeDtypeStruct((Mp, C), x2d.dtype),
        grid=(Mp // tm,),
        in_specs=[
            pl.BlockSpec((tm, C), lambda i: (i, 0)),
            pl.BlockSpec((1, C), lambda i: (0, 0)),
            pl.BlockSpec((1, C), lambda i: (0, 0)),
        ],
        out_specs=pl.BlockSpec((tm, C), lambda i: (i, 0)),
        compiler_params=pltpu.CompilerParams(dimension_semantics=("parallel",)),
    )(xp, g.reshape(1, C), b.reshape(1, C))
    return out if Mp == M else out[:M]


# ---------------------------------------------------------------------------
# Kernel 3: fused multi-head attention + output projection
#   input : qkv slab (B, N, 3C) straight from the qkv GEMM (no host transpose)
#   output: (B, N, C) already projected by W_proj (+ b_proj), lane-dense
# ---------------------------------------------------------------------------
def _make_attn_proj_kernel(num_heads, head_dim, scale):
    C = num_heads * head_dim

    def kernel(qkv_ref, wp_ref, bp_ref, o_ref):
        N = qkv_ref.shape[1]
        acc = jnp.zeros((N, C), jnp.float32)
        for h in range(num_heads):                       # static unroll over heads
            q = qkv_ref[0, :, h * head_dim:(h + 1) * head_dim]            # (N, hd)
            k = qkv_ref[0, :, C + h * head_dim:C + (h + 1) * head_dim]    # (N, hd)
            v = qkv_ref[0, :, 2 * C + h * head_dim:2 * C + (h + 1) * head_dim]
            # q @ k^T without an explicit transpose: contract last dims on the MXU.
            s = lax.dot_general(q, k, (((1,), (1,)), ((), ())),
                                preferred_element_type=jnp.float32) * scale
            s = s - jnp.max(s, axis=-1, keepdims=True)
            p = jnp.exp(s)
            p = p * pl.reciprocal(jnp.sum(p, axis=-1, keepdims=True), approx=True)
            o = jnp.dot(p.astype(v.dtype), v,
                        preferred_element_type=jnp.float32)               # (N, hd)
            # Fused output projection: concat_h(o_h) @ W_proj == sum_h o_h @ W_proj[h]
            acc = acc + jnp.dot(o.astype(wp_ref.dtype), wp_ref[h],
                                preferred_element_type=jnp.float32)       # (N, C)
        o_ref[0] = (acc + bp_ref[...].astype(jnp.float32)).astype(o_ref.dtype)

    return kernel


def pallas_attention_proj(qkv, w_proj_h, b_proj, num_heads, head_dim, scale):
    """qkv: (B, N, 3C), w_proj_h: (H, hd, C), b_proj: (1, C) -> (B, N, C)."""
    B, N, C3 = qkv.shape
    C = num_heads * head_dim
    return pl.pallas_call(
        _make_attn_proj_kernel(num_heads, head_dim, scale),
        out_shape=jax.ShapeDtypeStruct((B, N, C), qkv.dtype),
        grid=(B,),
        in_specs=[
            pl.BlockSpec((1, N, C3), lambda b: (b, 0, 0)),
            pl.BlockSpec((num_heads, head_dim, C), lambda b: (0, 0, 0)),
            pl.BlockSpec((1, C), lambda b: (0, 0)),
        ],
        out_specs=pl.BlockSpec((1, N, C), lambda b: (b, 0, 0)),
        compiler_params=pltpu.CompilerParams(dimension_semantics=("parallel",)),
    )(qkv, w_proj_h, b_proj)


# ---------------------------------------------------------------------------
# Full VisionTransformer forward (glue/layout ops in plain JAX, compute in Pallas)
# ---------------------------------------------------------------------------
def vit_forward(x, params, cfg):
    B = x.shape[0]
    p = cfg["patch_size"]
    D = cfg["embed_dim"]
    H = cfg["num_heads"]
    hd = D // H
    scale = hd ** (-0.5)

    # Patch embedding: Conv2d(kernel=p, stride=p) == patchify + linear projection.
    _, Ci, Hi, Wi = x.shape
    gh, gw = Hi // p, Wi // p
    patches = x.reshape(B, Ci, gh, p, gw, p)
    patches = jnp.transpose(patches, (0, 2, 4, 1, 3, 5)).reshape(B * gh * gw, Ci * p * p)
    emb = pallas_linear(patches, params["w_patch"], params["b_patch"])      # (B*nP, D)
    emb = emb.reshape(B, gh * gw, D)

    cls = jnp.broadcast_to(params["cls_token"], (B, 1, D)).astype(emb.dtype)
    h = jnp.concatenate([cls, emb], axis=1) + params["pos_embed"]           # (B, N, D)
    N = h.shape[1]

    for blk in params["blocks"]:
        # ---- attention branch (pre-LN), proj fused into the attention kernel ----
        hn = pallas_layernorm(h.reshape(B * N, D), blk["ln1_g"], blk["ln1_b"])
        qkv = pallas_linear(hn, blk["w_qkv"], blk["b_qkv"])                 # (B*N, 3D)
        attn = pallas_attention_proj(
            qkv.reshape(B, N, 3 * D),
            blk["w_proj"].reshape(H, hd, D),                                # free reshape
            blk["b_proj"].reshape(1, D),
            H, hd, scale)                                                   # (B, N, D)
        h = h + attn

        # ---- MLP branch (pre-LN), GELU fused into the fc1 GEMM epilogue ----
        hn = pallas_layernorm(h.reshape(B * N, D), blk["ln2_g"], blk["ln2_b"])
        y = pallas_linear(hn, blk["w_fc1"], blk["b_fc1"], act="gelu")
        y = pallas_linear(y, blk["w_fc2"], blk["b_fc2"])
        h = h + y.reshape(B, N, D)

    hn = pallas_layernorm(h.reshape(B * N, D), params["ln_g"], params["ln_b"])
    cls_out = hn.reshape(B, N, D)[:, 0]                                     # (B, D)
    logits = pallas_linear(cls_out, params["w_head"], params["b_head"])     # (B, ncls)
    return logits


# ---------------------------------------------------------------------------
# Parameters (stored as (in, out) for x @ W; biases random to exercise bias adds)
# ---------------------------------------------------------------------------
def init_params(key, cfg):
    D = cfg["embed_dim"]
    depth = cfg["depth"]
    p = cfg["patch_size"]
    Ci = cfg["in_channels"]
    ncls = cfg["num_classes"]
    hidden = int(D * cfg["mlp_ratio"])
    n_patches = (cfg["image_size"] // p) ** 2

    def rnd(k, shape, s=0.02):
        return s * jax.random.normal(k, shape, jnp.float32)

    keys = jax.random.split(key, 6 + depth)
    params = {
        "w_patch": rnd(keys[0], (Ci * p * p, D)),
        "b_patch": rnd(keys[1], (D,)),
        "cls_token": rnd(keys[2], (1, 1, D)),
        "pos_embed": rnd(keys[3], (1, n_patches + 1, D)),
        "ln_g": jnp.ones((D,), jnp.float32),
        "ln_b": jnp.zeros((D,), jnp.float32),
        "w_head": rnd(keys[4], (D, ncls)),
        "b_head": rnd(keys[5], (ncls,)),
        "blocks": [],
    }
    for i in range(depth):
        bk = jax.random.split(keys[6 + i], 8)
        params["blocks"].append({
            "ln1_g": jnp.ones((D,), jnp.float32),
            "ln1_b": jnp.zeros((D,), jnp.float32),
            "w_qkv": rnd(bk[0], (D, 3 * D)),
            "b_qkv": rnd(bk[1], (3 * D,)),
            "w_proj": rnd(bk[2], (D, D)),
            "b_proj": rnd(bk[3], (D,)),
            "ln2_g": jnp.ones((D,), jnp.float32),
            "ln2_b": jnp.zeros((D,), jnp.float32),
            "w_fc1": rnd(bk[4], (D, hidden)),
            "b_fc1": rnd(bk[5], (hidden,)),
            "w_fc2": rnd(bk[6], (hidden, D)),
            "b_fc2": rnd(bk[7], (D,)),
        })
    return params


# ---------------------------------------------------------------------------
# Pure-JAX reference (same math) for the correctness check
# ---------------------------------------------------------------------------
def _layernorm_ref(x, g, b, eps=1e-5):
    mu = jnp.mean(x, axis=-1, keepdims=True)
    var = jnp.mean((x - mu) ** 2, axis=-1, keepdims=True)
    return (x - mu) * lax.rsqrt(var + eps) * g + b


def vit_forward_ref(x, params, cfg):
    B = x.shape[0]
    p = cfg["patch_size"]
    D = cfg["embed_dim"]
    H = cfg["num_heads"]
    hd = D // H
    scale = hd ** (-0.5)

    _, Ci, Hi, Wi = x.shape
    gh, gw = Hi // p, Wi // p
    patches = x.reshape(B, Ci, gh, p, gw, p)
    patches = jnp.transpose(patches, (0, 2, 4, 1, 3, 5)).reshape(B, gh * gw, Ci * p * p)
    emb = patches @ params["w_patch"] + params["b_patch"]
    cls = jnp.broadcast_to(params["cls_token"], (B, 1, D))
    h = jnp.concatenate([cls, emb], axis=1) + params["pos_embed"]
    N = h.shape[1]

    for blk in params["blocks"]:
        hn = _layernorm_ref(h, blk["ln1_g"], blk["ln1_b"])
        qkv = hn @ blk["w_qkv"] + blk["b_qkv"]
        qkv = qkv.reshape(B, N, 3, H, hd).transpose(2, 0, 3, 1, 4)
        q, k, v = qkv[0], qkv[1], qkv[2]
        attn = jax.nn.softmax(jnp.einsum("bhqd,bhkd->bhqk", q, k) * scale, axis=-1)
        o = jnp.einsum("bhqk,bhkd->bhqd", attn, v)
        o = o.transpose(0, 2, 1, 3).reshape(B, N, D)
        h = h + (o @ blk["w_proj"] + blk["b_proj"])

        hn = _layernorm_ref(h, blk["ln2_g"], blk["ln2_b"])
        y = _gelu_tanh(hn @ blk["w_fc1"] + blk["b_fc1"]) @ blk["w_fc2"] + blk["b_fc2"]
        h = h + y

    hn = _layernorm_ref(h, params["ln_g"], params["ln_b"])
    return hn[:, 0] @ params["w_head"] + params["b_head"]


if __name__ == "__main__":
    cfg = dict(image_size=16, patch_size=4, in_channels=3, num_classes=10,
               embed_dim=32, depth=2, num_heads=4, mlp_ratio=4.0)

    key = jax.random.PRNGKey(0)
    kx, kp = jax.random.split(key)
    x = jax.random.normal(
        kx, (2, cfg["in_channels"], cfg["image_size"], cfg["image_size"]), jnp.float32)
    params = init_params(kp, cfg)

    fwd = jax.jit(functools.partial(vit_forward, cfg=cfg))
    logits = jax.block_until_ready(fwd(x, params))

    ref = vit_forward_ref(x, params, cfg)
    assert logits.shape == (2, cfg["num_classes"])
    assert jnp.allclose(logits, ref, atol=1e-2, rtol=1e-2), (
        f"mismatch vs reference: max abs diff {jnp.max(jnp.abs(logits - ref))}")

    print("KERNEL_OK")
</pallas_src>

<mosaic_0001>
module attributes {stable_mosaic.version = 11 : i64} {
  func.func @kernel(%arg0: i32, %arg1: memref<40x32xf32, #tpu.memory_space<vmem>>, %arg2: memref<1x32xf32, #tpu.memory_space<vmem>>, %arg3: memref<1x32xf32, #tpu.memory_space<vmem>>, %arg4: memref<40x32xf32, #tpu.memory_space<vmem>>) attributes {dimension_semantics = [#tpu.dimension_semantics<parallel>], iteration_bounds = array<i64: 1>, scalar_prefetch = 0 : i64, scratch_operands = 0 : i64, tpu.core_type = #tpu.core_type<tc>, window_params = [{transform_indices = @transform_0, window_bounds = array<i64: 40, 32>}, {pipeline_mode = #tpu.pipeline_mode<synchronous>, transform_indices = @transform_1, window_bounds = array<i64: 1, 32>}, {pipeline_mode = #tpu.pipeline_mode<synchronous>, transform_indices = @transform_2, window_bounds = array<i64: 1, 32>}, {transform_indices = @transform_3, window_bounds = array<i64: 40, 32>}]} {
    %c0 = arith.constant 0 : index
    %c0_0 = arith.constant 0 : index
    %0 = vector.load %arg1[%c0, %c0_0] : memref<40x32xf32, #tpu.memory_space<vmem>>, vector<40x32xf32>
    %cst = arith.constant dense<0.000000e+00> : vector<40xf32>
    %1 = vector.multi_reduction <add>, %0, %cst [1] : vector<40x32xf32> to vector<40xf32>
    %2 = vector.shape_cast %1 : vector<40xf32> to vector<40x1xf32>
    %cst_1 = arith.constant 3.200000e+01 : f32
    %3 = vector.broadcast %cst_1 : f32 to vector<40x1xf32>
    %4 = arith.divf %2, %3 : vector<40x1xf32>
    %5 = vector.broadcast %4 : vector<40x1xf32> to vector<40x32xf32>
    %6 = arith.subf %0, %5 : vector<40x32xf32>
    %7 = arith.mulf %6, %6 : vector<40x32xf32>
    %cst_2 = arith.constant dense<0.000000e+00> : vector<40xf32>
    %8 = vector.multi_reduction <add>, %7, %cst_2 [1] : vector<40x32xf32> to vector<40xf32>
    %9 = vector.shape_cast %8 : vector<40xf32> to vector<40x1xf32>
    %cst_3 = arith.constant 3.200000e+01 : f32
    %10 = vector.broadcast %cst_3 : f32 to vector<40x1xf32>
    %11 = arith.divf %9, %10 : vector<40x1xf32>
    %cst_4 = arith.constant 9.99999974E-6 : f32
    %12 = vector.broadcast %cst_4 : f32 to vector<40x1xf32>
    %13 = arith.addf %11, %12 : vector<40x1xf32>
    %14 = math.rsqrt %13 : vector<40x1xf32>
    %15 = vector.broadcast %14 : vector<40x1xf32> to vector<40x32xf32>
    %16 = arith.mulf %6, %15 : vector<40x32xf32>
    %c0_5 = arith.constant 0 : index
    %c0_6 = arith.constant 0 : index
    %17 = vector.load %arg2[%c0_5, %c0_6] : memref<1x32xf32, #tpu.memory_space<vmem>>, vector<1x32xf32>
    %18 = vector.broadcast %17 : vector<1x32xf32> to vector<40x32xf32>
    %19 = arith.mulf %16, %18 : vector<40x32xf32>
    %c0_7 = arith.constant 0 : index
    %c0_8 = arith.constant 0 : index
    %20 = vector.load %arg3[%c0_7, %c0_8] : memref<1x32xf32, #tpu.memory_space<vmem>>, vector<1x32xf32>
    %21 = vector.broadcast %20 : vector<1x32xf32> to vector<40x32xf32>
    %22 = arith.addf %19, %21 : vector<40x32xf32>
    %c0_9 = arith.constant 0 : index
    %c0_10 = arith.constant 0 : index
    %23 = vector.load %arg4[%c0_9, %c0_10] : memref<40x32xf32, #tpu.memory_space<vmem>>, vector<40x32xf32>
    tpu.vector_store %arg4[%c0_9, %c0_10], %22 {strides = array<i32>} : memref<40x32xf32, #tpu.memory_space<vmem>>, vector<40x32xf32>,
    return
  }
  func.func @transform_0(%arg0: i32) -> (i32, i32) {
    %c0_i32 = arith.constant 0 : i32
    %c0_i32_0 = arith.constant 0 : i32
    return %arg0, %c0_i32 : i32, i32
  }
  func.func @transform_1(%arg0: i32) -> (i32, i32) {
    %c0_i32 = arith.constant 0 : i32
    %c0_i32_0 = arith.constant 0 : i32
    %c0_i32_1 = arith.constant 0 : i32
    return %c0_i32, %c0_i32_0 : i32, i32
  }
  func.func @transform_2(%arg0: i32) -> (i32, i32) {
    %c0_i32 = arith.constant 0 : i32
    %c0_i32_0 = arith.constant 0 : i32
    %c0_i32_1 = arith.constant 0 : i32
    return %c0_i32, %c0_i32_0 : i32, i32
  }
  func.func @transform_3(%arg0: i32) -> (i32, i32) {
    %c0_i32 = arith.constant 0 : i32
    %c0_i32_0 = arith.constant 0 : i32
    return %arg0, %c0_i32 : i32, i32
  }
}

module attributes {stable_mosaic.version = 11 : i64} {
  func.func @kernel(%arg0: i32, %arg1: i32, %arg2: i32, %arg3: memref<32x128xf32, #tpu.memory_space<vmem>>, %arg4: memref<128x128xf32, #tpu.memory_space<vmem>>, %arg5: memref<1x128xf32, #tpu.memory_space<vmem>>, %arg6: memref<32x128xf32, #tpu.memory_space<vmem>>, %arg7: memref<32x128xf32, #tpu.memory_space<vmem>>) attributes {dimension_semantics = [#tpu.dimension_semantics<parallel>, #tpu.dimension_semantics<parallel>, #tpu.dimension_semantics<arbitrary>], iteration_bounds = array<i64: 1, 1, 1>, scalar_prefetch = 0 : i64, scratch_operands = 1 : i64, tpu.core_type = #tpu.core_type<tc>, window_params = [{transform_indices = @transform_0, window_bounds = array<i64: 32, 128>}, {transform_indices = @transform_1, window_bounds = array<i64: 128, 128>}, {transform_indices = @transform_2, window_bounds = array<i64: 1, 128>}, {transform_indices = @transform_3, window_bounds = array<i64: 32, 128>}]} {
    %c0_i32 = arith.constant 0 : i32
    %0 = arith.cmpi eq, %arg2, %c0_i32 : i32
    %1 = arith.extui %0 : i1 to i32
    %c0_i32_0 = arith.constant 0 : i32
    %2 = arith.cmpi ne, %1, %c0_i32_0 : i32
    scf.if %2 {
      %cst_10 = arith.constant 0.000000e+00 : f32
      %12 = vector.broadcast %cst_10 : f32 to vector<32x128xf32>
      %c0_11 = arith.constant 0 : index
      %c0_12 = arith.constant 0 : index
      %13 = vector.load %arg7[%c0_11, %c0_12] : memref<32x128xf32, #tpu.memory_space<vmem>>, vector<32x128xf32>
      tpu.vector_store %arg7[%c0_11, %c0_12], %12 {strides = array<i32>} : memref<32x128xf32, #tpu.memory_space<vmem>>, vector<32x128xf32>,
    } else {
    }
    %c0 = arith.constant 0 : index
    %c0_1 = arith.constant 0 : index
    %3 = vector.load %arg7[%c0, %c0_1] : memref<32x128xf32, #tpu.memory_space<vmem>>, vector<32x128xf32>
    %c0_2 = arith.constant 0 : index
    %c0_3 = arith.constant 0 : index
    %4 = vector.load %arg3[%c0_2, %c0_3] : memref<32x128xf32, #tpu.memory_space<vmem>>, vector<32x128xf32>
    %c0_4 = arith.constant 0 : index
    %c0_5 = arith.constant 0 : index
    %5 = vector.load %arg4[%c0_4, %c0_5] : memref<128x128xf32, #tpu.memory_space<vmem>>, vector<128x128xf32>
    %cst = arith.constant dense<0.000000e+00> : vector<32x128xf32>
    %6 = tpu.matmul %4, %5, %cst {dimension_numbers = #tpu.dot_dimension_numbers<[1], [0], [0], [1], [0, 0, 1, 1], [], []>, precision = #tpu.contract_precision<fp32>} : vector<32x128xf32>, vector<128x128xf32>, vector<32x128xf32> -> vector<32x128xf32>
    %7 = arith.addf %3, %6 : vector<32x128xf32>
    %c0_6 = arith.constant 0 : index
    %c0_7 = arith.constant 0 : index
    %8 = vector.load %arg7[%c0_6, %c0_7] : memref<32x128xf32, #tpu.memory_space<vmem>>, vector<32x128xf32>
    tpu.vector_store %arg7[%c0_6, %c0_7], %7 {strides = array<i32>} : memref<32x128xf32, #tpu.memory_space<vmem>>, vector<32x128xf32>,
    %c0_i32_8 = arith.constant 0 : i32
    %9 = arith.cmpi eq, %arg2, %c0_i32_8 : i32
    %10 = arith.extui %9 : i1 to i32
    %c0_i32_9 = arith.constant 0 : i32
    %11 = arith.cmpi ne, %10, %c0_i32_9 : i32
    scf.if %11 {
      %c0_10 = arith.constant 0 : index
      %c0_11 = arith.constant 0 : index
      %12 = vector.load %arg7[%c0_10, %c0_11] : memref<32x128xf32, #tpu.memory_space<vmem>>, vector<32x128xf32>
      %c0_12 = arith.constant 0 : index
      %c0_13 = arith.constant 0 : index
      %13 = vector.load %arg5[%c0_12, %c0_13] : memref<1x128xf32, #tpu.memory_space<vmem>>, vector<1x128xf32>
      %14 = vector.broadcast %13 : vector<1x128xf32> to vector<32x128xf32>
      %15 = arith.addf %12, %14 : vector<32x128xf32>
      %c0_14 = arith.constant 0 : index
      %c0_15 = arith.constant 0 : index
      %16 = vector.load %arg6[%c0_14, %c0_15] : memref<32x128xf32, #tpu.memory_space<vmem>>, vector<32x128xf32>
      tpu.vector_store %arg6[%c0_14, %c0_15], %15 {strides = array<i32>} : memref<32x128xf32, #tpu.memory_space<vmem>>, vector<32x128xf32>,
    } else {
    }
    return
  }
  func.func @transform_0(%arg0: i32, %arg1: i32, %arg2: i32) -> (i32, i32) {
    %c0_i32 = arith.constant 0 : i32
    return %arg0, %arg2 : i32, i32
  }
  func.func @transform_1(%arg0: i32, %arg1: i32, %arg2: i32) -> (i32, i32) {
    %c0_i32 = arith.constant 0 : i32
    return %arg2, %arg1 : i32, i32
  }
  func.func @transform_2(%arg0: i32, %arg1: i32, %arg2: i32) -> (i32, i32) {
    %c0_i32 = arith.constant 0 : i32
    %c0_i32_0 = arith.constant 0 : i32
    return %c0_i32, %arg1 : i32, i32
  }
  func.func @transform_3(%arg0: i32, %arg1: i32, %arg2: i32) -> (i32, i32) {
    %c0_i32 = arith.constant 0 : i32
    return %arg0, %arg1 : i32, i32
  }
}

module attributes {stable_mosaic.version = 11 : i64} {
  func.func @kernel(%arg0: i32, %arg1: i32, %arg2: i32, %arg3: memref<40x128xf32, #tpu.memory_space<vmem>>, %arg4: memref<128x128xf32, #tpu.memory_space<vmem>>, %arg5: memref<1x128xf32, #tpu.memory_space<vmem>>, %arg6: memref<40x128xf32, #tpu.memory_space<vmem>>, %arg7: memref<40x128xf32, #tpu.memory_space<vmem>>) attributes {dimension_semantics = [#tpu.dimension_semantics<parallel>, #tpu.dimension_semantics<parallel>, #tpu.dimension_semantics<arbitrary>], iteration_bounds = array<i64: 1, 1, 1>, scalar_prefetch = 0 : i64, scratch_operands = 1 : i64, tpu.core_type = #tpu.core_type<tc>, window_params = [{transform_indices = @transform_0, window_bounds = array<i64: 40, 128>}, {transform_indices = @transform_1, window_bounds = array<i64: 128, 128>}, {transform_indices = @transform_2, window_bounds = array<i64: 1, 128>}, {transform_indices = @transform_3, window_bounds = array<i64: 40, 128>}]} {
    %c0_i32 = arith.constant 0 : i32
    %0 = arith.cmpi eq, %arg2, %c0_i32 : i32
    %1 = arith.extui %0 : i1 to i32
    %c0_i32_0 = arith.constant 0 : i32
    %2 = arith.cmpi ne, %1, %c0_i32_0 : i32
    scf.if %2 {
      %cst_10 = arith.constant 0.000000e+00 : f32
      %12 = vector.broadcast %cst_10 : f32 to vector<40x128xf32>
      %c0_11 = arith.constant 0 : index
      %c0_12 = arith.constant 0 : index
      %13 = vector.load %arg7[%c0_11, %c0_12] : memref<40x128xf32, #tpu.memory_space<vmem>>, vector<40x128xf32>
      tpu.vector_store %arg7[%c0_11, %c0_12], %12 {strides = array<i32>} : memref<40x128xf32, #tpu.memory_space<vmem>>, vector<40x128xf32>,
    } else {
    }
    %c0 = arith.constant 0 : index
    %c0_1 = arith.constant 0 : index
    %3 = vector.load %arg7[%c0, %c0_1] : memref<40x128xf32, #tpu.memory_space<vmem>>, vector<40x128xf32>
    %c0_2 = arith.constant 0 : index
    %c0_3 = arith.constant 0 : index
    %4 = vector.load %arg3[%c0_2, %c0_3] : memref<40x128xf32, #tpu.memory_space<vmem>>, vector<40x128xf32>
    %c0_4 = arith.constant 0 : index
    %c0_5 = arith.constant 0 : index
    %5 = vector.load %arg4[%c0_4, %c0_5] : memref<128x128xf32, #tpu.memory_space<vmem>>, vector<128x128xf32>
    %cst = arith.constant dense<0.000000e+00> : vector<40x128xf32>
    %6 = tpu.matmul %4, %5, %cst {dimension_numbers = #tpu.dot_dimension_numbers<[1], [0], [0], [1], [0, 0, 1, 1], [], []>, precision = #tpu.contract_precision<fp32>} : vector<40x128xf32>, vector<128x128xf32>, vector<40x128xf32> -> vector<40x128xf32>
    %7 = arith.addf %3, %6 : vector<40x128xf32>
    %c0_6 = arith.constant 0 : index
    %c0_7 = arith.constant 0 : index
    %8 = vector.load %arg7[%c0_6, %c0_7] : memref<40x128xf32, #tpu.memory_space<vmem>>, vector<40x128xf32>
    tpu.vector_store %arg7[%c0_6, %c0_7], %7 {strides = array<i32>} : memref<40x128xf32, #tpu.memory_space<vmem>>, vector<40x128xf32>,
    %c0_i32_8 = arith.constant 0 : i32
    %9 = arith.cmpi eq, %arg2, %c0_i32_8 : i32
    %10 = arith.extui %9 : i1 to i32
    %c0_i32_9 = arith.constant 0 : i32
    %11 = arith.cmpi ne, %10, %c0_i32_9 : i32
    scf.if %11 {
      %c0_10 = arith.constant 0 : index
      %c0_11 = arith.constant 0 : index
      %12 = vector.load %arg7[%c0_10, %c0_11] : memref<40x128xf32, #tpu.memory_space<vmem>>, vector<40x128xf32>
      %c0_12 = arith.constant 0 : index
      %c0_13 = arith.constant 0 : index
      %13 = vector.load %arg5[%c0_12, %c0_13] : memref<1x128xf32, #tpu.memory_space<vmem>>, vector<1x128xf32>
      %14 = vector.broadcast %13 : vector<1x128xf32> to vector<40x128xf32>
      %15 = arith.addf %12, %14 : vector<40x128xf32>
      %c0_14 = arith.constant 0 : index
      %c0_15 = arith.constant 0 : index
      %16 = vector.load %arg6[%c0_14, %c0_15] : memref<40x128xf32, #tpu.memory_space<vmem>>, vector<40x128xf32>
      tpu.vector_store %arg6[%c0_14, %c0_15], %15 {strides = array<i32>} : memref<40x128xf32, #tpu.memory_space<vmem>>, vector<40x128xf32>,
    } else {
    }
    return
  }
  func.func @transform_0(%arg0: i32, %arg1: i32, %arg2: i32) -> (i32, i32) {
    %c0_i32 = arith.constant 0 : i32
    return %arg0, %arg2 : i32, i32
  }
  func.func @transform_1(%arg0: i32, %arg1: i32, %arg2: i32) -> (i32, i32) {
    %c0_i32 = arith.constant 0 : i32
    return %arg2, %arg1 : i32, i32
  }
  func.func @transform_2(%arg0: i32, %arg1: i32, %arg2: i32) -> (i32, i32) {
    %c0_i32 = arith.constant 0 : i32
    %c0_i32_0 = arith.constant 0 : i32
    return %c0_i32, %arg1 : i32, i32
  }
  func.func @transform_3(%arg0: i32, %arg1: i32, %arg2: i32) -> (i32, i32) {
    %c0_i32 = arith.constant 0 : i32
    return %arg0, %arg1 : i32, i32
  }
}

module attributes {stable_mosaic.version = 11 : i64} {
  func.func @kernel(%arg0: i32, %arg1: memref<1x17x96xf32, #tpu.memory_space<vmem>>, %arg2: memref<4x8x32xf32, #tpu.memory_space<vmem>>, %arg3: memref<1x32xf32, #tpu.memory_space<vmem>>, %arg4: memref<1x17x32xf32, #tpu.memory_space<vmem>>) attributes {dimension_semantics = [#tpu.dimension_semantics<parallel>], iteration_bounds = array<i64: 2>, scalar_prefetch = 0 : i64, scratch_operands = 0 : i64, tpu.core_type = #tpu.core_type<tc>, window_params = [{transform_indices = @transform_0, window_bounds = array<i64: 1, 17, 96>}, {pipeline_mode = #tpu.pipeline_mode<synchronous>, transform_indices = @transform_1, window_bounds = array<i64: 4, 8, 32>}, {pipeline_mode = #tpu.pipeline_mode<synchronous>, transform_indices = @transform_2, window_bounds = array<i64: 1, 32>}, {transform_indices = @transform_3, window_bounds = array<i64: 1, 17, 32>}]} {
    %cst = arith.constant 0.000000e+00 : f32
    %0 = vector.broadcast %cst : f32 to vector<17x32xf32>
    %c0 = arith.constant 0 : index
    %c0_0 = arith.constant 0 : index
    %c0_1 = arith.constant 0 : index
    %1 = vector.load %arg1[%c0, %c0_0, %c0_1] : memref<1x17x96xf32, #tpu.memory_space<vmem>>, vector<1x17x8xf32>
    %2 = vector.shape_cast %1 : vector<1x17x8xf32> to vector<17x8xf32>
    %c0_2 = arith.constant 0 : index
    %c0_3 = arith.constant 0 : index
    %c32 = arith.constant 32 : index
    %3 = vector.load %arg1[%c0_2, %c0_3, %c32] : memref<1x17x96xf32, #tpu.memory_space<vmem>>, vector<1x17x8xf32>
    %4 = vector.shape_cast %3 : vector<1x17x8xf32> to vector<17x8xf32>
    %c0_4 = arith.constant 0 : index
    %c0_5 = arith.constant 0 : index
    %c64 = arith.constant 64 : index
    %5 = vector.load %arg1[%c0_4, %c0_5, %c64] : memref<1x17x96xf32, #tpu.memory_space<vmem>>, vector<1x17x8xf32>
    %6 = vector.shape_cast %5 : vector<1x17x8xf32> to vector<17x8xf32>
    %cst_6 = arith.constant dense<0.000000e+00> : vector<17x17xf32>
    %7 = tpu.matmul %2, %4, %cst_6 {dimension_numbers = #tpu.dot_dimension_numbers<[1], [1], [0], [0], [0, 0, 1, 0], [], []>, precision = #tpu.contract_precision<fp32>} : vector<17x8xf32>, vector<17x8xf32>, vector<17x17xf32> -> vector<17x17xf32>
    %cst_7 = arith.constant 0.353553385 : f32
    %8 = vector.broadcast %cst_7 : f32 to vector<17x17xf32>
    %9 = arith.mulf %7, %8 : vector<17x17xf32>
    %cst_8 = arith.constant dense<0xFF800000> : vector<17xf32>
    %10 = vector.multi_reduction <maximumf>, %9, %cst_8 [1] : vector<17x17xf32> to vector<17xf32>
    %11 = vector.shape_cast %10 : vector<17xf32> to vector<17x1xf32>
    %12 = vector.broadcast %11 : vector<17x1xf32> to vector<17x17xf32>
    %13 = arith.subf %9, %12 : vector<17x17xf32>
    %14 = math.exp %13 : vector<17x17xf32>
    %cst_9 = arith.constant dense<0.000000e+00> : vector<17xf32>
    %15 = vector.multi_reduction <add>, %14, %cst_9 [1] : vector<17x17xf32> to vector<17xf32>
    %16 = vector.shape_cast %15 : vector<17xf32> to vector<17x1xf32>
    %17 = tpu.reciprocal %16 {approx = true} : vector<17x1xf32> -> vector<17x1xf32>
    %18 = vector.broadcast %17 : vector<17x1xf32> to vector<17x17xf32>
    %19 = arith.mulf %14, %18 : vector<17x17xf32>
    %cst_10 = arith.constant dense<0.000000e+00> : vector<17x8xf32>
    %20 = tpu.matmul %19, %6, %cst_10 {dimension_numbers = #tpu.dot_dimension_numbers<[1], [0], [0], [1], [0, 0, 1, 1], [], []>, precision = #tpu.contract_precision<fp32>} : vector<17x17xf32>, vector<17x8xf32>, vector<17x8xf32> -> vector<17x8xf32>
    %c0_11 = arith.constant 0 : index
    %c0_12 = arith.constant 0 : index
    %c0_13 = arith.constant 0 : index
    %21 = vector.load %arg2[%c0_11, %c0_12, %c0_13] : memref<4x8x32xf32, #tpu.memory_space<vmem>>, vector<1x8x32xf32>
    %22 = vector.shape_cast %21 : vector<1x8x32xf32> to vector<8x32xf32>
    %cst_14 = arith.constant dense<0.000000e+00> : vector<17x32xf32>
    %23 = tpu.matmul %20, %22, %cst_14 {dimension_numbers = #tpu.dot_dimension_numbers<[1], [0], [0], [1], [0, 0, 1, 1], [], []>, precision = #tpu.contract_precision<fp32>} : vector<17x8xf32>, vector<8x32xf32>, vector<17x32xf32> -> vector<17x32xf32>
    %24 = arith.addf %0, %23 : vector<17x32xf32>
    %c0_15 = arith.constant 0 : index
    %c0_16 = arith.constant 0 : index
    %c8 = arith.constant 8 : index
    %25 = vector.load %arg1[%c0_15, %c0_16, %c8] : memref<1x17x96xf32, #tpu.memory_space<vmem>>, vector<1x17x8xf32>
    %26 = vector.shape_cast %25 : vector<1x17x8xf32> to vector<17x8xf32>
    %c0_17 = arith.constant 0 : index
    %c0_18 = arith.constant 0 : index
    %c40 = arith.constant 40 : index
    %27 = vector.load %arg1[%c0_17, %c0_18, %c40] : memref<1x17x96xf32, #tpu.memory_space<vmem>>, vector<1x17x8xf32>
    %28 = vector.shape_cast %27 : vector<1x17x8xf32> to vector<17x8xf32>
    %c0_19 = arith.constant 0 : index
    %c0_20 = arith.constant 0 : index
    %c72 = arith.constant 72 : index
    %29 = vector.load %arg1[%c0_19, %c0_20, %c72] : memref<1x17x96xf32, #tpu.memory_space<vmem>>, vector<1x17x8xf32>
    %30 = vector.shape_cast %29 : vector<1x17x8xf32> to vector<17x8xf32>
    %cst_21 = arith.constant dense<0.000000e+00> : vector<17x17xf32>
    %31 = tpu.matmul %26, %28, %cst_21 {dimension_numbers = #tpu.dot_dimension_numbers<[1], [1], [0], [0], [0, 0, 1, 0], [], []>, precision = #tpu.contract_precision<fp32>} : vector<17x8xf32>, vector<17x8xf32>, vector<17x17xf32> -> vector<17x17xf32>
    %cst_22 = arith.constant 0.353553385 : f32
    %32 = vector.broadcast %cst_22 : f32 to vector<17x17xf32>
    %33 = arith.mulf %31, %32 : vector<17x17xf32>
    %cst_23 = arith.constant dense<0xFF800000> : vector<17xf32>
    %34 = vector.multi_reduction <maximumf>, %33, %cst_23 [1] : vector<17x17xf32> to vector<17xf32>
    %35 = vector.shape_cast %34 : vector<17xf32> to vector<17x1xf32>
    %36 = vector.broadcast %35 : vector<17x1xf32> to vector<17x17xf32>
    %37 = arith.subf %33, %36 : vector<17x17xf32>
    %38 = math.exp %37 : vector<17x17xf32>
    %cst_24 = arith.constant dense<0.000000e+00> : vector<17xf32>
    %39 = vector.multi_reduction <add>, %38, %cst_24 [1] : vector<17x17xf32> to vector<17xf32>
    %40 = vector.shape_cast %39 : vector<17xf32> to vector<17x1xf32>
    %41 = tpu.reciprocal %40 {approx = true} : vector<17x1xf32> -> vector<17x1xf32>
    %42 = vector.broadcast %41 : vector<17x1xf32> to vector<17x17xf32>
    %43 = arith.mulf %38, %42 : vector<17x17xf32>
    %cst_25 = arith.constant dense<0.000000e+00> : vector<17x8xf32>
    %44 = tpu.matmul %43, %30, %cst_25 {dimension_numbers = #tpu.dot_dimension_numbers<[1], [0], [0], [1], [0, 0, 1, 1], [], []>, precision = #tpu.contract_precision<fp32>} : vector<17x17xf32>, vector<17x8xf32>, vector<17x8xf32> -> vector<17x8xf32>
    %c1 = arith.constant 1 : index
    %c0_26 = arith.constant 0 : index
    %c0_27 = arith.constant 0 : index
    %45 = vector.load %arg2[%c1, %c0_26, %c0_27] : memref<4x8x32xf32, #tpu.memory_space<vmem>>, vector<1x8x32xf32>
    %46 = vector.shape_cast %45 : vector<1x8x32xf32> to vector<8x32xf32>
    %cst_28 = arith.constant dense<0.000000e+00> : vector<17x32xf32>
    %47 = tpu.matmul %44, %46, %cst_28 {dimension_numbers = #tpu.dot_dimension_numbers<[1], [0], [0], [1], [0, 0, 1, 1], [], []>, precision = #tpu.contract_precision<fp32>} : vector<17x8xf32>, vector<8x32xf32>, vector<17x32xf32> -> vector<17x32xf32>
    %48 = arith.addf %24, %47 : vector<17x32xf32>
    %c0_29 = arith.constant 0 : index
    %c0_30 = arith.constant 0 : index
    %c16 = arith.constant 16 : index
    %49 = vector.load %arg1[%c0_29, %c0_30, %c16] : memref<1x17x96xf32, #tpu.memory_space<vmem>>, vector<1x17x8xf32>
    %50 = vector.shape_cast %49 : vector<1x17x8xf32> to vector<17x8xf32>
    %c0_31 = arith.constant 0 : index
    %c0_32 = arith.constant 0 : index
    %c48 = arith.constant 48 : index
    %51 = vector.load %arg1[%c0_31, %c0_32, %c48] : memref<1x17x96xf32, #tpu.memory_space<vmem>>, vector<1x17x8xf32>
    %52 = vector.shape_cast %51 : vector<1x17x8xf32> to vector<17x8xf32>
    %c0_33 = arith.constant 0 : index
    %c0_34 = arith.constant 0 : index
    %c80 = arith.constant 80 : index
    %53 = vector.load %arg1[%c0_33, %c0_34, %c80] : memref<1x17x96xf32, #tpu.memory_space<vmem>>, vector<1x17x8xf32>
    %54 = vector.shape_cast %53 : vector<1x17x8xf32> to vector<17x8xf32>
    %cst_35 = arith.constant dense<0.000000e+00> : vector<17x17xf32>
    %55 = tpu.matmul %50, %52, %cst_35 {dimension_numbers = #tpu.dot_dimension_numbers<[1], [1], [0], [0], [0, 0, 1, 0], [], []>, precision = #tpu.contract_precision<fp32>} : vector<17x8xf32>, vector<17x8xf32>, vector<17x17xf32> -> vector<17x17xf32>
    %cst_36 = arith.constant 0.353553385 : f32
    %56 = vector.broadcast %cst_36 : f32 to vector<17x17xf32>
    %57 = arith.mulf %55, %56 : vector<17x17xf32>
    %cst_37 = arith.constant dense<0xFF800000> : vector<17xf32>
    %58 = vector.multi_reduction <maximumf>, %57, %cst_37 [1] : vector<17x17xf32> to vector<17xf32>
    %59 = vector.shape_cast %58 : vector<17xf32> to vector<17x1xf32>
    %60 = vector.broadcast %59 : vector<17x1xf32> to vector<17x17xf32>
    %61 = arith.subf %57, %60 : vector<17x17xf32>
    %62 = math.exp %61 : vector<17x17xf32>
    %cst_38 = arith.constant dense<0.000000e+00> : vector<17xf32>
    %63 = vector.multi_reduction <add>, %62, %cst_38 [1] : vector<17x17xf32> to vector<17xf32>
    %64 = vector.shape_cast %63 : vector<17xf32> to vector<17x1xf32>
    %65 = tpu.reciprocal %64 {approx = true} : vector<17x1xf32> -> vector<17x1xf32>
    %66 = vector.broadcast %65 : vector<17x1xf32> to vector<17x17xf32>
    %67 = arith.mulf %62, %66 : vector<17x17xf32>
    %cst_39 = arith.constant dense<0.000000e+00> : vector<17x8xf32>
    %68 = tpu.matmul %67, %54, %cst_39 {dimension_numbers = #tpu.dot_dimension_numbers<[1], [0], [0], [1], [0, 0, 1, 1], [], []>, precision = #tpu.contract_precision<fp32>} : vector<17x17xf32>, vector<17x8xf32>, vector<17x8xf32> -> vector<17x8xf32>
    %c2 = arith.constant 2 : index
    %c0_40 = arith.constant 0 : index
    %c0_41 = arith.constant 0 : index
    %69 = vector.load %arg2[%c2, %c0_40, %c0_41] : memref<4x8x32xf32, #tpu.memory_space<vmem>>, vector<1x8x32xf32>
    %70 = vector.shape_cast %69 : vector<1x8x32xf32> to vector<8x32xf32>
    %cst_42 = arith.constant dense<0.000000e+00> : vector<17x32xf32>
    %71 = tpu.matmul %68, %70, %cst_42 {dimension_numbers = #tpu.dot_dimension_numbers<[1], [0], [0], [1], [0, 0, 1, 1], [], []>, precision = #tpu.contract_precision<fp32>} : vector<17x8xf32>, vector<8x32xf32>, vector<17x32xf32> -> vector<17x32xf32>
    %72 = arith.addf %48, %71 : vector<17x32xf32>
    %c0_43 = arith.constant 0 : index
    %c0_44 = arith.constant 0 : index
    %c24 = arith.constant 24 : index
    %73 = vector.load %arg1[%c0_43, %c0_44, %c24] : memref<1x17x96xf32, #tpu.memory_space<vmem>>, vector<1x17x8xf32>
    %74 = vector.shape_cast %73 : vector<1x17x8xf32> to vector<17x8xf32>
    %c0_45 = arith.constant 0 : index
    %c0_46 = arith.constant 0 : index
    %c56 = arith.constant 56 : index
    %75 = vector.load %arg1[%c0_45, %c0_46, %c56] : memref<1x17x96xf32, #tpu.memory_space<vmem>>, vector<1x17x8xf32>
    %76 = vector.shape_cast %75 : vector<1x17x8xf32> to vector<17x8xf32>
    %c0_47 = arith.constant 0 : index
    %c0_48 = arith.constant 0 : index
    %c88 = arith.constant 88 : index
    %77 = vector.load %arg1[%c0_47, %c0_48, %c88] : memref<1x17x96xf32, #tpu.memory_space<vmem>>, vector<1x17x8xf32>
    %78 = vector.shape_cast %77 : vector<1x17x8xf32> to vector<17x8xf32>
    %cst_49 = arith.constant dense<0.000000e+00> : vector<17x17xf32>
    %79 = tpu.matmul %74, %76, %cst_49 {dimension_numbers = #tpu.dot_dimension_numbers<[1], [1], [0], [0], [0, 0, 1, 0], [], []>, precision = #tpu.contract_precision<fp32>} : vector<17x8xf32>, vector<17x8xf32>, vector<17x17xf32> -> vector<17x17xf32>
    %cst_50 = arith.constant 0.353553385 : f32
    %80 = vector.broadcast %cst_50 : f32 to vector<17x17xf32>
    %81 = arith.mulf %79, %80 : vector<17x17xf32>
    %cst_51 = arith.constant dense<0xFF800000> : vector<17xf32>
    %82 = vector.multi_reduction <maximumf>, %81, %cst_51 [1] : vector<17x17xf32> to vector<17xf32>
    %83 = vector.shape_cast %82 : vector<17xf32> to vector<17x1xf32>
    %84 = vector.broadcast %83 : vector<17x1xf32> to vector<17x17xf32>
    %85 = arith.subf %81, %84 : vector<17x17xf32>
    %86 = math.exp %85 : vector<17x17xf32>
    %cst_52 = arith.constant dense<0.000000e+00> : vector<17xf32>
    %87 = vector.multi_reduction <add>, %86, %cst_52 [1] : vector<17x17xf32> to vector<17xf32>
    %88 = vector.shape_cast %87 : vector<17xf32> to vector<17x1xf32>
    %89 = tpu.reciprocal %88 {approx = true} : vector<17x1xf32> -> vector<17x1xf32>
    %90 = vector.broadcast %89 : vector<17x1xf32> to vector<17x17xf32>
    %91 = arith.mulf %86, %90 : vector<17x17xf32>
    %cst_53 = arith.constant dense<0.000000e+00> : vector<17x8xf32>
    %92 = tpu.matmul %91, %78, %cst_53 {dimension_numbers = #tpu.dot_dimension_numbers<[1], [0], [0], [1], [0, 0, 1, 1], [], []>, precision = #tpu.contract_precision<fp32>} : vector<17x17xf32>, vector<17x8xf32>, vector<17x8xf32> -> vector<17x8xf32>
    %c3 = arith.constant 3 : index
    %c0_54 = arith.constant 0 : index
    %c0_55 = arith.constant 0 : index
    %93 = vector.load %arg2[%c3, %c0_54, %c0_55] : memref<4x8x32xf32, #tpu.memory_space<vmem>>, vector<1x8x32xf32>
    %94 = vector.shape_cast %93 : vector<1x8x32xf32> to vector<8x32xf32>
    %cst_56 = arith.constant dense<0.000000e+00> : vector<17x32xf32>
    %95 = tpu.matmul %92, %94, %cst_56 {dimension_numbers = #tpu.dot_dimension_numbers<[1], [0], [0], [1], [0, 0, 1, 1], [], []>, precision = #tpu.contract_precision<fp32>} : vector<17x8xf32>, vector<8x32xf32>, vector<17x32xf32> -> vector<17x32xf32>
    %96 = arith.addf %72, %95 : vector<17x32xf32>
    %c0_57 = arith.constant 0 : index
    %c0_58 = arith.constant 0 : index
    %97 = vector.load %arg3[%c0_57, %c0_58] : memref<1x32xf32, #tpu.memory_space<vmem>>, vector<1x32xf32>
    %98 = vector.broadcast %97 : vector<1x32xf32> to vector<17x32xf32>
    %99 = arith.addf %96, %98 : vector<17x32xf32>
    %c0_59 = arith.constant 0 : index
    %c0_60 = arith.constant 0 : index
    %c0_61 = arith.constant 0 : index
    %100 = vector.load %arg4[%c0_59, %c0_60, %c0_61] : memref<1x17x32xf32, #tpu.memory_space<vmem>>, vector<1x17x32xf32>
    %101 = vector.shape_cast %100 : vector<1x17x32xf32> to vector<17x32xf32>
    %102 = vector.shape_cast %99 : vector<17x32xf32> to vector<1x17x32xf32>
    tpu.vector_store %arg4[%c0_59, %c0_60, %c0_61], %102 {strides = array<i32>} : memref<1x17x32xf32, #tpu.memory_space<vmem>>, vector<1x17x32xf32>,
    return
  }
  func.func @transform_0(%arg0: i32) -> (i32, i32, i32) {
    %c0_i32 = arith.constant 0 : i32
    %c0_i32_0 = arith.constant 0 : i32
    %c0_i32_1 = arith.constant 0 : i32
    return %arg0, %c0_i32, %c0_i32_0 : i32, i32, i32
  }
  func.func @transform_1(%arg0: i32) -> (i32, i32, i32) {
    %c0_i32 = arith.constant 0 : i32
    %c0_i32_0 = arith.constant 0 : i32
    %c0_i32_1 = arith.constant 0 : i32
    %c0_i32_2 = arith.constant 0 : i32
    return %c0_i32, %c0_i32_0, %c0_i32_1 : i32, i32, i32
  }
  func.func @transform_2(%arg0: i32) -> (i32, i32) {
    %c0_i32 = arith.constant 0 : i32
    %c0_i32_0 = arith.constant 0 : i32
    %c0_i32_1 = arith.constant 0 : i32
    return %c0_i32, %c0_i32_0 : i32, i32
  }
  func.func @transform_3(%arg0: i32) -> (i32, i32, i32) {
    %c0_i32 = arith.constant 0 : i32
    %c0_i32_0 = arith.constant 0 : i32
    %c0_i32_1 = arith.constant 0 : i32
    return %arg0, %c0_i32, %c0_i32_0 : i32, i32, i32
  }
}

module attributes {stable_mosaic.version = 11 : i64} {
  func.func @kernel(%arg0: i32, %arg1: i32, %arg2: i32, %arg3: memref<40x128xf32, #tpu.memory_space<vmem>>, %arg4: memref<128x128xf32, #tpu.memory_space<vmem>>, %arg5: memref<1x128xf32, #tpu.memory_space<vmem>>, %arg6: memref<40x128xf32, #tpu.memory_space<vmem>>, %arg7: memref<40x128xf32, #tpu.memory_space<vmem>>) attributes {dimension_semantics = [#tpu.dimension_semantics<parallel>, #tpu.dimension_semantics<parallel>, #tpu.dimension_semantics<arbitrary>], iteration_bounds = array<i64: 1, 1, 1>, scalar_prefetch = 0 : i64, scratch_operands = 1 : i64, tpu.core_type = #tpu.core_type<tc>, window_params = [{transform_indices = @transform_0, window_bounds = array<i64: 40, 128>}, {transform_indices = @transform_1, window_bounds = array<i64: 128, 128>}, {transform_indices = @transform_2, window_bounds = array<i64: 1, 128>}, {transform_indices = @transform_3, window_bounds = array<i64: 40, 128>}]} {
    %c0_i32 = arith.constant 0 : i32
    %0 = arith.cmpi eq, %arg2, %c0_i32 : i32
    %1 = arith.extui %0 : i1 to i32
    %c0_i32_0 = arith.constant 0 : i32
    %2 = arith.cmpi ne, %1, %c0_i32_0 : i32
    scf.if %2 {
      %cst_10 = arith.constant 0.000000e+00 : f32
      %12 = vector.broadcast %cst_10 : f32 to vector<40x128xf32>
      %c0_11 = arith.constant 0 : index
      %c0_12 = arith.constant 0 : index
      %13 = vector.load %arg7[%c0_11, %c0_12] : memref<40x128xf32, #tpu.memory_space<vmem>>, vector<40x128xf32>
      tpu.vector_store %arg7[%c0_11, %c0_12], %12 {strides = array<i32>} : memref<40x128xf32, #tpu.memory_space<vmem>>, vector<40x128xf32>,
    } else {
    }
    %c0 = arith.constant 0 : index
    %c0_1 = arith.constant 0 : index
    %3 = vector.load %arg7[%c0, %c0_1] : memref<40x128xf32, #tpu.memory_space<vmem>>, vector<40x128xf32>
    %c0_2 = arith.constant 0 : index
    %c0_3 = arith.constant 0 : index
    %4 = vector.load %arg3[%c0_2, %c0_3] : memref<40x128xf32, #tpu.memory_space<vmem>>, vector<40x128xf32>
    %c0_4 = arith.constant 0 : index
    %c0_5 = arith.constant 0 : index
    %5 = vector.load %arg4[%c0_4, %c0_5] : memref<128x128xf32, #tpu.memory_space<vmem>>, vector<128x128xf32>
    %cst = arith.constant dense<0.000000e+00> : vector<40x128xf32>
    %6 = tpu.matmul %4, %5, %cst {dimension_numbers = #tpu.dot_dimension_numbers<[1], [0], [0], [1], [0, 0, 1, 1], [], []>, precision = #tpu.contract_precision<fp32>} : vector<40x128xf32>, vector<128x128xf32>, vector<40x128xf32> -> vector<40x128xf32>
    %7 = arith.addf %3, %6 : vector<40x128xf32>
    %c0_6 = arith.constant 0 : index
    %c0_7 = arith.constant 0 : index
    %8 = vector.load %arg7[%c0_6, %c0_7] : memref<40x128xf32, #tpu.memory_space<vmem>>, vector<40x128xf32>
    tpu.vector_store %arg7[%c0_6, %c0_7], %7 {strides = array<i32>} : memref<40x128xf32, #tpu.memory_space<vmem>>, vector<40x128xf32>,
    %c0_i32_8 = arith.constant 0 : i32
    %9 = arith.cmpi eq, %arg2, %c0_i32_8 : i32
    %10 = arith.extui %9 : i1 to i32
    %c0_i32_9 = arith.constant 0 : i32
    %11 = arith.cmpi ne, %10, %c0_i32_9 : i32
    scf.if %11 {
      %c0_10 = arith.constant 0 : index
      %c0_11 = arith.constant 0 : index
      %12 = vector.load %arg7[%c0_10, %c0_11] : memref<40x128xf32, #tpu.memory_space<vmem>>, vector<40x128xf32>
      %c0_12 = arith.constant 0 : index
      %c0_13 = arith.constant 0 : index
      %13 = vector.load %arg5[%c0_12, %c0_13] : memref<1x128xf32, #tpu.memory_space<vmem>>, vector<1x128xf32>
      %14 = vector.broadcast %13 : vector<1x128xf32> to vector<40x128xf32>
      %15 = arith.addf %12, %14 : vector<40x128xf32>
      %cst_14 = arith.constant 5.000000e-01 : f32
      %16 = vector.broadcast %cst_14 : f32 to vector<40x128xf32>
      %17 = arith.mulf %16, %15 : vector<40x128xf32>
      %cst_15 = arith.constant 4.471500e-02 : f32
      %18 = vector.broadcast %cst_15 : f32 to vector<40x128xf32>
      %19 = arith.mulf %18, %15 : vector<40x128xf32>
      %20 = arith.mulf %19, %15 : vector<40x128xf32>
      %21 = arith.mulf %20, %15 : vector<40x128xf32>
      %22 = arith.addf %15, %21 : vector<40x128xf32>
      %cst_16 = arith.constant 0.797884583 : f32
      %23 = vector.broadcast %cst_16 : f32 to vector<40x128xf32>
      %24 = arith.mulf %23, %22 : vector<40x128xf32>
      %25 = math.tanh %24 : vector<40x128xf32>
      %cst_17 = arith.constant 1.000000e+00 : f32
      %26 = vector.broadcast %cst_17 : f32 to vector<40x128xf32>
      %27 = arith.addf %26, %25 : vector<40x128xf32>
      %28 = arith.mulf %17, %27 : vector<40x128xf32>
      %c0_18 = arith.constant 0 : index
      %c0_19 = arith.constant 0 : index
      %29 = vector.load %arg6[%c0_18, %c0_19] : memref<40x128xf32, #tpu.memory_space<vmem>>, vector<40x128xf32>
      tpu.vector_store %arg6[%c0_18, %c0_19], %28 {strides = array<i32>} : memref<40x128xf32, #tpu.memory_space<vmem>>, vector<40x128xf32>,
    } else {
    }
    return
  }
  func.func @transform_0(%arg0: i32, %arg1: i32, %arg2: i32) -> (i32, i32) {
    %c0_i32 = arith.constant 0 : i32
    return %arg0, %arg2 : i32, i32
  }
  func.func @transform_1(%arg0: i32, %arg1: i32, %arg2: i32) -> (i32, i32) {
    %c0_i32 = arith.constant 0 : i32
    return %arg2, %arg1 : i32, i32
  }
  func.func @transform_2(%arg0: i32, %arg1: i32, %arg2: i32) -> (i32, i32) {
    %c0_i32 = arith.constant 0 : i32
    %c0_i32_0 = arith.constant 0 : i32
    return %c0_i32, %arg1 : i32, i32
  }
  func.func @transform_3(%arg0: i32, %arg1: i32, %arg2: i32) -> (i32, i32) {
    %c0_i32 = arith.constant 0 : i32
    return %arg0, %arg1 : i32, i32
  }
}

module attributes {stable_mosaic.version = 11 : i64} {
  func.func @kernel(%arg0: i32, %arg1: i32, %arg2: i32, %arg3: memref<8x128xf32, #tpu.memory_space<vmem>>, %arg4: memref<128x128xf32, #tpu.memory_space<vmem>>, %arg5: memref<1x128xf32, #tpu.memory_space<vmem>>, %arg6: memref<8x128xf32, #tpu.memory_space<vmem>>, %arg7: memref<8x128xf32, #tpu.memory_space<vmem>>) attributes {dimension_semantics = [#tpu.dimension_semantics<parallel>, #tpu.dimension_semantics<parallel>, #tpu.dimension_semantics<arbitrary>], iteration_bounds = array<i64: 1, 1, 1>, scalar_prefetch = 0 : i64, scratch_operands = 1 : i64, tpu.core_type = #tpu.core_type<tc>, window_params = [{transform_indices = @transform_0, window_bounds = array<i64: 8, 128>}, {transform_indices = @transform_1, window_bounds = array<i64: 128, 128>}, {transform_indices = @transform_2, window_bounds = array<i64: 1, 128>}, {transform_indices = @transform_3, window_bounds = array<i64: 8, 128>}]} {
    %c0_i32 = arith.constant 0 : i32
    %0 = arith.cmpi eq, %arg2, %c0_i32 : i32
    %1 = arith.extui %0 : i1 to i32
    %c0_i32_0 = arith.constant 0 : i32
    %2 = arith.cmpi ne, %1, %c0_i32_0 : i32
    scf.if %2 {
      %cst_10 = arith.constant 0.000000e+00 : f32
      %12 = vector.broadcast %cst_10 : f32 to vector<8x128xf32>
      %c0_11 = arith.constant 0 : index
      %c0_12 = arith.constant 0 : index
      %13 = vector.load %arg7[%c0_11, %c0_12] : memref<8x128xf32, #tpu.memory_space<vmem>>, vector<8x128xf32>
      tpu.vector_store %arg7[%c0_11, %c0_12], %12 {strides = array<i32>} : memref<8x128xf32, #tpu.memory_space<vmem>>, vector<8x128xf32>,
    } else {
    }
    %c0 = arith.constant 0 : index
    %c0_1 = arith.constant 0 : index
    %3 = vector.load %arg7[%c0, %c0_1] : memref<8x128xf32, #tpu.memory_space<vmem>>, vector<8x128xf32>
    %c0_2 = arith.constant 0 : index
    %c0_3 = arith.constant 0 : index
    %4 = vector.load %arg3[%c0_2, %c0_3] : memref<8x128xf32, #tpu.memory_space<vmem>>, vector<8x128xf32>
    %c0_4 = arith.constant 0 : index
    %c0_5 = arith.constant 0 : index
    %5 = vector.load %arg4[%c0_4, %c0_5] : memref<128x128xf32, #tpu.memory_space<vmem>>, vector<128x128xf32>
    %cst = arith.constant dense<0.000000e+00> : vector<8x128xf32>
    %6 = tpu.matmul %4, %5, %cst {dimension_numbers = #tpu.dot_dimension_numbers<[1], [0], [0], [1], [0, 0, 1, 1], [], []>, precision = #tpu.contract_precision<fp32>} : vector<8x128xf32>, vector<128x128xf32>, vector<8x128xf32> -> vector<8x128xf32>
    %7 = arith.addf %3, %6 : vector<8x128xf32>
    %c0_6 = arith.constant 0 : index
    %c0_7 = arith.constant 0 : index
    %8 = vector.load %arg7[%c0_6, %c0_7] : memref<8x128xf32, #tpu.memory_space<vmem>>, vector<8x128xf32>
    tpu.vector_store %arg7[%c0_6, %c0_7], %7 {strides = array<i32>} : memref<8x128xf32, #tpu.memory_space<vmem>>, vector<8x128xf32>,
    %c0_i32_8 = arith.constant 0 : i32
    %9 = arith.cmpi eq, %arg2, %c0_i32_8 : i32
    %10 = arith.extui %9 : i1 to i32
    %c0_i32_9 = arith.constant 0 : i32
    %11 = arith.cmpi ne, %10, %c0_i32_9 : i32
    scf.if %11 {
      %c0_10 = arith.constant 0 : index
      %c0_11 = arith.constant 0 : index
      %12 = vector.load %arg7[%c0_10, %c0_11] : memref<8x128xf32, #tpu.memory_space<vmem>>, vector<8x128xf32>
      %c0_12 = arith.constant 0 : index
      %c0_13 = arith.constant 0 : index
      %13 = vector.load %arg5[%c0_12, %c0_13] : memref<1x128xf32, #tpu.memory_space<vmem>>, vector<1x128xf32>
      %14 = vector.broadcast %13 : vector<1x128xf32> to vector<8x128xf32>
      %15 = arith.addf %12, %14 : vector<8x128xf32>
      %c0_14 = arith.constant 0 : index
      %c0_15 = arith.constant 0 : index
      %16 = vector.load %arg6[%c0_14, %c0_15] : memref<8x128xf32, #tpu.memory_space<vmem>>, vector<8x128xf32>
      tpu.vector_store %arg6[%c0_14, %c0_15], %15 {strides = array<i32>} : memref<8x128xf32, #tpu.memory_space<vmem>>, vector<8x128xf32>,
    } else {
    }
    return
  }
  func.func @transform_0(%arg0: i32, %arg1: i32, %arg2: i32) -> (i32, i32) {
    %c0_i32 = arith.constant 0 : i32
    return %arg0, %arg2 : i32, i32
  }
  func.func @transform_1(%arg0: i32, %arg1: i32, %arg2: i32) -> (i32, i32) {
    %c0_i32 = arith.constant 0 : i32
    return %arg2, %arg1 : i32, i32
  }
  func.func @transform_2(%arg0: i32, %arg1: i32, %arg2: i32) -> (i32, i32) {
    %c0_i32 = arith.constant 0 : i32
    %c0_i32_0 = arith.constant 0 : i32
    return %c0_i32, %arg1 : i32, i32
  }
  func.func @transform_3(%arg0: i32, %arg1: i32, %arg2: i32) -> (i32, i32) {
    %c0_i32 = arith.constant 0 : i32
    return %arg0, %arg1 : i32, i32
  }
}

</mosaic_0001>

<bundles_post_ra>
// kernel: vit_forward.16
= control target key start
LH: loop header
LB: loop body
LE: loop exit
PB: predicated region body
PF: predicated region fallthrough
CT: control target
= control target key end

     0   :  { %vm19_vm0 = vcmask 261120   ;;  %s202_s0 = inlined_call_operand.vmem [shape: f32[40,32], index: 0, kind: input, shape index: {}]   ;;  %s203_s1 = inlined_call_operand.vmem [shape: f32[1,32], index: 1, kind: input, shape index: {}]   ;;  %s204_s2 = inlined_call_operand.vmem [shape: f32[1,32], index: 2, kind: input, shape index: {}]   ;;  %s205_s3 = inlined_call_operand.vmem [shape: f32[40,32], index: 3, kind: output, shape index: {}]  }
   0x1   :  { %v14_v0 = vld [vmem:[%s202_s0] sm:$0xff]  ;;  %v16_v1 = vld [vmem:[%s202_s0 + $0x10] sm:$0xff]  ;;  %v15_v2 = vld [vmem:[%s202_s0 + $0x8] sm:$0xff] }
   0x2   :  { %v20_v3 = vsel %vm19_vm0, %v14_v0, 0.0  ;;  %v26_v4 = vsel %vm19_vm0, %v16_v1, 0.0  ;;  %v17_v5 = vld [vmem:[%s202_s0 + $0x18] sm:$0xff]  ;;  %v23_v6 = vsel %vm19_vm0, %v15_v2, 0.0  ;;  %v18_v8 = vld [vmem:[%s202_s0 + $0x20] sm:$0xff] }
   0x3   :  { %21 = vadd.xlane.f32.xlu0 %v20_v3  ;;  %27 = vadd.xlane.f32.xlu1 %v26_v4  ;;  %v29_v7 = vsel %vm19_vm0, %v17_v5, 0.0  ;;  %v32_v9 = vsel %vm19_vm0, %v18_v8, 0.0  ;;  %v119_v51 = vld [vmem:[%s203_s1] ss:$0 sm:$0xff] }
   0x4   :  { %v120_v53 = vld [vmem:[%s204_s2] ss:$0 sm:$0xff] }
   0x7   :  { %24 = vadd.xlane.f32.xlu0 %v23_v6  ;;  %30 = vadd.xlane.f32.xlu1 %v29_v7 }
   0xb   :  { %33 = vadd.xlane.f32.xlu0 %v32_v9 }
  0x90   :  { %v22_v10 = vpop.xlane.xlu0 %21  ;;  %v28_v11 = vpop.xlane.xlu1 %27 }
  0x91   :  { %v36_v12 = vmul.f32 0.03125, %v22_v10  ;;  %v38_v13 = vmul.f32 0.03125, %v28_v11 }
  0x93   :  { %v41_v14 = vsub.f32 %v14_v0, %v36_v12  ;;  %v43_v15 = vsub.f32 %v16_v1, %v38_v13 }
  0x94   :  { %v25_v16 = vpop.xlane.xlu0 %24  ;;  %v31_v17 = vpop.xlane.xlu1 %30 }
  0x95   :  { %v37_v18 = vmul.f32 0.03125, %v25_v16  ;;  %v39_v19 = vmul.f32 0.03125, %v31_v17  ;;  %v46_v20 = vmul.f32 %v41_v14, %v41_v14  ;;  %v48_v21 = vmul.f32 %v43_v15, %v43_v15 }
  0x97   :  { %v42_v22 = vsub.f32 %v15_v2, %v37_v18  ;;  %v44_v23 = vsub.f32 %v17_v5, %v39_v19  ;;  %v51_v24 = vsel %vm19_vm0, %v46_v20, 0.0  ;;  %v57_v27 = vsel %vm19_vm0, %v48_v21, 0.0 }
  0x98   :  { %52 = vadd.xlane.f32.xlu1 %v51_v24  ;;  %v34_v25 = vpop.xlane.xlu0 %33 }
  0x99   :  { %v40_v26 = vmul.f32 0.03125, %v34_v25  ;;  %v47_v28 = vmul.f32 %v42_v22, %v42_v22  ;;  %v49_v29 = vmul.f32 %v44_v23, %v44_v23 }
  0x9b   :  { %v45_v30 = vsub.f32 %v18_v8, %v40_v26  ;;  %v54_v31 = vsel %vm19_vm0, %v47_v28, 0.0  ;;  %v60_v32 = vsel %vm19_vm0, %v49_v29, 0.0 }
  0x9c   :  { %58 = vadd.xlane.f32.xlu1 %v57_v27  ;;  %55 = vadd.xlane.f32.xlu0 %v54_v31 }
  0x9d   :  { %v50_v33 = vmul.f32 %v45_v30, %v45_v30 }
  0x9f   :  { %v63_v34 = vsel %vm19_vm0, %v50_v33, 0.0 }
  0xa0   :  { %61 = vadd.xlane.f32.xlu0 %v60_v32  ;;  %64 = vadd.xlane.f32.xlu1 %v63_v34 }
 0x125   :  { %v53_v35 = vpop.xlane.xlu1 %52 }
 0x126   :  { %v66_v36 = vmul.f32 0.03125, %v53_v35 }
 0x128   :  { %v71_v37 = vadd.f32 1e-05, %v66_v36 }
 0x129   :  { %v59_v38 = vpop.xlane.xlu1 %58  ;;  %v56_v39 = vpop.xlane.xlu0 %55 }
 0x12a   :  { %121 = vrsqrt.f32 %v71_v37  ;;  %v68_v40 = vmul.f32 0.03125, %v59_v38  ;;  %v67_v41 = vmul.f32 0.03125, %v56_v39 }
 0x12c   :  { %v73_v42 = vadd.f32 1e-05, %v68_v40  ;;  %v72_v43 = vadd.f32 1e-05, %v67_v41 }
 0x12d   :  { %v65_v44 = vpop.xlane.xlu1 %64  ;;  %v62_v45 = vpop.xlane.xlu0 %61 }
 0x12e   :  { %123 = vrsqrt.f32 %v73_v42  ;;  %v70_v46 = vmul.f32 0.03125, %v65_v44  ;;  %v69_v47 = vmul.f32 0.03125, %v62_v45 }
 0x12f   :  { %125 = vrsqrt.f32 %v72_v43 }
 0x130   :  { %v75_v48 = vadd.f32 1e-05, %v70_v46  ;;  %v74_v49 = vadd.f32 1e-05, %v69_v47 }
 0x132   :  { %127 = vrsqrt.f32 %v75_v48 }
 0x133   :  { %129 = vrsqrt.f32 %v74_v49 }
 0x134   :  { %v122_v50 = vpop.eup %121 }
 0x135   :  { %v81_v52 = vmul.f32 %v122_v50, %v41_v14 }
 0x137   :  { %v93_v54 = vmul.f32 %v119_v51, %v81_v52 }
 0x138   :  { %v124_v55 = vpop.eup %123 }
 0x139   :  { %v126_v56 = vpop.eup %125  ;;  %v105_v57 = vadd.f32 %v120_v53, %v93_v54  ;;  %v83_v58 = vmul.f32 %v124_v55, %v43_v15 }
 0x13a   :  { %v82_v59 = vmul.f32 %v126_v56, %v42_v22 }
 0x13b   :  { %110 = vst.msk [vmem:[%s205_s3] sm:$0xff] %vm19_vm0, %v105_v57  ;;  %v95_v60 = vmul.f32 %v119_v51, %v83_v58 }
 0x13c   :  { %v128_v61 = vpop.eup %127  ;;  %v94_v62 = vmul.f32 %v119_v51, %v82_v59 }
 0x13d   :  { %v130_v63 = vpop.eup %129  ;;  %v107_v0 = vadd.f32 %v120_v53, %v95_v60  ;;  %v85_v1 = vmul.f32 %v128_v61, %v45_v30 }
 0x13e   :  { %v106_v2 = vadd.f32 %v120_v53, %v94_v62  ;;  %v84_v3 = vmul.f32 %v130_v63, %v44_v23 }
 0x13f   :  { %112 = vst.msk [vmem:[%s205_s3 + $0x10] sm:$0xff] %vm19_vm0, %v107_v0  ;;  %v97_v4 = vmul.f32 %v119_v51, %v85_v1 }
 0x140   :  { %111 = vst.msk [vmem:[%s205_s3 + $0x8] sm:$0xff] %vm19_vm0, %v106_v2  ;;  %v96_v5 = vmul.f32 %v119_v51, %v84_v3 }
 0x141   :  { %v109_v6 = vadd.f32 %v120_v53, %v97_v4 }
 0x142   :  { %v108_v7 = vadd.f32 %v120_v53, %v96_v5 }
 0x143   :  { %114 = vst.msk [vmem:[%s205_s3 + $0x20] sm:$0xff] %vm19_vm0, %v109_v6 }
 0x144   :  { %113 = vst.msk [vmem:[%s205_s3 + $0x18] sm:$0xff] %vm19_vm0, %v108_v7 }

// kernel: vit_forward.17
= control target key start
LH: loop header
LB: loop body
LE: loop exit
PB: predicated region body
PF: predicated region fallthrough
CT: control target
= control target key end

     0   :  { %v1457_v0 = vmov 0.0|0.0   ;;  %vm1458_vm0 = vmmov 0   ;;  %v1459_v10 = vmov 0.0   ;;  %s1936_s1 = inlined_call_operand.vmem [shape: f32[128,128], index: 1, kind: input, shape index: {}]   ;;  %s1937_s0 = inlined_call_operand.vmem [shape: f32[40,128], index: 0, kind: input, shape index: {}]   ;;  %s1938_s2 = inlined_call_operand.vmem [shape: f32[1,128], index: 2, kind: input, shape index: {}]   ;;  %s1939_s3 = inlined_call_operand.vmem [shape: f32[40,128], index: 3, kind: output, shape index: {}]  }
   0x1   :  { %1310 = vmatprep.subr.bf16.mxu0 %v1457_v0  ;;  %v33_v1 = vld [vmem:[%s1936_s1] sm:$0xff]  ;;  %v34_v2 = vld [vmem:[%s1936_s1 + $0x8] sm:$0xff]  ;;  %v35_v3 = vld [vmem:[%s1936_s1 + $0x10] sm:$0xff]  ;;  %1334 = vmatprep.subr.bf16.mxu1 %v1457_v0 }
   0x2   :  { %v50_v4 = vand.u32 4294901760, %v33_v1  ;;  %v53_v5 = vand.u32 4294901760, %v34_v2  ;;  %v36_v6 = vld [vmem:[%s1936_s1 + $0x18] sm:$0xff]  ;;  %v56_v7 = vand.u32 4294901760, %v35_v3  ;;  %v37_v8 = vld [vmem:[%s1936_s1 + $0x20] sm:$0xff]  ;;  %v38_v9 = vld [vmem:[%s1936_s1 + $0x28] sm:$0xff]  ;;  %1060 = vmatprep.mubr.msk.f32.mxu0 %vm1458_vm0, %v1459_v10  ;;  %1107 = vmatprep.mubr.msk.f32.mxu1 %vm1458_vm0, %v1459_v10 }
   0x3   :  { %v59_v11 = vand.u32 4294901760, %v36_v6  ;;  %v62_v12 = vand.u32 4294901760, %v37_v8  ;;  %v65_v13 = vand.u32 4294901760, %v38_v9  ;;  %v39_v14 = vld [vmem:[%s1936_s1 + $0x30] sm:$0xff]  ;;  %v40_v19 = vld [vmem:[%s1936_s1 + $0x38] sm:$0xff]  ;;  %v41_v20 = vld [vmem:[%s1936_s1 + $0x40] sm:$0xff] }
   0x4   :  { %v1507_v15 = vpack.c.bf16 %v53_v5, %v50_v4  ;;  %v1509_v16 = vsub.f32 %v33_v1, %v50_v4  ;;  %v1511_v17 = vsub.f32 %v34_v2, %v53_v5  ;;  %v1513_v18 = vsub.f32 %v35_v3, %v56_v7  ;;  %v42_v27 = vld [vmem:[%s1936_s1 + $0x48] sm:$0xff]  ;;  %v43_v40 = vld [vmem:[%s1936_s1 + $0x50] sm:$0xff]  ;;  %v44_v41 = vld [vmem:[%s1936_s1 + $0x58] sm:$0xff] }
   0x5   :  { %v1521_v21 = vpack.c.bf16 %v59_v11, %v56_v7  ;;  %v1523_v22 = vsub.f32 %v36_v6, %v59_v11  ;;  %v1526_v23 = vsub.f32 %v37_v8, %v62_v12  ;;  %v68_v26 = vand.u32 4294901760, %v39_v14  ;;  %v1572_v50 = vld [vmem:[%s1936_s1 + $0x60] sm:$0xff]  ;;  %v46_v59 = vld [vmem:[%s1936_s1 + $0x68] sm:$0xff]  ;;  %v1595_v1 = vld [vmem:[%s1936_s1 + $0x70] sm:$0xff] }
   0x6   :  { %1312 = vmatpush3.bf16.msra.mxu0 %v1507_v15  ;;  %v183_v24 = vand.u32 4294901760, %v1509_v16  ;;  %v190_v25 = vand.u32 4294901760, %v1511_v17  ;;  %v71_v28 = vand.u32 4294901760, %v40_v19  ;;  %v197_v29 = vand.u32 4294901760, %v1513_v18  ;;  %v48_v6 = vld [vmem:[%s1936_s1 + $0x78] sm:$0xff] }
   0x7   :  { %1313 = vmatprep.subr.bf16.mxu0 %v1457_v0  ;;  %v204_v30 = vand.u32 4294901760, %v1523_v22  ;;  %v74_v31 = vand.u32 4294901760, %v41_v20  ;;  %v1536_v32 = vsub.f32 %v38_v9, %v65_v13  ;;  %v1544_v35 = vsub.f32 %v39_v14, %v68_v26 }
   0x8   :  { %v184_v33 = vsub.f32 %v1509_v16, %v183_v24  ;;  %v191_v34 = vsub.f32 %v1511_v17, %v190_v25  ;;  %v1546_v36 = vsub.f32 %v40_v19, %v71_v28  ;;  %v198_v37 = vsub.f32 %v1513_v18, %v197_v29 }
   0x9   :  { %v205_v38 = vsub.f32 %v1523_v22, %v204_v30  ;;  %v77_v39 = vand.u32 4294901760, %v42_v27  ;;  %v1561_v42 = vpack.c.bf16 %v65_v13, %v62_v12  ;;  %v1563_v45 = vpack.c.bf16 %v71_v28, %v68_v26 }
   0xa   :  { %1315 = vmatpush3.bf16.msra.mxu0 %v1521_v21  ;;  %v185_v43 = vand.u32 4294901760, %v184_v33  ;;  %v192_v44 = vand.u32 4294901760, %v191_v34  ;;  %v199_v46 = vand.u32 4294901760, %v198_v37  ;;  %v1566_v48 = vsub.f32 %v41_v20, %v74_v31 }
   0xb   :  { %1316 = vmatprep.subr.bf16.mxu0 %v1457_v0  ;;  %v206_v47 = vand.u32 4294901760, %v205_v38  ;;  %v211_v49 = vand.u32 4294901760, %v1526_v23  ;;  %v218_v52 = vand.u32 4294901760, %v1536_v32  ;;  %v80_v53 = vand.u32 4294901760, %v43_v40 }
   0xc   :  { %v1335_v51 = vpack.c.bf16 %v192_v44, %v185_v43  ;;  %v83_v54 = vand.u32 4294901760, %v44_v41  ;;  %v1575_v55 = vsub.f32 %v42_v27, %v77_v39  ;;  %v225_v57 = vand.u32 4294901760, %v1544_v35 }
   0xd   :  { %v212_v56 = vsub.f32 %v1526_v23, %v211_v49  ;;  %v232_v58 = vand.u32 4294901760, %v1546_v36  ;;  %v1338_v60 = vpack.c.bf16 %v206_v47, %v199_v46  ;;  %v1586_v61 = vpack.c.bf16 %v77_v39, %v74_v31  ;;  %v28_v31 = vld [vmem:[%s1937_s0] sm:$0xff] }
   0xe   :  { %1318 = vmatpush3.bf16.msra.mxu0 %v1561_v42  ;;  %1336 = vmatpush3.bf16.msra.mxu1 %v1335_v51  ;;  %v219_v62 = vsub.f32 %v1536_v32, %v218_v52  ;;  %v86_v63 = vand.u32 4294901760, %v1572_v50  ;;  %v1599_v3 = vsub.f32 %v43_v40, %v80_v53  ;;  %v226_v4 = vsub.f32 %v1544_v35, %v225_v57 }
   0xf   :  { %1319 = vmatprep.subr.bf16.mxu0 %v1457_v0  ;;  %1337 = vmatprep.subr.bf16.mxu1 %v1457_v0  ;;  %v213_v2 = vand.u32 4294901760, %v212_v56  ;;  %v233_v5 = vsub.f32 %v1546_v36, %v232_v58  ;;  %v1610_v8 = vsub.f32 %v44_v41, %v83_v54  ;;  %v89_v9 = vand.u32 4294901760, %v46_v59 }
  0x10   :  { %v220_v7 = vand.u32 4294901760, %v219_v62  ;;  %v239_v11 = vand.u32 4294901760, %v1566_v48  ;;  %v227_v12 = vand.u32 4294901760, %v226_v4  ;;  %v246_v14 = vand.u32 4294901760, %v1575_v55 }
  0x11   :  { %v234_v13 = vand.u32 4294901760, %v233_v5  ;;  %v92_v19 = vand.u32 4294901760, %v1595_v1  ;;  %v1617_v26 = vsub.f32 %v1572_v50, %v86_v63  ;;  %v1619_v27 = vsub.f32 %v46_v59, %v89_v9  ;;  %v30_v5 = vld [vmem:[%s1937_s0 + $0x10] sm:$0xff] }
  0x12   :  { %1321 = vmatpush3.bf16.msra.mxu0 %v1563_v45  ;;  %1339 = vmatpush3.bf16.msra.mxu1 %v1338_v60  ;;  %v1341_v20 = vpack.c.bf16 %v220_v7, %v213_v2  ;;  %v95_v28 = vand.u32 4294901760, %v48_v6  ;;  %v240_v33 = vsub.f32 %v1566_v48, %v239_v11  ;;  %v247_v34 = vsub.f32 %v1575_v55, %v246_v14  ;;  %v29_v60 = vld [vmem:[%s1937_s0 + $0x8] sm:$0xff] }
  0x13   :  { %1322 = vmatprep.subr.bf16.mxu0 %v1457_v0  ;;  %1340 = vmatprep.subr.bf16.mxu1 %v1457_v0  ;;  %v253_v37 = vand.u32 4294901760, %v1599_v3  ;;  %v1633_v38 = vpack.c.bf16 %v83_v54, %v80_v53  ;;  %v1344_v39 = vpack.c.bf16 %v234_v13, %v227_v12  ;;  %v1636_v40 = vsub.f32 %v1595_v1, %v92_v19  ;;  %v31_v12 = vld [vmem:[%s1937_s0 + $0x18] sm:$0xff] }
  0x14   :  { %v1944_v41 = vand.u32 4294901760, %v1610_v8  ;;  %v241_v43 = vand.u32 4294901760, %v240_v33  ;;  %v1639_v44 = vsub.f32 %v48_v6, %v95_v28  ;;  %v1644_v47 = vand.u32 4294901760, %v28_v31 }
  0x15   :  { %v254_v46 = vsub.f32 %v1599_v3, %v253_v37  ;;  %v248_v50 = vand.u32 4294901760, %v247_v34  ;;  %v1943_v53 = vand.u32 4294901760, %v1617_v26  ;;  %v1942_v54 = vand.u32 4294901760, %v1619_v27 }
  0x16   :  { %1324 = vmatpush3.bf16.msra.mxu0 %v1586_v61  ;;  %1342 = vmatpush3.bf16.msra.mxu1 %v1341_v20  ;;  %v261_v51 = vsub.f32 %v1610_v8, %v1944_v41  ;;  %v1655_v56 = vsub.f32 %v28_v31, %v1644_v47  ;;  %v1657_v59 = vpack.c.bf16 %v89_v9, %v86_v63  ;;  %v1941_v4 = vand.u32 4294901760, %v1636_v40 }
  0x17   :  { %1325 = vmatprep.subr.bf16.mxu0 %v1457_v0  ;;  %1343 = vmatprep.subr.bf16.mxu1 %v1457_v0  ;;  %v255_v62 = vand.u32 4294901760, %v254_v46  ;;  %v1347_v6 = vpack.c.bf16 %v248_v50, %v241_v43  ;;  %v268_v63 = vsub.f32 %v1617_v26, %v1943_v53  ;;  %v275_v7 = vsub.f32 %v1619_v27, %v1942_v54 }
  0x18   :  { %v262_v1 = vand.u32 4294901760, %v261_v51  ;;  %v132_v2 = vand.u32 4294901760, %v1655_v56  ;;  %v1940_v9 = vand.u32 4294901760, %v1639_v44  ;;  %v1680_v13 = vand.u32 4294901760, %v29_v60 }
  0x19   :  { %v1682_v20 = vpack.c.bf16 %v95_v28, %v92_v19  ;;  %v1687_v33 = vand.u32 4294901760, %v30_v5  ;;  %v1695_v46 = vand.u32 4294901760, %v31_v12  ;;  %v269_v19 = vand.u32 4294901760, %v268_v63 }
  0x1a   :  { %1327 = vmatpush3.bf16.msra.mxu0 %v1633_v38  ;;  %1345 = vmatpush3.bf16.msra.mxu1 %v1344_v39  ;;  %v133_v31 = vsub.f32 %v1655_v56, %v132_v2  ;;  %v1350_v34 = vpack.c.bf16 %v262_v1, %v255_v62  ;;  %v282_v39 = vsub.f32 %v1636_v40, %v1941_v4  ;;  %v276_v28 = vand.u32 4294901760, %v275_v7  ;;  %v32_v62 = vld [vmem:[%s1937_s0 + $0x20] sm:$0xff] }
  0x1b   :  { %1328 = vmatprep.subr.bf16.mxu0 %v1457_v0  ;;  %1346 = vmatprep.subr.bf16.mxu1 %v1457_v0  ;;  %v1693_v43 = vsub.f32 %v29_v60, %v1680_v13  ;;  %v289_v50 = vsub.f32 %v1639_v44, %v1940_v9  ;;  %v1702_v51 = vsub.f32 %v30_v5, %v1687_v33  ;;  %v1717_v7 = vand.u32 4294901760, %v32_v62 }
  0x1c   :  { %v134_v1 = vand.u32 4294901760, %v133_v31  ;;  %v1715_v5 = vsub.f32 %v31_v12, %v1695_v46  ;;  %v1353_v9 = vpack.c.bf16 %v276_v28, %v269_v19  ;;  %v1359_v4 = vpack.c.bf16 %v1511_v17, %v1509_v16 }
  0x1d   :  { %v142_v60 = vand.u32 4294901760, %v1693_v43  ;;  %v152_v63 = vand.u32 4294901760, %v1702_v51  ;;  %v283_v54 = vand.u32 4294901760, %v282_v39  ;;  %v290_v31 = vand.u32 4294901760, %v289_v50 }
  0x1e   :  { %1330 = vmatpush3.bf16.msra.mxu0 %v1657_v59  ;;  %1348 = vmatpush3.bf16.msra.mxu1 %v1347_v6  ;;  %v162_v41 = vand.u32 4294901760, %v1715_v5  ;;  %v1362_v39 = vpack.c.bf16 %v1523_v22, %v1513_v18  ;;  %v1413_v16 = vpack.c.bf16 %v218_v52, %v211_v49  ;;  %v1416_v17 = vpack.c.bf16 %v232_v58, %v225_v57 }
  0x1f   :  { %1331 = vmatprep.subr.bf16.mxu0 %v1457_v0  ;;  %1349 = vmatprep.subr.bf16.mxu1 %v1457_v0  ;;  %v143_v6 = vsub.f32 %v1693_v43, %v142_v60  ;;  %v153_v12 = vsub.f32 %v1702_v51, %v152_v63  ;;  %v1356_v19 = vpack.c.bf16 %v290_v31, %v283_v54  ;;  %v1945_v18 = vand.u32 4294901760, %v1610_v8 }
  0x20   :  { %v163_v50 = vsub.f32 %v1715_v5, %v162_v41  ;;  %v1365_v54 = vpack.c.bf16 %v1536_v32, %v1526_v23  ;;  %v1374_v31 = vpack.c.bf16 %v1610_v8, %v1599_v3  ;;  %v1946_v22 = vand.u32 4294901760, %v1617_v26 }
  0x21   :  { %v144_v53 = vand.u32 4294901760, %v143_v6  ;;  %v154_v28 = vand.u32 4294901760, %v153_v12  ;;  %v1371_v6 = vpack.c.bf16 %v1575_v55, %v1566_v48  ;;  %v1377_v12 = vpack.c.bf16 %v1619_v27, %v1617_v26 }
  0x22   :  { %1333 = vmatpush3.bf16.msra.mxu0 %v1682_v20  ;;  %1351 = vmatpush3.bf16.msra.mxu1 %v1350_v34  ;;  %v1729_v34 = vsub.f32 %v32_v62, %v1717_v7  ;;  %v1368_v62 = vpack.c.bf16 %v1546_v36, %v1544_v35  ;;  %v1947_v23 = vand.u32 4294901760, %v1619_v27 }
  0x23   :  { %1352 = vmatprep.subr.bf16.mxu1 %v1457_v0  ;;  %1358 = vmatprep.subr.bf16.mxu0 %v1457_v0 }
  0x25   :  { %1061 = vmatmul.mubr.f32.vlgmr.msra.gmra.mrb[0].mxu0 %v134_v1 }
  0x26   :  { %1354 = vmatpush3.bf16.msra.mxu1 %v1353_v9  ;;  %1360 = vmatpush3.bf16.msra.mxu0 %v1359_v4  ;;  %v172_v9 = vand.u32 4294901760, %v1729_v34 }
  0x27   :  { %1355 = vmatprep.subr.bf16.mxu1 %v1457_v0  ;;  %1361 = vmatprep.subr.bf16.mxu0 %v1457_v0 }
  0x28   :  { %1063 = vmatprep.mubr.msk.f32.mxu0 %vm1458_vm0, %v1459_v10  ;;  %v173_v4 = vsub.f32 %v1729_v34, %v172_v9 }
  0x29   :  { %1064 = vmatmul.mubr.f32.gmra.mrb[2].mxu0 %v144_v53  ;;  %v164_v53 = vand.u32 4294901760, %v163_v50 }
  0x2a   :  { %1357 = vmatpush3.bf16.msra.mxu1 %v1356_v19  ;;  %1363 = vmatpush3.bf16.msra.mxu0 %v1362_v39  ;;  %v174_v1 = vand.u32 4294901760, %v173_v4  ;;  %v1380_v19 = vpack.c.bf16 %v1639_v44, %v1636_v40  ;;  %v1407_v39 = vpack.c.bf16 %v190_v25, %v183_v24  ;;  %v1425_v24 = vpack.c.bf16 %v1947_v23, %v1946_v22 }
  0x2b   :  { %1364 = vmatprep.subr.bf16.mxu0 %v1457_v0  ;;  %1382 = vmatprep.subr.bf16.mxu1 %v1457_v0  ;;  %v1948_v25 = vand.u32 4294901760, %v1636_v40 }
  0x2c   :  { %1066 = vmatprep.mubr.msk.f32.mxu0 %vm1458_vm0, %v1459_v10 }
  0x2d   :  { %1108 = vmatmul.mubr.f32.vlgmr.msra.gmra.mrb[0].mxu1 %v1644_v47  ;;  %1067 = vmatmul.mubr.f32.gmra.mrb[4].mxu0 %v154_v28  ;;  %v1410_v28 = vpack.c.bf16 %v204_v30, %v197_v29  ;;  %v1949_v29 = vand.u32 4294901760, %v1639_v44 }
  0x2e   :  { %1366 = vmatpush3.bf16.msra.mxu0 %v1365_v54  ;;  %1384 = vmatpush3.bf16.msra.mxu1 %v1507_v15 }
  0x2f   :  { %1367 = vmatprep.subr.bf16.mxu0 %v1457_v0  ;;  %1385 = vmatprep.subr.bf16.mxu1 %v1457_v0  ;;  %v1428_v30 = vpack.c.bf16 %v1949_v29, %v1948_v25 }
  0x30   :  { %1110 = vmatprep.mubr.msk.f32.mxu1 %vm1458_vm0, %v1459_v10  ;;  %1069 = vmatprep.mubr.msk.f32.mxu0 %vm1458_vm0, %v1459_v10 }
  0x31   :  { %1111 = vmatmul.mubr.f32.gmra.mrb[2].mxu1 %v1680_v13  ;;  %1070 = vmatmul.mubr.f32.gmra.mrb[6].mxu0 %v164_v53 }
  0x32   :  { %1369 = vmatpush3.bf16.msra.mxu0 %v1368_v62  ;;  %1387 = vmatpush3.bf16.msra.mxu1 %v1521_v21 }
  0x33   :  { %1370 = vmatprep.subr.bf16.mxu0 %v1457_v0  ;;  %1388 = vmatprep.subr.bf16.mxu1 %v1457_v0 }
  0x34   :  { %1113 = vmatprep.mubr.msk.f32.mxu1 %vm1458_vm0, %v1459_v10  ;;  %1072 = vmatprep.mubr.msk.f32.mxu0 %vm1458_vm0, %v1459_v10 }
  0x35   :  { %1114 = vmatmul.mubr.f32.gmra.mrb[4].mxu1 %v1687_v33  ;;  %1073 = vmatmul.mubr.f32.gmra.mrb[8].mxu0 %v174_v1 }
  0x36   :  { %1372 = vmatpush3.bf16.msra.mxu0 %v1371_v6  ;;  %1390 = vmatpush3.bf16.msra.mxu1 %v1561_v42 }
  0x37   :  { %1373 = vmatprep.subr.bf16.mxu0 %v1457_v0  ;;  %1391 = vmatprep.subr.bf16.mxu1 %v1457_v0 }
  0x38   :  { %1116 = vmatprep.mubr.msk.f32.mxu1 %vm1458_vm0, %v1459_v10  ;;  %1154 = vmatprep.mubr.msk.f32.mxu0 %vm1458_vm0, %v1459_v10 }
  0x39   :  { %1117 = vmatmul.mubr.f32.gmra.mrb[6].mxu1 %v1695_v46 }
  0x3a   :  { %1375 = vmatpush3.bf16.msra.mxu0 %v1374_v31  ;;  %1393 = vmatpush3.bf16.msra.mxu1 %v1563_v45 }
  0x3b   :  { %1376 = vmatprep.subr.bf16.mxu0 %v1457_v0  ;;  %1394 = vmatprep.subr.bf16.mxu1 %v1457_v0 }
  0x3c   :  { %1119 = vmatprep.mubr.msk.f32.mxu1 %vm1458_vm0, %v1459_v10 }
  0x3d   :  { %1120 = vmatmul.mubr.f32.gmra.mrb[8].mxu1 %v1717_v7 }
  0x3e   :  { %1378 = vmatpush3.bf16.msra.mxu0 %v1377_v12  ;;  %1396 = vmatpush3.bf16.msra.mxu1 %v1586_v61 }
  0x3f   :  { %1379 = vmatprep.subr.bf16.mxu0 %v1457_v0  ;;  %1397 = vmatprep.subr.bf16.mxu1 %v1457_v0 }
  0x40   :  { %1201 = vmatprep.mubr.msk.f32.mxu1 %vm1458_vm0, %v1459_v10 }
  0x42   :  { %1381 = vmatpush3.bf16.msra.mxu0 %v1380_v19  ;;  %1399 = vmatpush3.bf16.msra.mxu1 %v1633_v38 }
  0x43   :  { %1400 = vmatprep.subr.bf16.mxu1 %v1457_v0  ;;  %1406 = vmatprep.subr.bf16.mxu0 %v1457_v0 }
  0x45   :  { %1155 = vmatmul.mubr.f32.vlgmr.msra.gmra.mrb[10].mxu0 %v1655_v56 }
  0x46   :  { %1402 = vmatpush3.bf16.msra.mxu1 %v1657_v59  ;;  %1408 = vmatpush3.bf16.msra.mxu0 %v1407_v39 }
  0x47   :  { %1157 = vmatprep.mubr.msk.f32.mxu0 %vm1458_vm0, %v1459_v10  ;;  %1403 = vmatprep.subr.bf16.mxu1 %v1457_v0 }
  0x48   :  { %1409 = vmatprep.subr.bf16.mxu0 %v1457_v0 }
  0x49   :  { %1158 = vmatmul.mubr.f32.gmra.mrb[12].mxu0 %v1693_v43 }
  0x4a   :  { %1405 = vmatpush3.bf16.msra.mxu1 %v1682_v20  ;;  %1411 = vmatpush3.bf16.msra.mxu0 %v1410_v28 }
  0x4b   :  { %1160 = vmatprep.mubr.msk.f32.mxu0 %vm1458_vm0, %v1459_v10  ;;  %1412 = vmatprep.subr.bf16.mxu0 %v1457_v0 }
  0x4c   :  { %1430 = vmatprep.subr.bf16.mxu1 %v1457_v0 }
  0x4d   :  { %1161 = vmatmul.mubr.f32.gmra.mrb[14].mxu0 %v1702_v51  ;;  %1202 = vmatmul.mubr.f32.vlgmr.msra.gmra.mrb[10].mxu1 %v132_v2 }
  0x4e   :  { %1414 = vmatpush3.bf16.msra.mxu0 %v1413_v16  ;;  %1432 = vmatpush3.bf16.msra.mxu1 %v1507_v15  ;;  %v1419_v15 = vpack.c.bf16 %v246_v14, %v239_v11 }
  0x4f   :  { %1163 = vmatprep.mubr.msk.f32.mxu0 %vm1458_vm0, %v1459_v10  ;;  %1204 = vmatprep.mubr.msk.f32.mxu1 %vm1458_vm0, %v1459_v10 }
  0x50   :  { %1415 = vmatprep.subr.bf16.mxu0 %v1457_v0  ;;  %1433 = vmatprep.subr.bf16.mxu1 %v1457_v0 }
  0x51   :  { %1164 = vmatmul.mubr.f32.gmra.mrb[16].mxu0 %v1715_v5  ;;  %1205 = vmatmul.mubr.f32.gmra.mrb[12].mxu1 %v142_v60 }
  0x52   :  { %1417 = vmatpush3.bf16.msra.mxu0 %v1416_v17  ;;  %1435 = vmatpush3.bf16.msra.mxu1 %v1521_v21  ;;  %v1422_v21 = vpack.c.bf16 %v1945_v18, %v253_v37 }
  0x53   :  { %1166 = vmatprep.mubr.msk.f32.mxu0 %vm1458_vm0, %v1459_v10  ;;  %1207 = vmatprep.mubr.msk.f32.mxu1 %vm1458_vm0, %v1459_v10 }
  0x54   :  { %1418 = vmatprep.subr.bf16.mxu0 %v1457_v0  ;;  %1436 = vmatprep.subr.bf16.mxu1 %v1457_v0 }
  0x55   :  { %1167 = vmatmul.mubr.f32.gmra.mrb[18].mxu0 %v1729_v34  ;;  %1208 = vmatmul.mubr.f32.gmra.mrb[14].mxu1 %v152_v63 }
  0x56   :  { %1420 = vmatpush3.bf16.msra.mxu0 %v1419_v15  ;;  %1438 = vmatpush3.bf16.msra.mxu1 %v1561_v42 }
  0x57   :  { %1210 = vmatprep.mubr.msk.f32.mxu1 %vm1458_vm0, %v1459_v10  ;;  %1421 = vmatprep.subr.bf16.mxu0 %v1457_v0 }
  0x58   :  { %1439 = vmatprep.subr.bf16.mxu1 %v1457_v0  ;;  %1248 = vmatprep.mubr.msk.f32.mxu0 %vm1458_vm0, %v1459_v10 }
  0x59   :  { %1211 = vmatmul.mubr.f32.gmra.mrb[16].mxu1 %v162_v41 }
  0x5a   :  { %1423 = vmatpush3.bf16.msra.mxu0 %v1422_v21  ;;  %1441 = vmatpush3.bf16.msra.mxu1 %v1563_v45 }
  0x5b   :  { %1213 = vmatprep.mubr.msk.f32.mxu1 %vm1458_vm0, %v1459_v10  ;;  %1424 = vmatprep.subr.bf16.mxu0 %v1457_v0 }
  0x5c   :  { %1442 = vmatprep.subr.bf16.mxu1 %v1457_v0 }
  0x5d   :  { %1214 = vmatmul.mubr.f32.gmra.mrb[18].mxu1 %v172_v9 }
  0x5e   :  { %1426 = vmatpush3.bf16.msra.mxu0 %v1425_v24  ;;  %1444 = vmatpush3.bf16.msra.mxu1 %v1586_v61 }
  0x5f   :  { %1427 = vmatprep.subr.bf16.mxu0 %v1457_v0  ;;  %1445 = vmatprep.subr.bf16.mxu1 %v1457_v0 }
  0x60   :  { %1295 = vmatprep.mubr.msk.f32.mxu1 %vm1458_vm0, %v1459_v10 }
  0x62   :  { %1429 = vmatpush3.bf16.msra.mxu0 %v1428_v30  ;;  %1447 = vmatpush3.bf16.msra.mxu1 %v1633_v38  ;;  %v901_v30 = vld [vmem:[%s1938_s2] ss:$0 sm:$0xff] }
  0x63   :  { %1448 = vmatprep.subr.bf16.mxu1 %v1457_v0 }
  0x65   :  { %1249 = vmatmul.mubr.f32.vlgmr.msra.gmra.mrb[20].mxu0 %v1644_v47 }
  0x66   :  { %1450 = vmatpush3.bf16.msra.mxu1 %v1657_v59  ;;  %1251 = vmatprep.mubr.msk.f32.mxu0 %vm1458_vm0, %v1459_v10 }
  0x67   :  { %1451 = vmatprep.subr.bf16.mxu1 %v1457_v0 }
  0x69   :  { %1252 = vmatmul.mubr.f32.gmra.mrb[22].mxu0 %v1680_v13 }
  0x6a   :  { %1453 = vmatpush3.bf16.msra.mxu1 %v1682_v20  ;;  %1254 = vmatprep.mubr.msk.f32.mxu0 %vm1458_vm0, %v1459_v10 }
  0x6d   :  { %1255 = vmatmul.mubr.f32.gmra.mrb[24].mxu0 %v1687_v33  ;;  %1296 = vmatmul.mubr.f32.vlgmr.msra.gmra.mrb[20].mxu1 %v1644_v47 }
  0x6e   :  { %1257 = vmatprep.mubr.msk.f32.mxu0 %vm1458_vm0, %v1459_v10  ;;  %1298 = vmatprep.mubr.msk.f32.mxu1 %vm1458_vm0, %v1459_v10 }
  0x71   :  { %1258 = vmatmul.mubr.f32.gmra.mrb[26].mxu0 %v1695_v46  ;;  %1299 = vmatmul.mubr.f32.gmra.mrb[22].mxu1 %v1680_v13 }
  0x72   :  { %1260 = vmatprep.mubr.msk.f32.mxu0 %vm1458_vm0, %v1459_v10  ;;  %1301 = vmatprep.mubr.msk.f32.mxu1 %vm1458_vm0, %v1459_v10 }
  0x75   :  { %1261 = vmatmul.mubr.f32.gmra.mrb[28].mxu0 %v1717_v7  ;;  %1302 = vmatmul.mubr.f32.gmra.mrb[24].mxu1 %v1687_v33 }
  0x76   :  { %1304 = vmatprep.mubr.msk.f32.mxu1 %vm1458_vm0, %v1459_v10 }
  0x79   :  { %1305 = vmatmul.mubr.f32.gmra.mrb[26].mxu1 %v1695_v46 }
  0x7a   :  { %1307 = vmatprep.mubr.msk.f32.mxu1 %vm1458_vm0, %v1459_v10 }
  0x7d   :  { %1308 = vmatmul.mubr.f32.gmra.mrb[28].mxu1 %v1717_v7 }
  0xf8   :  { %v136_v0 = vpop.f32.mrb[0].mxu0 }
  0xf9   :  { %v1062_v32 = vpop.f32.mrb[1].mxu0 }
  0xfc   :  { %v146_v35 = vpop.f32.mrb[2].mxu0 }
  0xfd   :  { %v1065_v36 = vpop.f32.mrb[3].mxu0 }
 0x100   :  { %v327_v42 = vpop.f32.mrb[0].mxu1  ;;  %v156_v45 = vpop.f32.mrb[4].mxu0 }
 0x101   :  { %v328_v48 = vadd.f32 %v327_v42, %v136_v0  ;;  %v1109_v49 = vpop.f32.mrb[1].mxu1  ;;  %v1068_v52 = vpop.f32.mrb[5].mxu0 }
 0x104   :  { %v333_v55 = vpop.f32.mrb[2].mxu1  ;;  %v166_v57 = vpop.f32.mrb[6].mxu0 }
 0x105   :  { %v334_v58 = vadd.f32 %v333_v55, %v146_v35  ;;  %v1112_v61 = vpop.f32.mrb[3].mxu1  ;;  %v1071_v3 = vpop.f32.mrb[7].mxu0 }
 0x108   :  { %v339_v8 = vpop.f32.mrb[4].mxu1  ;;  %v176_v11 = vpop.f32.mrb[8].mxu0 }
 0x109   :  { %v340_v14 = vadd.f32 %v339_v8, %v156_v45  ;;  %v1115_v10 = vpop.f32.mrb[5].mxu1  ;;  %v1074_v26 = vpop.f32.mrb[9].mxu0 }
 0x10c   :  { %v345_v27 = vpop.f32.mrb[6].mxu1 }
 0x10d   :  { %v346_v37 = vadd.f32 %v345_v27, %v166_v57  ;;  %v1118_v38 = vpop.f32.mrb[7].mxu1 }
 0x110   :  { %v351_v40 = vpop.f32.mrb[8].mxu1 }
 0x111   :  { %v352_v41 = vadd.f32 %v351_v40, %v176_v11  ;;  %v1121_v44 = vpop.f32.mrb[9].mxu1 }
 0x118   :  { %v455_v47 = vpop.f32.mrb[10].mxu0 }
 0x119   :  { %v456_v56 = vadd.f32 %v455_v47, %v328_v48  ;;  %v1156_v59 = vpop.f32.mrb[11].mxu0 }
 0x11c   :  { %v462_v2 = vpop.f32.mrb[12].mxu0 }
 0x11d   :  { %v463_v13 = vadd.f32 %v462_v2, %v334_v58  ;;  %v1159_v20 = vpop.f32.mrb[13].mxu0 }
 0x120   :  { %v469_v33 = vpop.f32.mrb[14].mxu0  ;;  %v572_v43 = vpop.f32.mrb[10].mxu1 }
 0x121   :  { %v470_v46 = vadd.f32 %v469_v33, %v340_v14  ;;  %v573_v51 = vadd.f32 %v572_v43, %v456_v56  ;;  %v1203_v60 = vpop.f32.mrb[11].mxu1  ;;  %v1162_v63 = vpop.f32.mrb[15].mxu0 }
 0x124   :  { %v476_v5 = vpop.f32.mrb[16].mxu0  ;;  %v580_v7 = vpop.f32.mrb[12].mxu1 }
 0x125   :  { %v477_v34 = vadd.f32 %v476_v5, %v346_v37  ;;  %v581_v50 = vadd.f32 %v580_v7, %v463_v13  ;;  %v1165_v9 = vpop.f32.mrb[17].mxu0  ;;  %v1206_v54 = vpop.f32.mrb[13].mxu1 }
 0x128   :  { %v483_v53 = vpop.f32.mrb[18].mxu0  ;;  %v588_v4 = vpop.f32.mrb[14].mxu1 }
 0x129   :  { %v484_v62 = vadd.f32 %v483_v53, %v352_v41  ;;  %v589_v1 = vadd.f32 %v588_v4, %v470_v46  ;;  %v1209_v6 = vpop.f32.mrb[15].mxu1  ;;  %v1168_v31 = vpop.f32.mrb[19].mxu0 }
 0x12c   :  { %v596_v12 = vpop.f32.mrb[16].mxu1 }
 0x12d   :  { %v597_v19 = vadd.f32 %v596_v12, %v477_v34  ;;  %v1212_v39 = vpop.f32.mrb[17].mxu1 }
 0x130   :  { %v604_v28 = vpop.f32.mrb[18].mxu1 }
 0x131   :  { %v605_v16 = vadd.f32 %v604_v28, %v484_v62  ;;  %v1215_v17 = vpop.f32.mrb[19].mxu1 }
 0x138   :  { %v723_v15 = vpop.f32.mrb[20].mxu0 }
 0x139   :  { %v724_v18 = vadd.f32 %v723_v15, %v573_v51  ;;  %v1250_v21 = vpop.f32.mrb[21].mxu0 }
 0x13c   :  { %v729_v22 = vpop.f32.mrb[22].mxu0 }
 0x13d   :  { %v730_v23 = vadd.f32 %v729_v22, %v581_v50  ;;  %v1253_v24 = vpop.f32.mrb[23].mxu0 }
 0x140   :  { %v735_v25 = vpop.f32.mrb[24].mxu0  ;;  %v834_v29 = vpop.f32.mrb[20].mxu1 }
 0x141   :  { %v736_v0 = vadd.f32 %v735_v25, %v589_v1  ;;  %v835_v32 = vadd.f32 %v834_v29, %v724_v18  ;;  %v1297_v35 = vpop.f32.mrb[21].mxu1  ;;  %v1256_v36 = vpop.f32.mrb[25].mxu0 }
 0x143   :  { %v887_v42 = vadd.f32 %v901_v30, %v835_v32 }
 0x144   :  { %v741_v45 = vpop.f32.mrb[26].mxu0  ;;  %v840_v48 = vpop.f32.mrb[22].mxu1 }
 0x145   :  { %892 = vst [vmem:[%s1939_s3] sm:$0xff] %v887_v42  ;;  %v742_v49 = vadd.f32 %v741_v45, %v597_v19  ;;  %v841_v52 = vadd.f32 %v840_v48, %v730_v23  ;;  %v1300_v55 = vpop.f32.mrb[23].mxu1  ;;  %v1259_v57 = vpop.f32.mrb[27].mxu0 }
 0x147   :  { %v888_v58 = vadd.f32 %v901_v30, %v841_v52 }
 0x148   :  { %v747_v61 = vpop.f32.mrb[28].mxu0  ;;  %v846_v3 = vpop.f32.mrb[24].mxu1 }
 0x149   :  { %893 = vst [vmem:[%s1939_s3 + $0x8] sm:$0xff] %v888_v58  ;;  %v748_v8 = vadd.f32 %v747_v61, %v605_v16  ;;  %v847_v11 = vadd.f32 %v846_v3, %v736_v0  ;;  %v1303_v14 = vpop.f32.mrb[25].mxu1  ;;  %v1262_v10 = vpop.f32.mrb[29].mxu0 }
 0x14b   :  { %v889_v26 = vadd.f32 %v901_v30, %v847_v11 }
 0x14c   :  { %v852_v27 = vpop.f32.mrb[26].mxu1 }
 0x14d   :  { %894 = vst [vmem:[%s1939_s3 + $0x10] sm:$0xff] %v889_v26  ;;  %v853_v37 = vadd.f32 %v852_v27, %v742_v49  ;;  %v1306_v38 = vpop.f32.mrb[27].mxu1 }
 0x14f   :  { %v890_v40 = vadd.f32 %v901_v30, %v853_v37 }
 0x150   :  { %v858_v41 = vpop.f32.mrb[28].mxu1 }
 0x151   :  { %895 = vst [vmem:[%s1939_s3 + $0x18] sm:$0xff] %v890_v40  ;;  %v859_v44 = vadd.f32 %v858_v41, %v748_v8  ;;  %v1309_v47 = vpop.f32.mrb[29].mxu1 }
 0x153   :  { %v891_v56 = vadd.f32 %v901_v30, %v859_v44 }
 0x155   :  { %896 = vst [vmem:[%s1939_s3 + $0x20] sm:$0xff] %v891_v56 }

// kernel: vit_forward.15
= control target key start
LH: loop header
LB: loop body
LE: loop exit
PB: predicated region body
PF: predicated region fallthrough
CT: control target
= control target key end

     0   :  { %s1790_s1 = inlined_call_operand.vmem [shape: f32[128,128], index: 1, kind: input, shape index: {}]   ;;  %s1791_s0 = inlined_call_operand.vmem [shape: f32[32,128], index: 0, kind: input, shape index: {}]   ;;  %s1792_s2 = inlined_call_operand.vmem [shape: f32[1,128], index: 2, kind: input, shape index: {}]   ;;  %s1793_s3 = inlined_call_operand.vmem [shape: f32[32,128], index: 3, kind: output, shape index: {}]  }
   0x1   :  { %v30_v0 = vld [vmem:[%s1790_s1] sm:$0xff]  ;;  %v31_v1 = vld [vmem:[%s1790_s1 + $0x8] sm:$0xff]  ;;  %v32_v2 = vld [vmem:[%s1790_s1 + $0x10] sm:$0xff] }
   0x2   :  { %v47_v3 = vand.u32 4294901760, %v30_v0  ;;  %v50_v4 = vand.u32 4294901760, %v31_v1  ;;  %v33_v5 = vld [vmem:[%s1790_s1 + $0x18] sm:$0xff]  ;;  %v53_v6 = vand.u32 4294901760, %v32_v2  ;;  %v1446_v7 = vld [vmem:[%s1790_s1 + $0x20] sm:$0xff]  ;;  %v1451_v8 = vld [vmem:[%s1790_s1 + $0x28] sm:$0xff] }
   0x3   :  { %v56_v9 = vand.u32 4294901760, %v33_v5  ;;  %v59_v11 = vand.u32 4294901760, %v1446_v7  ;;  %v62_v12 = vand.u32 4294901760, %v1451_v8  ;;  %v1462_v14 = vld [vmem:[%s1790_s1 + $0x30] sm:$0xff]  ;;  %v1467_v15 = vld [vmem:[%s1790_s1 + $0x38] sm:$0xff]  ;;  %v26_v16 = vld [vmem:[%s1791_s0] sm:$0xff] }
   0x4   :  { %v1453_v10 = vpack.c.bf16 %v50_v4, %v47_v3  ;;  %v1476_v17 = vand.u32 4294901760, %v26_v16  ;;  %v65_v19 = vand.u32 4294901760, %v1462_v14  ;;  %v68_v20 = vand.u32 4294901760, %v1467_v15  ;;  %v1491_v21 = vld [vmem:[%s1790_s1 + $0x40] sm:$0xff]  ;;  %v1496_v22 = vld [vmem:[%s1790_s1 + $0x48] sm:$0xff]  ;;  %v1517_v28 = vld [vmem:[%s1790_s1 + $0x50] sm:$0xff] }
   0x5   :  { %v1457_v13 = vpack.c.bf16 %v56_v9, %v53_v6  ;;  %v1484_v18 = vpack.c.bf16 %v62_v12, %v59_v11  ;;  %v71_v26 = vand.u32 4294901760, %v1491_v21  ;;  %v74_v27 = vand.u32 4294901760, %v1496_v22  ;;  %v1522_v29 = vld [vmem:[%s1790_s1 + $0x58] sm:$0xff]  ;;  %v27_v33 = vld [vmem:[%s1791_s0 + $0x8] sm:$0xff]  ;;  %v1543_v36 = vld [vmem:[%s1790_s1 + $0x60] sm:$0xff] }
   0x6   :  { %1200 = vmatprep.subr.bf16.mxu1 %v1453_v10  ;;  %1296 = vmatprep.subr.bf16.mxu0 %v1453_v10  ;;  %v1499_v23 = vsub.f32 %v26_v16, %v1476_v17  ;;  %v1510_v25 = vpack.c.bf16 %v68_v20, %v65_v19  ;;  %v77_v31 = vand.u32 4294901760, %v1517_v28  ;;  %v80_v35 = vand.u32 4294901760, %v1522_v29  ;;  %v1548_v37 = vld [vmem:[%s1790_s1 + $0x68] sm:$0xff]  ;;  %v1557_v40 = vld [vmem:[%s1790_s1 + $0x70] sm:$0xff]  ;;  %v1572_v46 = vld [vmem:[%s1790_s1 + $0x78] sm:$0xff] }
   0x7   :  { %1202 = vmatpush3.bf16.msra.mxu1 %v1453_v10  ;;  %1298 = vmatpush3.bf16.msra.mxu0 %v1453_v10  ;;  %v1537_v34 = vpack.c.bf16 %v74_v27, %v71_v26  ;;  %v1550_v38 = vsub.f32 %v30_v0, %v47_v3  ;;  %v1552_v39 = vsub.f32 %v31_v1, %v50_v4  ;;  %v1559_v41 = vand.u32 4294901760, %v27_v33  ;;  %v28_v55 = vld [vmem:[%s1791_s0 + $0x10] sm:$0xff]  ;;  %v29_v62 = vld [vmem:[%s1791_s0 + $0x18] sm:$0xff] }
   0x8   :  { %1204 = vmatprep.subr.bf16.mxu1 %v1457_v13  ;;  %1300 = vmatprep.subr.bf16.mxu0 %v1457_v13  ;;  %v129_v24 = vand.u32 4294901760, %v1499_v23  ;;  %v1561_v42 = vsub.f32 %v32_v2, %v53_v6  ;;  %v1563_v43 = vsub.f32 %v33_v5, %v56_v9  ;;  %v83_v44 = vand.u32 4294901760, %v1543_v36 }
   0x9   :  { %v86_v45 = vand.u32 4294901760, %v1548_v37  ;;  %v1580_v47 = vpack.c.bf16 %v80_v35, %v77_v31  ;;  %v170_v48 = vand.u32 4294901760, %v1550_v38  ;;  %v177_v49 = vand.u32 4294901760, %v1552_v39 }
   0xa   :  { %v130_v30 = vsub.f32 %v1499_v23, %v129_v24  ;;  %1117 = vmatprep.mubr.f32.mxu0 %v129_v24  ;;  %v1795_v50 = vand.u32 4294901760, %v1557_v40  ;;  %v1794_v51 = vand.u32 4294901760, %v1572_v46  ;;  %v1587_v52 = vsub.f32 %v27_v33, %v1559_v41 }
   0xb   :  { %1206 = vmatpush3.bf16.msra.mxu1 %v1457_v13  ;;  %1302 = vmatpush3.bf16.msra.mxu0 %v1457_v13  ;;  %v184_v53 = vand.u32 4294901760, %v1561_v42  ;;  %v191_v54 = vand.u32 4294901760, %v1563_v43  ;;  %v1600_v56 = vpack.c.bf16 %v86_v45, %v83_v44  ;;  %v1605_v57 = vsub.f32 %v1446_v7, %v59_v11 }
   0xc   :  { %1208 = vmatprep.subr.bf16.mxu1 %v1484_v18  ;;  %1304 = vmatprep.subr.bf16.mxu0 %v1484_v18  ;;  %v131_v32 = vand.u32 4294901760, %v130_v30  ;;  %v171_v58 = vsub.f32 %v1550_v38, %v170_v48  ;;  %v178_v59 = vsub.f32 %v1552_v39, %v177_v49  ;;  %v1614_v60 = vsub.f32 %v1451_v8, %v62_v12 }
   0xd   :  { %v1616_v61 = vand.u32 4294901760, %v28_v55  ;;  %v1625_v63 = vpack.c.bf16 %v1794_v51, %v1795_v50  ;;  %v139_v0 = vand.u32 4294901760, %v1587_v52  ;;  %v185_v1 = vsub.f32 %v1561_v42, %v184_v53 }
   0xe   :  { %1003 = vmatprep.mubr.f32.mxu1 %v131_v32  ;;  %v192_v2 = vsub.f32 %v1563_v43, %v191_v54  ;;  %v198_v3 = vand.u32 4294901760, %v1605_v57  ;;  %v1636_v4 = vsub.f32 %v1462_v14, %v65_v19  ;;  %v1641_v5 = vsub.f32 %v1467_v15, %v68_v20 }
   0xf   :  { %1210 = vmatpush3.bf16.msra.mxu1 %v1484_v18  ;;  %1306 = vmatpush3.bf16.msra.mxu0 %v1484_v18  ;;  %v1644_v6 = vsub.f32 %v28_v55, %v1616_v61  ;;  %v172_v7 = vand.u32 4294901760, %v171_v58  ;;  %v179_v8 = vand.u32 4294901760, %v178_v59  ;;  %v205_v9 = vand.u32 4294901760, %v1614_v60 }
  0x10   :  { %1212 = vmatprep.subr.bf16.mxu1 %v1510_v25  ;;  %1308 = vmatprep.subr.bf16.mxu0 %v1510_v25  ;;  %v1649_v11 = vand.u32 4294901760, %v29_v62  ;;  %v1327_v12 = vpack.c.bf16 %v177_v49, %v170_v48  ;;  %v140_v16 = vsub.f32 %v1587_v52, %v139_v0  ;;  %v186_v15 = vand.u32 4294901760, %v185_v1 }
  0x11   :  { %v149_v14 = vand.u32 4294901760, %v1644_v6  ;;  %v1656_v19 = vsub.f32 %v1491_v21, %v71_v26  ;;  %v193_v24 = vand.u32 4294901760, %v192_v2  ;;  %v199_v30 = vsub.f32 %v1605_v57, %v198_v3 }
  0x12   :  { %v1659_v20 = vsub.f32 %v29_v62, %v1649_v11  ;;  %v212_v32 = vand.u32 4294901760, %v1636_v4  ;;  %v219_v33 = vand.u32 4294901760, %v1641_v5  ;;  %v1231_v21 = vpack.c.bf16 %v179_v8, %v172_v7 }
  0x13   :  { %1214 = vmatpush3.bf16.msra.mxu1 %v1510_v25  ;;  %1310 = vmatpush3.bf16.msra.mxu0 %v1510_v25  ;;  %v206_v26 = vsub.f32 %v1614_v60, %v205_v9  ;;  %v1672_v48 = vsub.f32 %v1496_v22, %v74_v27  ;;  %v1331_v55 = vpack.c.bf16 %v191_v54, %v184_v53  ;;  %v141_v59 = vand.u32 4294901760, %v140_v16 }
  0x14   :  { %1216 = vmatprep.subr.bf16.mxu1 %v1537_v34  ;;  %1312 = vmatprep.subr.bf16.mxu0 %v1537_v34  ;;  %v159_v49 = vand.u32 4294901760, %v1659_v20  ;;  %v150_v58 = vsub.f32 %v1644_v6, %v149_v14  ;;  %v226_v62 = vand.u32 4294901760, %v1656_v19  ;;  %v1680_v1 = vsub.f32 %v1517_v28, %v77_v31 }
  0x15   :  { %v213_v22 = vsub.f32 %v1636_v4, %v212_v32  ;;  %v220_v27 = vsub.f32 %v1641_v5, %v219_v33  ;;  %v1690_v53 = vsub.f32 %v1522_v29, %v80_v35  ;;  %v1235_v54 = vpack.c.bf16 %v193_v24, %v186_v15 }
  0x16   :  { %v160_v2 = vsub.f32 %v1659_v20, %v159_v49  ;;  %v200_v28 = vand.u32 4294901760, %v199_v30  ;;  %v207_v31 = vand.u32 4294901760, %v206_v26  ;;  %v233_v7 = vand.u32 4294901760, %v1672_v48 }
  0x17   :  { %1218 = vmatpush3.bf16.msra.mxu1 %v1537_v34  ;;  %1314 = vmatpush3.bf16.msra.mxu0 %v1537_v34  ;;  %v151_v8 = vand.u32 4294901760, %v150_v58  ;;  %v1335_v16 = vpack.c.bf16 %v205_v9, %v198_v3  ;;  %v227_v51 = vsub.f32 %v1656_v19, %v226_v62  ;;  %v1697_v50 = vsub.f32 %v1543_v36, %v83_v44 }
  0x18   :  { %1220 = vmatprep.subr.bf16.mxu1 %v1580_v47  ;;  %1316 = vmatprep.subr.bf16.mxu0 %v1580_v47  ;;  %v161_v29 = vand.u32 4294901760, %v160_v2  ;;  %v214_v35 = vand.u32 4294901760, %v213_v22  ;;  %v221_v15 = vand.u32 4294901760, %v220_v27  ;;  %v240_v24 = vand.u32 4294901760, %v1680_v1 }
  0x19   :  { %v247_v30 = vand.u32 4294901760, %v1690_v53  ;;  %v234_v3 = vsub.f32 %v1672_v48, %v233_v7  ;;  %v1705_v9 = vsub.f32 %v1548_v37, %v86_v45  ;;  %v1339_v36 = vpack.c.bf16 %v219_v33, %v212_v32 }
  0x1a   :  { %v228_v44 = vand.u32 4294901760, %v227_v51  ;;  %v254_v58 = vand.u32 4294901760, %v1697_v50  ;;  %v1796_v45 = vand.u32 4294901760, %v1557_v40  ;;  %v1343_v33 = vpack.c.bf16 %v233_v7, %v226_v62 }
  0x1b   :  { %1222 = vmatpush3.bf16.msra.mxu1 %v1580_v47  ;;  %1318 = vmatpush3.bf16.msra.mxu0 %v1580_v47  ;;  %v248_v26 = vsub.f32 %v1690_v53, %v247_v30  ;;  %v261_v37 = vand.u32 4294901760, %v1705_v9 }
  0x1c   :  { %1224 = vmatprep.subr.bf16.mxu1 %v1600_v56  ;;  %1320 = vmatprep.subr.bf16.mxu0 %v1600_v56  ;;  %v1714_v51 = vsub.f32 %v1557_v40, %v1796_v45  ;;  %v255_v2 = vsub.f32 %v1697_v50, %v254_v58 }
  0x1d   :  { %v262_v22 = vsub.f32 %v1705_v9, %v261_v37 }
  0x1e   :  { %v268_v27 = vand.u32 4294901760, %v1714_v51  ;;  %v256_v62 = vand.u32 4294901760, %v255_v2 }
  0x1f   :  { %1226 = vmatpush3.bf16.msra.mxu1 %v1600_v56  ;;  %1322 = vmatpush3.bf16.msra.mxu0 %v1600_v56 }
  0x20   :  { %1228 = vmatprep.subr.bf16.mxu1 %v1625_v63  ;;  %1324 = vmatprep.subr.bf16.mxu0 %v1625_v63  ;;  %v269_v7 = vsub.f32 %v1714_v51, %v268_v27 }
  0x23   :  { %1230 = vmatpush3.bf16.msra.mxu1 %v1625_v63  ;;  %1326 = vmatpush3.bf16.msra.mxu0 %v1625_v63 }
  0x24   :  { %1232 = vmatprep.subr.bf16.mxu1 %v1231_v21  ;;  %1328 = vmatprep.subr.bf16.mxu0 %v1327_v12 }
  0x26   :  { %1004 = vmatmul.mubr.f32.vlgmr.msra.gmra.mrb[0].mxu1 %v141_v59  ;;  %1118 = vmatmul.mubr.f32.vlgmr.msra.gmra.mrb[0].mxu0 %v139_v0  ;;  %v1239_v0 = vpack.c.bf16 %v207_v31, %v200_v28  ;;  %v235_v59 = vand.u32 4294901760, %v234_v3  ;;  %v1347_v28 = vpack.c.bf16 %v247_v30, %v240_v24  ;;  %v263_v31 = vand.u32 4294901760, %v262_v22 }
  0x27   :  { %1234 = vmatpush3.bf16.msra.mxu1 %v1231_v21  ;;  %1330 = vmatpush3.bf16.msra.mxu0 %v1327_v12  ;;  %v1243_v12 = vpack.c.bf16 %v221_v15, %v214_v35  ;;  %v241_v21 = vsub.f32 %v1680_v1, %v240_v24  ;;  %v270_v35 = vand.u32 4294901760, %v269_v7  ;;  %v1267_v3 = vpack.c.bf16 %v1563_v43, %v1561_v42 }
  0x28   :  { %1236 = vmatprep.subr.bf16.mxu1 %v1235_v54  ;;  %1332 = vmatprep.subr.bf16.mxu0 %v1331_v55  ;;  %v1247_v40 = vpack.c.bf16 %v235_v59, %v228_v44 }
  0x29   :  { %1006 = vmatprep.mubr.f32.mxu1 %v151_v8  ;;  %1120 = vmatprep.mubr.f32.mxu0 %v149_v14  ;;  %v1797_v14 = vand.u32 4294901760, %v1572_v46 }
  0x2a   :  { %1007 = vmatmul.mubr.f32.gmra.mrb[2].mxu1 %v161_v29  ;;  %1121 = vmatmul.mubr.f32.gmra.mrb[2].mxu0 %v159_v49  ;;  %v242_v49 = vand.u32 4294901760, %v241_v21  ;;  %v1351_v29 = vpack.c.bf16 %v261_v37, %v254_v58 }
  0x2b   :  { %1238 = vmatpush3.bf16.msra.mxu1 %v1235_v54  ;;  %1334 = vmatpush3.bf16.msra.mxu0 %v1331_v55  ;;  %v1719_v32 = vsub.f32 %v1572_v46, %v1797_v14  ;;  %v249_v55 = vand.u32 4294901760, %v248_v26 }
  0x2c   :  { %1240 = vmatprep.subr.bf16.mxu1 %v1239_v0  ;;  %1336 = vmatprep.subr.bf16.mxu0 %v1335_v16 }
  0x2d   :  { %1041 = vmatprep.mubr.f32.mxu1 %v1476_v17  ;;  %1155 = vmatprep.mubr.f32.mxu0 %v1476_v17  ;;  %v275_v46 = vand.u32 4294901760, %v1719_v32  ;;  %v1251_v54 = vpack.c.bf16 %v249_v55, %v242_v49 }
  0x2f   :  { %1242 = vmatpush3.bf16.msra.mxu1 %v1239_v0  ;;  %1338 = vmatpush3.bf16.msra.mxu0 %v1335_v16  ;;  %v276_v8 = vsub.f32 %v1719_v32, %v275_v46  ;;  %v1255_v16 = vpack.c.bf16 %v263_v31, %v256_v62  ;;  %v1355_v30 = vpack.c.bf16 %v275_v46, %v268_v27 }
  0x30   :  { %1244 = vmatprep.subr.bf16.mxu1 %v1243_v12  ;;  %1340 = vmatprep.subr.bf16.mxu0 %v1339_v36  ;;  %v1263_v0 = vpack.c.bf16 %v1552_v39, %v1550_v38  ;;  %v1271_v38 = vpack.c.bf16 %v1614_v60, %v1605_v57  ;;  %v1279_v39 = vpack.c.bf16 %v1672_v48, %v1656_v19 }
  0x31   :  { %v277_v15 = vand.u32 4294901760, %v276_v8 }
  0x33   :  { %1246 = vmatpush3.bf16.msra.mxu1 %v1243_v12  ;;  %1342 = vmatpush3.bf16.msra.mxu0 %v1339_v36  ;;  %v1259_v24 = vpack.c.bf16 %v277_v15, %v270_v35 }
  0x34   :  { %1248 = vmatprep.subr.bf16.mxu1 %v1247_v40  ;;  %1344 = vmatprep.subr.bf16.mxu0 %v1343_v33 }
  0x37   :  { %1250 = vmatpush3.bf16.msra.mxu1 %v1247_v40  ;;  %1346 = vmatpush3.bf16.msra.mxu0 %v1343_v33 }
  0x38   :  { %1252 = vmatprep.subr.bf16.mxu1 %v1251_v54  ;;  %1348 = vmatprep.subr.bf16.mxu0 %v1347_v28 }
  0x3b   :  { %1254 = vmatpush3.bf16.msra.mxu1 %v1251_v54  ;;  %1350 = vmatpush3.bf16.msra.mxu0 %v1347_v28 }
  0x3c   :  { %1256 = vmatprep.subr.bf16.mxu1 %v1255_v16  ;;  %1352 = vmatprep.subr.bf16.mxu0 %v1351_v29 }
  0x3f   :  { %1258 = vmatpush3.bf16.msra.mxu1 %v1255_v16  ;;  %1354 = vmatpush3.bf16.msra.mxu0 %v1351_v29 }
  0x40   :  { %1260 = vmatprep.subr.bf16.mxu1 %v1259_v24  ;;  %1356 = vmatprep.subr.bf16.mxu0 %v1355_v30 }
  0x43   :  { %1262 = vmatpush3.bf16.msra.mxu1 %v1259_v24  ;;  %1358 = vmatpush3.bf16.msra.mxu0 %v1355_v30 }
  0x44   :  { %1264 = vmatprep.subr.bf16.mxu1 %v1263_v0  ;;  %1360 = vmatprep.subr.bf16.mxu0 %v1453_v10 }
  0x46   :  { %1042 = vmatmul.mubr.f32.vlgmr.msra.gmra.mrb[0].mxu1 %v1559_v41  ;;  %1156 = vmatmul.mubr.f32.vlgmr.msra.gmra.mrb[0].mxu0 %v1559_v41 }
  0x47   :  { %1266 = vmatpush3.bf16.msra.mxu1 %v1263_v0  ;;  %1362 = vmatpush3.bf16.msra.mxu0 %v1453_v10  ;;  %v1275_v10 = vpack.c.bf16 %v1641_v5, %v1636_v4 }
  0x48   :  { %1268 = vmatprep.subr.bf16.mxu1 %v1267_v3  ;;  %1364 = vmatprep.subr.bf16.mxu0 %v1457_v13 }
  0x49   :  { %1044 = vmatprep.mubr.f32.mxu1 %v1616_v61  ;;  %1158 = vmatprep.mubr.f32.mxu0 %v1616_v61 }
  0x4a   :  { %1045 = vmatmul.mubr.f32.gmra.mrb[2].mxu1 %v1649_v11  ;;  %1159 = vmatmul.mubr.f32.gmra.mrb[2].mxu0 %v1649_v11 }
  0x4b   :  { %1270 = vmatpush3.bf16.msra.mxu1 %v1267_v3  ;;  %1366 = vmatpush3.bf16.msra.mxu0 %v1457_v13  ;;  %v1283_v13 = vpack.c.bf16 %v1690_v53, %v1680_v1 }
  0x4c   :  { %1272 = vmatprep.subr.bf16.mxu1 %v1271_v38  ;;  %1368 = vmatprep.subr.bf16.mxu0 %v1484_v18 }
  0x4d   :  { %1079 = vmatprep.mubr.f32.mxu1 %v1499_v23  ;;  %1193 = vmatprep.mubr.f32.mxu0 %v1476_v17  ;;  %v1287_v17 = vpack.c.bf16 %v1705_v9, %v1697_v50 }
  0x4f   :  { %1274 = vmatpush3.bf16.msra.mxu1 %v1271_v38  ;;  %1370 = vmatpush3.bf16.msra.mxu0 %v1484_v18  ;;  %v1291_v18 = vpack.c.bf16 %v1719_v32, %v1714_v51 }
  0x50   :  { %1276 = vmatprep.subr.bf16.mxu1 %v1275_v10  ;;  %1372 = vmatprep.subr.bf16.mxu0 %v1510_v25 }
  0x53   :  { %1278 = vmatpush3.bf16.msra.mxu1 %v1275_v10  ;;  %1374 = vmatpush3.bf16.msra.mxu0 %v1510_v25 }
  0x54   :  { %1280 = vmatprep.subr.bf16.mxu1 %v1279_v39  ;;  %1376 = vmatprep.subr.bf16.mxu0 %v1537_v34 }
  0x57   :  { %1282 = vmatpush3.bf16.msra.mxu1 %v1279_v39  ;;  %1378 = vmatpush3.bf16.msra.mxu0 %v1537_v34  ;;  %v850_v34 = vld [vmem:[%s1792_s2] ss:$0 sm:$0xff] }
  0x58   :  { %1284 = vmatprep.subr.bf16.mxu1 %v1283_v13  ;;  %1380 = vmatprep.subr.bf16.mxu0 %v1580_v47 }
  0x5b   :  { %1286 = vmatpush3.bf16.msra.mxu1 %v1283_v13  ;;  %1382 = vmatpush3.bf16.msra.mxu0 %v1580_v47 }
  0x5c   :  { %1288 = vmatprep.subr.bf16.mxu1 %v1287_v17  ;;  %1384 = vmatprep.subr.bf16.mxu0 %v1600_v56 }
  0x5f   :  { %1290 = vmatpush3.bf16.msra.mxu1 %v1287_v17  ;;  %1386 = vmatpush3.bf16.msra.mxu0 %v1600_v56 }
  0x60   :  { %1292 = vmatprep.subr.bf16.mxu1 %v1291_v18  ;;  %1388 = vmatprep.subr.bf16.mxu0 %v1625_v63 }
  0x63   :  { %1294 = vmatpush3.bf16.msra.mxu1 %v1291_v18  ;;  %1390 = vmatpush3.bf16.msra.mxu0 %v1625_v63 }
  0x66   :  { %1080 = vmatmul.mubr.f32.vlgmr.msra.gmra.mrb[0].mxu1 %v1587_v52  ;;  %1194 = vmatmul.mubr.f32.vlgmr.msra.gmra.mrb[0].mxu0 %v1559_v41 }
  0x67   :  { %1082 = vmatprep.mubr.f32.mxu1 %v1644_v6  ;;  %1196 = vmatprep.mubr.f32.mxu0 %v1616_v61 }
  0x6a   :  { %1083 = vmatmul.mubr.f32.gmra.mrb[2].mxu1 %v1659_v20  ;;  %1197 = vmatmul.mubr.f32.gmra.mrb[2].mxu0 %v1649_v11 }
 0x139   :  { %v1081_v23 = vpop.f32.mrb[0].mxu1  ;;  %v1195_v25 = vpop.f32.mrb[0].mxu0 }
 0x13a   :  { %v1391_v42 = vadd.f32 %v1195_v25, %v1081_v23  ;;  %v436_v43 = vpop.f32.mrb[1].mxu1  ;;  %v794_v47 = vpop.f32.mrb[1].mxu0 }
 0x13b   :  { %v1392_v50 = vadd.f32 %v794_v47, %v436_v43 }
 0x13c   :  { %v839_v52 = vadd.f32 %v1391_v42, %v850_v34 }
 0x13d   :  { %v838_v41 = vadd.f32 %v1392_v50, %v850_v34  ;;  %v1084_v56 = vpop.f32.mrb[2].mxu1  ;;  %v1198_v57 = vpop.f32.mrb[2].mxu0 }
 0x13e   :  { %843 = vst [vmem:[%s1793_s3 + $0x8] sm:$0xff] %v839_v52  ;;  %v1393_v60 = vadd.f32 %v1198_v57, %v1084_v56  ;;  %v450_v61 = vpop.f32.mrb[3].mxu1  ;;  %v806_v63 = vpop.f32.mrb[3].mxu0 }
 0x13f   :  { %842 = vst [vmem:[%s1793_s3] sm:$0xff] %v838_v41  ;;  %v1394_v4 = vadd.f32 %v806_v63, %v450_v61 }
 0x140   :  { %v841_v5 = vadd.f32 %v1393_v60, %v850_v34 }
 0x141   :  { %v840_v6 = vadd.f32 %v1394_v4, %v850_v34 }
 0x142   :  { %845 = vst [vmem:[%s1793_s3 + $0x18] sm:$0xff] %v841_v5 }
 0x143   :  { %844 = vst [vmem:[%s1793_s3 + $0x10] sm:$0xff] %v840_v6 }

// kernel: vit_forward.20
= control target key start
LH: loop header
LB: loop body
LE: loop exit
PB: predicated region body
PF: predicated region fallthrough
CT: control target
= control target key end

     0   :  { %v1512_v0 = vmov 0.0|0.0   ;;  %vm1513_vm0 = vmmov 0   ;;  %v1514_v10 = vmov 0.0   ;;  %s1991_s1 = inlined_call_operand.vmem [shape: f32[128,128], index: 1, kind: input, shape index: {}]   ;;  %s1992_s0 = inlined_call_operand.vmem [shape: f32[40,128], index: 0, kind: input, shape index: {}]   ;;  %s1993_s2 = inlined_call_operand.vmem [shape: f32[1,128], index: 2, kind: input, shape index: {}]   ;;  %s1994_s3 = inlined_call_operand.vmem [shape: f32[40,128], index: 3, kind: output, shape index: {}]  }
   0x1   :  { %1355 = vmatprep.subr.bf16.mxu0 %v1512_v0  ;;  %v33_v1 = vld [vmem:[%s1991_s1] sm:$0xff]  ;;  %v34_v2 = vld [vmem:[%s1991_s1 + $0x8] sm:$0xff]  ;;  %v35_v3 = vld [vmem:[%s1991_s1 + $0x10] sm:$0xff]  ;;  %1379 = vmatprep.subr.bf16.mxu1 %v1512_v0 }
   0x2   :  { %v50_v4 = vand.u32 4294901760, %v33_v1  ;;  %v53_v5 = vand.u32 4294901760, %v34_v2  ;;  %v36_v6 = vld [vmem:[%s1991_s1 + $0x18] sm:$0xff]  ;;  %v56_v7 = vand.u32 4294901760, %v35_v3  ;;  %v37_v8 = vld [vmem:[%s1991_s1 + $0x20] sm:$0xff]  ;;  %v38_v9 = vld [vmem:[%s1991_s1 + $0x28] sm:$0xff]  ;;  %1105 = vmatprep.mubr.msk.f32.mxu0 %vm1513_vm0, %v1514_v10  ;;  %1152 = vmatprep.mubr.msk.f32.mxu1 %vm1513_vm0, %v1514_v10 }
   0x3   :  { %v59_v11 = vand.u32 4294901760, %v36_v6  ;;  %v62_v12 = vand.u32 4294901760, %v37_v8  ;;  %v65_v13 = vand.u32 4294901760, %v38_v9  ;;  %v39_v14 = vld [vmem:[%s1991_s1 + $0x30] sm:$0xff]  ;;  %v40_v19 = vld [vmem:[%s1991_s1 + $0x38] sm:$0xff]  ;;  %v41_v20 = vld [vmem:[%s1991_s1 + $0x40] sm:$0xff] }
   0x4   :  { %v1562_v15 = vpack.c.bf16 %v53_v5, %v50_v4  ;;  %v1564_v16 = vsub.f32 %v33_v1, %v50_v4  ;;  %v1566_v17 = vsub.f32 %v34_v2, %v53_v5  ;;  %v1568_v18 = vsub.f32 %v35_v3, %v56_v7  ;;  %v42_v27 = vld [vmem:[%s1991_s1 + $0x48] sm:$0xff]  ;;  %v43_v40 = vld [vmem:[%s1991_s1 + $0x50] sm:$0xff]  ;;  %v44_v41 = vld [vmem:[%s1991_s1 + $0x58] sm:$0xff] }
   0x5   :  { %v1576_v21 = vpack.c.bf16 %v59_v11, %v56_v7  ;;  %v1578_v22 = vsub.f32 %v36_v6, %v59_v11  ;;  %v1581_v23 = vsub.f32 %v37_v8, %v62_v12  ;;  %v68_v26 = vand.u32 4294901760, %v39_v14  ;;  %v1627_v50 = vld [vmem:[%s1991_s1 + $0x60] sm:$0xff]  ;;  %v46_v59 = vld [vmem:[%s1991_s1 + $0x68] sm:$0xff]  ;;  %v1650_v1 = vld [vmem:[%s1991_s1 + $0x70] sm:$0xff] }
   0x6   :  { %1357 = vmatpush3.bf16.msra.mxu0 %v1562_v15  ;;  %v183_v24 = vand.u32 4294901760, %v1564_v16  ;;  %v190_v25 = vand.u32 4294901760, %v1566_v17  ;;  %v71_v28 = vand.u32 4294901760, %v40_v19  ;;  %v197_v29 = vand.u32 4294901760, %v1568_v18  ;;  %v48_v6 = vld [vmem:[%s1991_s1 + $0x78] sm:$0xff] }
   0x7   :  { %1358 = vmatprep.subr.bf16.mxu0 %v1512_v0  ;;  %v204_v30 = vand.u32 4294901760, %v1578_v22  ;;  %v74_v31 = vand.u32 4294901760, %v41_v20  ;;  %v1591_v32 = vsub.f32 %v38_v9, %v65_v13  ;;  %v1599_v35 = vsub.f32 %v39_v14, %v68_v26 }
   0x8   :  { %v184_v33 = vsub.f32 %v1564_v16, %v183_v24  ;;  %v191_v34 = vsub.f32 %v1566_v17, %v190_v25  ;;  %v1601_v36 = vsub.f32 %v40_v19, %v71_v28  ;;  %v198_v37 = vsub.f32 %v1568_v18, %v197_v29 }
   0x9   :  { %v205_v38 = vsub.f32 %v1578_v22, %v204_v30  ;;  %v77_v39 = vand.u32 4294901760, %v42_v27  ;;  %v1616_v42 = vpack.c.bf16 %v65_v13, %v62_v12  ;;  %v1618_v45 = vpack.c.bf16 %v71_v28, %v68_v26 }
   0xa   :  { %1360 = vmatpush3.bf16.msra.mxu0 %v1576_v21  ;;  %v185_v43 = vand.u32 4294901760, %v184_v33  ;;  %v192_v44 = vand.u32 4294901760, %v191_v34  ;;  %v199_v46 = vand.u32 4294901760, %v198_v37  ;;  %v1621_v48 = vsub.f32 %v41_v20, %v74_v31 }
   0xb   :  { %1361 = vmatprep.subr.bf16.mxu0 %v1512_v0  ;;  %v206_v47 = vand.u32 4294901760, %v205_v38  ;;  %v211_v49 = vand.u32 4294901760, %v1581_v23  ;;  %v218_v52 = vand.u32 4294901760, %v1591_v32  ;;  %v80_v53 = vand.u32 4294901760, %v43_v40 }
   0xc   :  { %v1380_v51 = vpack.c.bf16 %v192_v44, %v185_v43  ;;  %v83_v54 = vand.u32 4294901760, %v44_v41  ;;  %v1630_v55 = vsub.f32 %v42_v27, %v77_v39  ;;  %v225_v57 = vand.u32 4294901760, %v1599_v35 }
   0xd   :  { %v212_v56 = vsub.f32 %v1581_v23, %v211_v49  ;;  %v232_v58 = vand.u32 4294901760, %v1601_v36  ;;  %v1383_v60 = vpack.c.bf16 %v206_v47, %v199_v46  ;;  %v1641_v61 = vpack.c.bf16 %v77_v39, %v74_v31  ;;  %v28_v31 = vld [vmem:[%s1992_s0] sm:$0xff] }
   0xe   :  { %1363 = vmatpush3.bf16.msra.mxu0 %v1616_v42  ;;  %1381 = vmatpush3.bf16.msra.mxu1 %v1380_v51  ;;  %v219_v62 = vsub.f32 %v1591_v32, %v218_v52  ;;  %v86_v63 = vand.u32 4294901760, %v1627_v50  ;;  %v1654_v3 = vsub.f32 %v43_v40, %v80_v53  ;;  %v226_v4 = vsub.f32 %v1599_v35, %v225_v57 }
   0xf   :  { %1364 = vmatprep.subr.bf16.mxu0 %v1512_v0  ;;  %1382 = vmatprep.subr.bf16.mxu1 %v1512_v0  ;;  %v213_v2 = vand.u32 4294901760, %v212_v56  ;;  %v233_v5 = vsub.f32 %v1601_v36, %v232_v58  ;;  %v1665_v8 = vsub.f32 %v44_v41, %v83_v54  ;;  %v89_v9 = vand.u32 4294901760, %v46_v59 }
  0x10   :  { %v220_v7 = vand.u32 4294901760, %v219_v62  ;;  %v239_v11 = vand.u32 4294901760, %v1621_v48  ;;  %v227_v12 = vand.u32 4294901760, %v226_v4  ;;  %v246_v14 = vand.u32 4294901760, %v1630_v55 }
  0x11   :  { %v234_v13 = vand.u32 4294901760, %v233_v5  ;;  %v92_v19 = vand.u32 4294901760, %v1650_v1  ;;  %v1672_v26 = vsub.f32 %v1627_v50, %v86_v63  ;;  %v1674_v27 = vsub.f32 %v46_v59, %v89_v9  ;;  %v30_v5 = vld [vmem:[%s1992_s0 + $0x10] sm:$0xff] }
  0x12   :  { %1366 = vmatpush3.bf16.msra.mxu0 %v1618_v45  ;;  %1384 = vmatpush3.bf16.msra.mxu1 %v1383_v60  ;;  %v1386_v20 = vpack.c.bf16 %v220_v7, %v213_v2  ;;  %v95_v28 = vand.u32 4294901760, %v48_v6  ;;  %v240_v33 = vsub.f32 %v1621_v48, %v239_v11  ;;  %v247_v34 = vsub.f32 %v1630_v55, %v246_v14  ;;  %v29_v60 = vld [vmem:[%s1992_s0 + $0x8] sm:$0xff] }
  0x13   :  { %1367 = vmatprep.subr.bf16.mxu0 %v1512_v0  ;;  %1385 = vmatprep.subr.bf16.mxu1 %v1512_v0  ;;  %v253_v37 = vand.u32 4294901760, %v1654_v3  ;;  %v1688_v38 = vpack.c.bf16 %v83_v54, %v80_v53  ;;  %v1389_v39 = vpack.c.bf16 %v234_v13, %v227_v12  ;;  %v1691_v40 = vsub.f32 %v1650_v1, %v92_v19  ;;  %v31_v12 = vld [vmem:[%s1992_s0 + $0x18] sm:$0xff] }
  0x14   :  { %v1999_v41 = vand.u32 4294901760, %v1665_v8  ;;  %v241_v43 = vand.u32 4294901760, %v240_v33  ;;  %v1694_v44 = vsub.f32 %v48_v6, %v95_v28  ;;  %v1699_v47 = vand.u32 4294901760, %v28_v31 }
  0x15   :  { %v254_v46 = vsub.f32 %v1654_v3, %v253_v37  ;;  %v248_v50 = vand.u32 4294901760, %v247_v34  ;;  %v1998_v53 = vand.u32 4294901760, %v1672_v26  ;;  %v1997_v54 = vand.u32 4294901760, %v1674_v27 }
  0x16   :  { %1369 = vmatpush3.bf16.msra.mxu0 %v1641_v61  ;;  %1387 = vmatpush3.bf16.msra.mxu1 %v1386_v20  ;;  %v261_v51 = vsub.f32 %v1665_v8, %v1999_v41  ;;  %v1710_v56 = vsub.f32 %v28_v31, %v1699_v47  ;;  %v1712_v59 = vpack.c.bf16 %v89_v9, %v86_v63  ;;  %v1996_v4 = vand.u32 4294901760, %v1691_v40 }
  0x17   :  { %1370 = vmatprep.subr.bf16.mxu0 %v1512_v0  ;;  %1388 = vmatprep.subr.bf16.mxu1 %v1512_v0  ;;  %v255_v62 = vand.u32 4294901760, %v254_v46  ;;  %v1392_v6 = vpack.c.bf16 %v248_v50, %v241_v43  ;;  %v268_v63 = vsub.f32 %v1672_v26, %v1998_v53  ;;  %v275_v7 = vsub.f32 %v1674_v27, %v1997_v54 }
  0x18   :  { %v262_v1 = vand.u32 4294901760, %v261_v51  ;;  %v132_v2 = vand.u32 4294901760, %v1710_v56  ;;  %v1995_v9 = vand.u32 4294901760, %v1694_v44  ;;  %v1735_v13 = vand.u32 4294901760, %v29_v60 }
  0x19   :  { %v1737_v20 = vpack.c.bf16 %v95_v28, %v92_v19  ;;  %v1742_v33 = vand.u32 4294901760, %v30_v5  ;;  %v1750_v46 = vand.u32 4294901760, %v31_v12  ;;  %v269_v19 = vand.u32 4294901760, %v268_v63 }
  0x1a   :  { %1372 = vmatpush3.bf16.msra.mxu0 %v1688_v38  ;;  %1390 = vmatpush3.bf16.msra.mxu1 %v1389_v39  ;;  %v133_v31 = vsub.f32 %v1710_v56, %v132_v2  ;;  %v1395_v34 = vpack.c.bf16 %v262_v1, %v255_v62  ;;  %v282_v39 = vsub.f32 %v1691_v40, %v1996_v4  ;;  %v276_v28 = vand.u32 4294901760, %v275_v7  ;;  %v32_v62 = vld [vmem:[%s1992_s0 + $0x20] sm:$0xff] }
  0x1b   :  { %1373 = vmatprep.subr.bf16.mxu0 %v1512_v0  ;;  %1391 = vmatprep.subr.bf16.mxu1 %v1512_v0  ;;  %v1748_v43 = vsub.f32 %v29_v60, %v1735_v13  ;;  %v289_v50 = vsub.f32 %v1694_v44, %v1995_v9  ;;  %v1757_v51 = vsub.f32 %v30_v5, %v1742_v33  ;;  %v1772_v7 = vand.u32 4294901760, %v32_v62 }
  0x1c   :  { %v134_v1 = vand.u32 4294901760, %v133_v31  ;;  %v1770_v5 = vsub.f32 %v31_v12, %v1750_v46  ;;  %v1398_v9 = vpack.c.bf16 %v276_v28, %v269_v19  ;;  %v1404_v4 = vpack.c.bf16 %v1566_v17, %v1564_v16 }
  0x1d   :  { %v142_v60 = vand.u32 4294901760, %v1748_v43  ;;  %v152_v63 = vand.u32 4294901760, %v1757_v51  ;;  %v283_v54 = vand.u32 4294901760, %v282_v39  ;;  %v290_v31 = vand.u32 4294901760, %v289_v50 }
  0x1e   :  { %1375 = vmatpush3.bf16.msra.mxu0 %v1712_v59  ;;  %1393 = vmatpush3.bf16.msra.mxu1 %v1392_v6  ;;  %v162_v41 = vand.u32 4294901760, %v1770_v5  ;;  %v1407_v39 = vpack.c.bf16 %v1578_v22, %v1568_v18  ;;  %v1458_v16 = vpack.c.bf16 %v218_v52, %v211_v49  ;;  %v1461_v17 = vpack.c.bf16 %v232_v58, %v225_v57 }
  0x1f   :  { %1376 = vmatprep.subr.bf16.mxu0 %v1512_v0  ;;  %1394 = vmatprep.subr.bf16.mxu1 %v1512_v0  ;;  %v143_v6 = vsub.f32 %v1748_v43, %v142_v60  ;;  %v153_v12 = vsub.f32 %v1757_v51, %v152_v63  ;;  %v1401_v19 = vpack.c.bf16 %v290_v31, %v283_v54  ;;  %v2000_v18 = vand.u32 4294901760, %v1665_v8 }
  0x20   :  { %v163_v50 = vsub.f32 %v1770_v5, %v162_v41  ;;  %v1410_v54 = vpack.c.bf16 %v1591_v32, %v1581_v23  ;;  %v1419_v31 = vpack.c.bf16 %v1665_v8, %v1654_v3  ;;  %v2001_v22 = vand.u32 4294901760, %v1672_v26 }
  0x21   :  { %v144_v53 = vand.u32 4294901760, %v143_v6  ;;  %v154_v28 = vand.u32 4294901760, %v153_v12  ;;  %v1416_v6 = vpack.c.bf16 %v1630_v55, %v1621_v48  ;;  %v1422_v12 = vpack.c.bf16 %v1674_v27, %v1672_v26 }
  0x22   :  { %1378 = vmatpush3.bf16.msra.mxu0 %v1737_v20  ;;  %1396 = vmatpush3.bf16.msra.mxu1 %v1395_v34  ;;  %v1784_v34 = vsub.f32 %v32_v62, %v1772_v7  ;;  %v1413_v62 = vpack.c.bf16 %v1601_v36, %v1599_v35  ;;  %v2002_v23 = vand.u32 4294901760, %v1674_v27 }
  0x23   :  { %1397 = vmatprep.subr.bf16.mxu1 %v1512_v0  ;;  %1403 = vmatprep.subr.bf16.mxu0 %v1512_v0 }
  0x25   :  { %1106 = vmatmul.mubr.f32.vlgmr.msra.gmra.mrb[0].mxu0 %v134_v1 }
  0x26   :  { %1399 = vmatpush3.bf16.msra.mxu1 %v1398_v9  ;;  %1405 = vmatpush3.bf16.msra.mxu0 %v1404_v4  ;;  %v172_v9 = vand.u32 4294901760, %v1784_v34 }
  0x27   :  { %1400 = vmatprep.subr.bf16.mxu1 %v1512_v0  ;;  %1406 = vmatprep.subr.bf16.mxu0 %v1512_v0 }
  0x28   :  { %1108 = vmatprep.mubr.msk.f32.mxu0 %vm1513_vm0, %v1514_v10  ;;  %v173_v4 = vsub.f32 %v1784_v34, %v172_v9 }
  0x29   :  { %1109 = vmatmul.mubr.f32.gmra.mrb[2].mxu0 %v144_v53  ;;  %v164_v53 = vand.u32 4294901760, %v163_v50 }
  0x2a   :  { %1402 = vmatpush3.bf16.msra.mxu1 %v1401_v19  ;;  %1408 = vmatpush3.bf16.msra.mxu0 %v1407_v39  ;;  %v174_v1 = vand.u32 4294901760, %v173_v4  ;;  %v1425_v19 = vpack.c.bf16 %v1694_v44, %v1691_v40  ;;  %v1452_v39 = vpack.c.bf16 %v190_v25, %v183_v24  ;;  %v1470_v24 = vpack.c.bf16 %v2002_v23, %v2001_v22 }
  0x2b   :  { %1409 = vmatprep.subr.bf16.mxu0 %v1512_v0  ;;  %1427 = vmatprep.subr.bf16.mxu1 %v1512_v0  ;;  %v2003_v25 = vand.u32 4294901760, %v1691_v40 }
  0x2c   :  { %1111 = vmatprep.mubr.msk.f32.mxu0 %vm1513_vm0, %v1514_v10 }
  0x2d   :  { %1153 = vmatmul.mubr.f32.vlgmr.msra.gmra.mrb[0].mxu1 %v1699_v47  ;;  %1112 = vmatmul.mubr.f32.gmra.mrb[4].mxu0 %v154_v28  ;;  %v1455_v28 = vpack.c.bf16 %v204_v30, %v197_v29  ;;  %v2004_v29 = vand.u32 4294901760, %v1694_v44 }
  0x2e   :  { %1411 = vmatpush3.bf16.msra.mxu0 %v1410_v54  ;;  %1429 = vmatpush3.bf16.msra.mxu1 %v1562_v15 }
  0x2f   :  { %1412 = vmatprep.subr.bf16.mxu0 %v1512_v0  ;;  %1430 = vmatprep.subr.bf16.mxu1 %v1512_v0  ;;  %v1473_v30 = vpack.c.bf16 %v2004_v29, %v2003_v25 }
  0x30   :  { %1155 = vmatprep.mubr.msk.f32.mxu1 %vm1513_vm0, %v1514_v10  ;;  %1114 = vmatprep.mubr.msk.f32.mxu0 %vm1513_vm0, %v1514_v10 }
  0x31   :  { %1156 = vmatmul.mubr.f32.gmra.mrb[2].mxu1 %v1735_v13  ;;  %1115 = vmatmul.mubr.f32.gmra.mrb[6].mxu0 %v164_v53 }
  0x32   :  { %1414 = vmatpush3.bf16.msra.mxu0 %v1413_v62  ;;  %1432 = vmatpush3.bf16.msra.mxu1 %v1576_v21 }
  0x33   :  { %1415 = vmatprep.subr.bf16.mxu0 %v1512_v0  ;;  %1433 = vmatprep.subr.bf16.mxu1 %v1512_v0 }
  0x34   :  { %1158 = vmatprep.mubr.msk.f32.mxu1 %vm1513_vm0, %v1514_v10  ;;  %1117 = vmatprep.mubr.msk.f32.mxu0 %vm1513_vm0, %v1514_v10 }
  0x35   :  { %1159 = vmatmul.mubr.f32.gmra.mrb[4].mxu1 %v1742_v33  ;;  %1118 = vmatmul.mubr.f32.gmra.mrb[8].mxu0 %v174_v1 }
  0x36   :  { %1417 = vmatpush3.bf16.msra.mxu0 %v1416_v6  ;;  %1435 = vmatpush3.bf16.msra.mxu1 %v1616_v42 }
  0x37   :  { %1418 = vmatprep.subr.bf16.mxu0 %v1512_v0  ;;  %1436 = vmatprep.subr.bf16.mxu1 %v1512_v0 }
  0x38   :  { %1161 = vmatprep.mubr.msk.f32.mxu1 %vm1513_vm0, %v1514_v10  ;;  %1199 = vmatprep.mubr.msk.f32.mxu0 %vm1513_vm0, %v1514_v10 }
  0x39   :  { %1162 = vmatmul.mubr.f32.gmra.mrb[6].mxu1 %v1750_v46 }
  0x3a   :  { %1420 = vmatpush3.bf16.msra.mxu0 %v1419_v31  ;;  %1438 = vmatpush3.bf16.msra.mxu1 %v1618_v45 }
  0x3b   :  { %1421 = vmatprep.subr.bf16.mxu0 %v1512_v0  ;;  %1439 = vmatprep.subr.bf16.mxu1 %v1512_v0 }
  0x3c   :  { %1164 = vmatprep.mubr.msk.f32.mxu1 %vm1513_vm0, %v1514_v10 }
  0x3d   :  { %1165 = vmatmul.mubr.f32.gmra.mrb[8].mxu1 %v1772_v7 }
  0x3e   :  { %1423 = vmatpush3.bf16.msra.mxu0 %v1422_v12  ;;  %1441 = vmatpush3.bf16.msra.mxu1 %v1641_v61 }
  0x3f   :  { %1424 = vmatprep.subr.bf16.mxu0 %v1512_v0  ;;  %1442 = vmatprep.subr.bf16.mxu1 %v1512_v0 }
  0x40   :  { %1246 = vmatprep.mubr.msk.f32.mxu1 %vm1513_vm0, %v1514_v10 }
  0x42   :  { %1426 = vmatpush3.bf16.msra.mxu0 %v1425_v19  ;;  %1444 = vmatpush3.bf16.msra.mxu1 %v1688_v38 }
  0x43   :  { %1445 = vmatprep.subr.bf16.mxu1 %v1512_v0  ;;  %1451 = vmatprep.subr.bf16.mxu0 %v1512_v0 }
  0x45   :  { %1200 = vmatmul.mubr.f32.vlgmr.msra.gmra.mrb[10].mxu0 %v1710_v56 }
  0x46   :  { %1447 = vmatpush3.bf16.msra.mxu1 %v1712_v59  ;;  %1453 = vmatpush3.bf16.msra.mxu0 %v1452_v39 }
  0x47   :  { %1202 = vmatprep.mubr.msk.f32.mxu0 %vm1513_vm0, %v1514_v10  ;;  %1448 = vmatprep.subr.bf16.mxu1 %v1512_v0 }
  0x48   :  { %1454 = vmatprep.subr.bf16.mxu0 %v1512_v0 }
  0x49   :  { %1203 = vmatmul.mubr.f32.gmra.mrb[12].mxu0 %v1748_v43 }
  0x4a   :  { %1450 = vmatpush3.bf16.msra.mxu1 %v1737_v20  ;;  %1456 = vmatpush3.bf16.msra.mxu0 %v1455_v28 }
  0x4b   :  { %1205 = vmatprep.mubr.msk.f32.mxu0 %vm1513_vm0, %v1514_v10  ;;  %1457 = vmatprep.subr.bf16.mxu0 %v1512_v0 }
  0x4c   :  { %1475 = vmatprep.subr.bf16.mxu1 %v1512_v0 }
  0x4d   :  { %1206 = vmatmul.mubr.f32.gmra.mrb[14].mxu0 %v1757_v51  ;;  %1247 = vmatmul.mubr.f32.vlgmr.msra.gmra.mrb[10].mxu1 %v132_v2 }
  0x4e   :  { %1459 = vmatpush3.bf16.msra.mxu0 %v1458_v16  ;;  %1477 = vmatpush3.bf16.msra.mxu1 %v1562_v15  ;;  %v1464_v15 = vpack.c.bf16 %v246_v14, %v239_v11 }
  0x4f   :  { %1208 = vmatprep.mubr.msk.f32.mxu0 %vm1513_vm0, %v1514_v10  ;;  %1249 = vmatprep.mubr.msk.f32.mxu1 %vm1513_vm0, %v1514_v10 }
  0x50   :  { %1460 = vmatprep.subr.bf16.mxu0 %v1512_v0  ;;  %1478 = vmatprep.subr.bf16.mxu1 %v1512_v0 }
  0x51   :  { %1209 = vmatmul.mubr.f32.gmra.mrb[16].mxu0 %v1770_v5  ;;  %1250 = vmatmul.mubr.f32.gmra.mrb[12].mxu1 %v142_v60 }
  0x52   :  { %1462 = vmatpush3.bf16.msra.mxu0 %v1461_v17  ;;  %1480 = vmatpush3.bf16.msra.mxu1 %v1576_v21  ;;  %v1467_v21 = vpack.c.bf16 %v2000_v18, %v253_v37 }
  0x53   :  { %1211 = vmatprep.mubr.msk.f32.mxu0 %vm1513_vm0, %v1514_v10  ;;  %1252 = vmatprep.mubr.msk.f32.mxu1 %vm1513_vm0, %v1514_v10 }
  0x54   :  { %1463 = vmatprep.subr.bf16.mxu0 %v1512_v0  ;;  %1481 = vmatprep.subr.bf16.mxu1 %v1512_v0 }
  0x55   :  { %1212 = vmatmul.mubr.f32.gmra.mrb[18].mxu0 %v1784_v34  ;;  %1253 = vmatmul.mubr.f32.gmra.mrb[14].mxu1 %v152_v63 }
  0x56   :  { %1465 = vmatpush3.bf16.msra.mxu0 %v1464_v15  ;;  %1483 = vmatpush3.bf16.msra.mxu1 %v1616_v42 }
  0x57   :  { %1255 = vmatprep.mubr.msk.f32.mxu1 %vm1513_vm0, %v1514_v10  ;;  %1466 = vmatprep.subr.bf16.mxu0 %v1512_v0 }
  0x58   :  { %1484 = vmatprep.subr.bf16.mxu1 %v1512_v0  ;;  %1293 = vmatprep.mubr.msk.f32.mxu0 %vm1513_vm0, %v1514_v10 }
  0x59   :  { %1256 = vmatmul.mubr.f32.gmra.mrb[16].mxu1 %v162_v41 }
  0x5a   :  { %1468 = vmatpush3.bf16.msra.mxu0 %v1467_v21  ;;  %1486 = vmatpush3.bf16.msra.mxu1 %v1618_v45 }
  0x5b   :  { %1258 = vmatprep.mubr.msk.f32.mxu1 %vm1513_vm0, %v1514_v10  ;;  %1469 = vmatprep.subr.bf16.mxu0 %v1512_v0 }
  0x5c   :  { %1487 = vmatprep.subr.bf16.mxu1 %v1512_v0 }
  0x5d   :  { %1259 = vmatmul.mubr.f32.gmra.mrb[18].mxu1 %v172_v9 }
  0x5e   :  { %1471 = vmatpush3.bf16.msra.mxu0 %v1470_v24  ;;  %1489 = vmatpush3.bf16.msra.mxu1 %v1641_v61 }
  0x5f   :  { %1472 = vmatprep.subr.bf16.mxu0 %v1512_v0  ;;  %1490 = vmatprep.subr.bf16.mxu1 %v1512_v0 }
  0x60   :  { %1340 = vmatprep.mubr.msk.f32.mxu1 %vm1513_vm0, %v1514_v10 }
  0x62   :  { %1474 = vmatpush3.bf16.msra.mxu0 %v1473_v30  ;;  %1492 = vmatpush3.bf16.msra.mxu1 %v1688_v38  ;;  %v946_v30 = vld [vmem:[%s1993_s2] ss:$0 sm:$0xff] }
  0x63   :  { %1493 = vmatprep.subr.bf16.mxu1 %v1512_v0 }
  0x65   :  { %1294 = vmatmul.mubr.f32.vlgmr.msra.gmra.mrb[20].mxu0 %v1699_v47 }
  0x66   :  { %1495 = vmatpush3.bf16.msra.mxu1 %v1712_v59  ;;  %1296 = vmatprep.mubr.msk.f32.mxu0 %vm1513_vm0, %v1514_v10 }
  0x67   :  { %1496 = vmatprep.subr.bf16.mxu1 %v1512_v0 }
  0x69   :  { %1297 = vmatmul.mubr.f32.gmra.mrb[22].mxu0 %v1735_v13 }
  0x6a   :  { %1498 = vmatpush3.bf16.msra.mxu1 %v1737_v20  ;;  %1299 = vmatprep.mubr.msk.f32.mxu0 %vm1513_vm0, %v1514_v10 }
  0x6d   :  { %1300 = vmatmul.mubr.f32.gmra.mrb[24].mxu0 %v1742_v33  ;;  %1341 = vmatmul.mubr.f32.vlgmr.msra.gmra.mrb[20].mxu1 %v1699_v47 }
  0x6e   :  { %1302 = vmatprep.mubr.msk.f32.mxu0 %vm1513_vm0, %v1514_v10  ;;  %1343 = vmatprep.mubr.msk.f32.mxu1 %vm1513_vm0, %v1514_v10 }
  0x71   :  { %1303 = vmatmul.mubr.f32.gmra.mrb[26].mxu0 %v1750_v46  ;;  %1344 = vmatmul.mubr.f32.gmra.mrb[22].mxu1 %v1735_v13 }
  0x72   :  { %1305 = vmatprep.mubr.msk.f32.mxu0 %vm1513_vm0, %v1514_v10  ;;  %1346 = vmatprep.mubr.msk.f32.mxu1 %vm1513_vm0, %v1514_v10 }
  0x75   :  { %1306 = vmatmul.mubr.f32.gmra.mrb[28].mxu0 %v1772_v7  ;;  %1347 = vmatmul.mubr.f32.gmra.mrb[24].mxu1 %v1742_v33 }
  0x76   :  { %1349 = vmatprep.mubr.msk.f32.mxu1 %vm1513_vm0, %v1514_v10 }
  0x79   :  { %1350 = vmatmul.mubr.f32.gmra.mrb[26].mxu1 %v1750_v46 }
  0x7a   :  { %1352 = vmatprep.mubr.msk.f32.mxu1 %vm1513_vm0, %v1514_v10 }
  0x7d   :  { %1353 = vmatmul.mubr.f32.gmra.mrb[28].mxu1 %v1772_v7 }
  0xf8   :  { %v136_v0 = vpop.f32.mrb[0].mxu0 }
  0xf9   :  { %v1107_v32 = vpop.f32.mrb[1].mxu0 }
  0xfc   :  { %v146_v35 = vpop.f32.mrb[2].mxu0 }
  0xfd   :  { %v1110_v36 = vpop.f32.mrb[3].mxu0 }
 0x100   :  { %v327_v42 = vpop.f32.mrb[0].mxu1  ;;  %v156_v45 = vpop.f32.mrb[4].mxu0 }
 0x101   :  { %v328_v48 = vadd.f32 %v327_v42, %v136_v0  ;;  %v1154_v49 = vpop.f32.mrb[1].mxu1  ;;  %v1113_v52 = vpop.f32.mrb[5].mxu0 }
 0x104   :  { %v333_v55 = vpop.f32.mrb[2].mxu1  ;;  %v166_v57 = vpop.f32.mrb[6].mxu0 }
 0x105   :  { %v334_v58 = vadd.f32 %v333_v55, %v146_v35  ;;  %v1157_v61 = vpop.f32.mrb[3].mxu1  ;;  %v1116_v3 = vpop.f32.mrb[7].mxu0 }
 0x108   :  { %v339_v8 = vpop.f32.mrb[4].mxu1  ;;  %v176_v11 = vpop.f32.mrb[8].mxu0 }
 0x109   :  { %v340_v14 = vadd.f32 %v339_v8, %v156_v45  ;;  %v1160_v10 = vpop.f32.mrb[5].mxu1  ;;  %v1119_v26 = vpop.f32.mrb[9].mxu0 }
 0x10c   :  { %v345_v27 = vpop.f32.mrb[6].mxu1 }
 0x10d   :  { %v346_v37 = vadd.f32 %v345_v27, %v166_v57  ;;  %v1163_v38 = vpop.f32.mrb[7].mxu1 }
 0x110   :  { %v351_v40 = vpop.f32.mrb[8].mxu1 }
 0x111   :  { %v352_v41 = vadd.f32 %v351_v40, %v176_v11  ;;  %v1166_v44 = vpop.f32.mrb[9].mxu1 }
 0x118   :  { %v455_v47 = vpop.f32.mrb[10].mxu0 }
 0x119   :  { %v456_v56 = vadd.f32 %v455_v47, %v328_v48  ;;  %v1201_v59 = vpop.f32.mrb[11].mxu0 }
 0x11c   :  { %v462_v2 = vpop.f32.mrb[12].mxu0 }
 0x11d   :  { %v463_v13 = vadd.f32 %v462_v2, %v334_v58  ;;  %v1204_v20 = vpop.f32.mrb[13].mxu0 }
 0x120   :  { %v469_v33 = vpop.f32.mrb[14].mxu0  ;;  %v572_v43 = vpop.f32.mrb[10].mxu1 }
 0x121   :  { %v470_v46 = vadd.f32 %v469_v33, %v340_v14  ;;  %v573_v51 = vadd.f32 %v572_v43, %v456_v56  ;;  %v1248_v60 = vpop.f32.mrb[11].mxu1  ;;  %v1207_v63 = vpop.f32.mrb[15].mxu0 }
 0x124   :  { %v476_v5 = vpop.f32.mrb[16].mxu0  ;;  %v580_v7 = vpop.f32.mrb[12].mxu1 }
 0x125   :  { %v477_v34 = vadd.f32 %v476_v5, %v346_v37  ;;  %v581_v50 = vadd.f32 %v580_v7, %v463_v13  ;;  %v1210_v9 = vpop.f32.mrb[17].mxu0  ;;  %v1251_v54 = vpop.f32.mrb[13].mxu1 }
 0x128   :  { %v483_v53 = vpop.f32.mrb[18].mxu0  ;;  %v588_v4 = vpop.f32.mrb[14].mxu1 }
 0x129   :  { %v484_v62 = vadd.f32 %v483_v53, %v352_v41  ;;  %v589_v1 = vadd.f32 %v588_v4, %v470_v46  ;;  %v1254_v6 = vpop.f32.mrb[15].mxu1  ;;  %v1213_v31 = vpop.f32.mrb[19].mxu0 }
 0x12c   :  { %v596_v12 = vpop.f32.mrb[16].mxu1 }
 0x12d   :  { %v597_v19 = vadd.f32 %v596_v12, %v477_v34  ;;  %v1257_v39 = vpop.f32.mrb[17].mxu1 }
 0x130   :  { %v604_v28 = vpop.f32.mrb[18].mxu1 }
 0x131   :  { %v605_v16 = vadd.f32 %v604_v28, %v484_v62  ;;  %v1260_v17 = vpop.f32.mrb[19].mxu1 }
 0x138   :  { %v723_v15 = vpop.f32.mrb[20].mxu0 }
 0x139   :  { %v724_v18 = vadd.f32 %v723_v15, %v573_v51  ;;  %v1295_v21 = vpop.f32.mrb[21].mxu0 }
 0x13c   :  { %v729_v22 = vpop.f32.mrb[22].mxu0 }
 0x13d   :  { %v730_v23 = vadd.f32 %v729_v22, %v581_v50  ;;  %v1298_v24 = vpop.f32.mrb[23].mxu0 }
 0x140   :  { %v735_v25 = vpop.f32.mrb[24].mxu0  ;;  %v834_v29 = vpop.f32.mrb[20].mxu1 }
 0x141   :  { %v736_v0 = vadd.f32 %v735_v25, %v589_v1  ;;  %v835_v32 = vadd.f32 %v834_v29, %v724_v18  ;;  %v1342_v35 = vpop.f32.mrb[21].mxu1  ;;  %v1301_v36 = vpop.f32.mrb[25].mxu0 }
 0x143   :  { %v887_v42 = vadd.f32 %v946_v30, %v835_v32 }
 0x144   :  { %v741_v45 = vpop.f32.mrb[26].mxu0  ;;  %v840_v48 = vpop.f32.mrb[22].mxu1 }
 0x145   :  { %v897_v49 = vmul.f32 0.044715, %v887_v42  ;;  %v742_v52 = vadd.f32 %v741_v45, %v597_v19  ;;  %v841_v55 = vadd.f32 %v840_v48, %v730_v23  ;;  %v1345_v57 = vpop.f32.mrb[23].mxu1  ;;  %v1304_v58 = vpop.f32.mrb[27].mxu0  ;;  %v892_v39 = vmul.f32 0.5, %v887_v42 }
 0x147   :  { %v902_v61 = vmul.f32 %v897_v49, %v887_v42  ;;  %v888_v3 = vadd.f32 %v946_v30, %v841_v55 }
 0x148   :  { %v747_v8 = vpop.f32.mrb[28].mxu0  ;;  %v846_v11 = vpop.f32.mrb[24].mxu1 }
 0x149   :  { %v907_v14 = vmul.f32 %v902_v61, %v887_v42  ;;  %v898_v10 = vmul.f32 0.044715, %v888_v3  ;;  %v748_v26 = vadd.f32 %v747_v8, %v605_v16  ;;  %v1348_v27 = vpop.f32.mrb[25].mxu1  ;;  %v1307_v37 = vpop.f32.mrb[29].mxu0  ;;  %v847_v38 = vadd.f32 %v846_v11, %v736_v0 }
 0x14a   :  { %v893_v21 = vmul.f32 0.5, %v888_v3 }
 0x14b   :  { %v912_v40 = vadd.f32 %v907_v14, %v887_v42  ;;  %v903_v41 = vmul.f32 %v898_v10, %v888_v3  ;;  %v889_v44 = vadd.f32 %v946_v30, %v847_v38 }
 0x14c   :  { %v852_v47 = vpop.f32.mrb[26].mxu1 }
 0x14d   :  { %v917_v56 = vmul.f32 0.7978846, %v912_v40  ;;  %v908_v59 = vmul.f32 %v903_v41, %v888_v3  ;;  %v853_v2 = vadd.f32 %v852_v47, %v742_v52  ;;  %v1351_v13 = vpop.f32.mrb[27].mxu1  ;;  %v899_v20 = vmul.f32 0.044715, %v889_v44 }
 0x14e   :  { %v894_v25 = vmul.f32 0.5, %v889_v44 }
 0x14f   :  { %1502 = vtanh.f32 %v917_v56  ;;  %v913_v33 = vadd.f32 %v908_v59, %v888_v3  ;;  %v890_v43 = vadd.f32 %v946_v30, %v853_v2  ;;  %v904_v46 = vmul.f32 %v899_v20, %v889_v44 }
 0x150   :  { %v858_v51 = vpop.f32.mrb[28].mxu1 }
 0x151   :  { %v918_v60 = vmul.f32 0.7978846, %v913_v33  ;;  %v900_v63 = vmul.f32 0.044715, %v890_v43  ;;  %v859_v5 = vadd.f32 %v858_v51, %v748_v26  ;;  %v1354_v7 = vpop.f32.mrb[29].mxu1  ;;  %v909_v34 = vmul.f32 %v904_v46, %v889_v44 }
 0x152   :  { %v895_v32 = vmul.f32 0.5, %v890_v43 }
 0x153   :  { %1504 = vtanh.f32 %v918_v60  ;;  %v905_v50 = vmul.f32 %v900_v63, %v890_v43  ;;  %v891_v9 = vadd.f32 %v946_v30, %v859_v5  ;;  %v914_v54 = vadd.f32 %v909_v34, %v889_v44 }
 0x155   :  { %v910_v53 = vmul.f32 %v905_v50, %v890_v43  ;;  %v901_v4 = vmul.f32 0.044715, %v891_v9  ;;  %v919_v62 = vmul.f32 0.7978846, %v914_v54  ;;  %v896_v45 = vmul.f32 0.5, %v891_v9 }
 0x157   :  { %v915_v1 = vadd.f32 %v910_v53, %v890_v43  ;;  %v906_v6 = vmul.f32 %v901_v4, %v891_v9  ;;  %1506 = vtanh.f32 %v919_v62 }
 0x159   :  { %v1503_v31 = vpop.eup %1502  ;;  %v920_v12 = vmul.f32 0.7978846, %v915_v1  ;;  %v911_v19 = vmul.f32 %v906_v6, %v891_v9 }
 0x15a   :  { %v927_v28 = vadd.f32 1.0, %v1503_v31 }
 0x15b   :  { %1508 = vtanh.f32 %v920_v12  ;;  %v916_v16 = vadd.f32 %v911_v19, %v891_v9 }
 0x15c   :  { %v932_v17 = vmul.f32 %v927_v28, %v892_v39 }
 0x15d   :  { %v1505_v15 = vpop.eup %1504  ;;  %v921_v18 = vmul.f32 0.7978846, %v916_v16 }
 0x15e   :  { %937 = vst [vmem:[%s1994_s3] sm:$0xff] %v932_v17  ;;  %v928_v22 = vadd.f32 1.0, %v1505_v15 }
 0x15f   :  { %1510 = vtanh.f32 %v921_v18 }
 0x160   :  { %v933_v23 = vmul.f32 %v928_v22, %v893_v21 }
 0x161   :  { %v1507_v24 = vpop.eup %1506 }
 0x162   :  { %938 = vst [vmem:[%s1994_s3 + $0x8] sm:$0xff] %v933_v23  ;;  %v929_v29 = vadd.f32 1.0, %v1507_v24 }
 0x164   :  { %v934_v0 = vmul.f32 %v929_v29, %v894_v25 }
 0x165   :  { %v1509_v30 = vpop.eup %1508 }
 0x166   :  { %v930_v35 = vadd.f32 1.0, %v1509_v30  ;;  %939 = vst [vmem:[%s1994_s3 + $0x10] sm:$0xff] %v934_v0 }
 0x168   :  { %v935_v36 = vmul.f32 %v930_v35, %v895_v32 }
 0x169   :  { %v1511_v42 = vpop.eup %1510 }
 0x16a   :  { %940 = vst [vmem:[%s1994_s3 + $0x18] sm:$0xff] %v935_v36  ;;  %v931_v48 = vadd.f32 1.0, %v1511_v42 }
 0x16c   :  { %v936_v49 = vmul.f32 %v931_v48, %v896_v45 }
 0x16e   :  { %941 = vst [vmem:[%s1994_s3 + $0x20] sm:$0xff] %v936_v49 }

// kernel: vit_forward.29
= control target key start
LH: loop header
LB: loop body
LE: loop exit
PB: predicated region body
PF: predicated region fallthrough
CT: control target
= control target key end

     0   :  { %v1157_v0 = vmov 0.0|0.0   ;;  %vm1158_vm0 = vmmov 0   ;;  %v1159_v10 = vmov 0.0   ;;  %s1500_s1 = inlined_call_operand.vmem [shape: f32[128,128], index: 1, kind: input, shape index: {}]   ;;  %s1501_s0 = inlined_call_operand.vmem [shape: f32[8,128], index: 0, kind: input, shape index: {}]   ;;  %s1502_s2 = inlined_call_operand.vmem [shape: f32[1,128], index: 2, kind: input, shape index: {}]   ;;  %s1503_s3 = inlined_call_operand.vmem [shape: f32[8,128], index: 3, kind: output, shape index: {}]  }
   0x1   :  { %1010 = vmatprep.subr.bf16.mxu0 %v1157_v0  ;;  %v21_v1 = vld [vmem:[%s1500_s1] sm:$0xff]  ;;  %v22_v2 = vld [vmem:[%s1500_s1 + $0x8] sm:$0xff]  ;;  %v23_v3 = vld [vmem:[%s1500_s1 + $0x10] sm:$0xff]  ;;  %1034 = vmatprep.subr.bf16.mxu1 %v1157_v0 }
   0x2   :  { %v38_v4 = vand.u32 4294901760, %v21_v1  ;;  %v41_v5 = vand.u32 4294901760, %v22_v2  ;;  %v24_v6 = vld [vmem:[%s1500_s1 + $0x18] sm:$0xff]  ;;  %v44_v7 = vand.u32 4294901760, %v23_v3  ;;  %v25_v8 = vld [vmem:[%s1500_s1 + $0x20] sm:$0xff]  ;;  %v26_v9 = vld [vmem:[%s1500_s1 + $0x28] sm:$0xff]  ;;  %832 = vmatprep.mubr.msk.f32.mxu0 %vm1158_vm0, %v1159_v10  ;;  %867 = vmatprep.mubr.msk.f32.mxu1 %vm1158_vm0, %v1159_v10 }
   0x3   :  { %v47_v11 = vand.u32 4294901760, %v24_v6  ;;  %v50_v12 = vand.u32 4294901760, %v25_v8  ;;  %v53_v13 = vand.u32 4294901760, %v26_v9  ;;  %v27_v14 = vld [vmem:[%s1500_s1 + $0x30] sm:$0xff]  ;;  %v28_v19 = vld [vmem:[%s1500_s1 + $0x38] sm:$0xff]  ;;  %v29_v20 = vld [vmem:[%s1500_s1 + $0x40] sm:$0xff] }
   0x4   :  { %v1207_v15 = vpack.c.bf16 %v41_v5, %v38_v4  ;;  %v1209_v16 = vsub.f32 %v21_v1, %v38_v4  ;;  %v1211_v17 = vsub.f32 %v22_v2, %v41_v5  ;;  %v1213_v18 = vsub.f32 %v23_v3, %v44_v7  ;;  %v30_v27 = vld [vmem:[%s1500_s1 + $0x48] sm:$0xff]  ;;  %v31_v40 = vld [vmem:[%s1500_s1 + $0x50] sm:$0xff]  ;;  %v32_v41 = vld [vmem:[%s1500_s1 + $0x58] sm:$0xff] }
   0x5   :  { %v1221_v21 = vpack.c.bf16 %v47_v11, %v44_v7  ;;  %v1223_v22 = vsub.f32 %v24_v6, %v47_v11  ;;  %v1226_v23 = vsub.f32 %v25_v8, %v50_v12  ;;  %v56_v26 = vand.u32 4294901760, %v27_v14  ;;  %v1272_v50 = vld [vmem:[%s1500_s1 + $0x60] sm:$0xff]  ;;  %v34_v59 = vld [vmem:[%s1500_s1 + $0x68] sm:$0xff]  ;;  %v35_v1 = vld [vmem:[%s1500_s1 + $0x70] sm:$0xff] }
   0x6   :  { %1012 = vmatpush3.bf16.msra.mxu0 %v1207_v15  ;;  %v131_v24 = vand.u32 4294901760, %v1209_v16  ;;  %v138_v25 = vand.u32 4294901760, %v1211_v17  ;;  %v59_v28 = vand.u32 4294901760, %v28_v19  ;;  %v145_v29 = vand.u32 4294901760, %v1213_v18  ;;  %v36_v6 = vld [vmem:[%s1500_s1 + $0x78] sm:$0xff] }
   0x7   :  { %1013 = vmatprep.subr.bf16.mxu0 %v1157_v0  ;;  %v152_v30 = vand.u32 4294901760, %v1223_v22  ;;  %v62_v31 = vand.u32 4294901760, %v29_v20  ;;  %v1236_v32 = vsub.f32 %v26_v9, %v53_v13  ;;  %v1244_v35 = vsub.f32 %v27_v14, %v56_v26 }
   0x8   :  { %v132_v33 = vsub.f32 %v1209_v16, %v131_v24  ;;  %v139_v34 = vsub.f32 %v1211_v17, %v138_v25  ;;  %v1246_v36 = vsub.f32 %v28_v19, %v59_v28  ;;  %v146_v37 = vsub.f32 %v1213_v18, %v145_v29 }
   0x9   :  { %v153_v38 = vsub.f32 %v1223_v22, %v152_v30  ;;  %v65_v39 = vand.u32 4294901760, %v30_v27  ;;  %v1261_v42 = vpack.c.bf16 %v53_v13, %v50_v12  ;;  %v1263_v45 = vpack.c.bf16 %v59_v28, %v56_v26 }
   0xa   :  { %1015 = vmatpush3.bf16.msra.mxu0 %v1221_v21  ;;  %v133_v43 = vand.u32 4294901760, %v132_v33  ;;  %v140_v44 = vand.u32 4294901760, %v139_v34  ;;  %v147_v46 = vand.u32 4294901760, %v146_v37  ;;  %v1266_v48 = vsub.f32 %v29_v20, %v62_v31 }
   0xb   :  { %1016 = vmatprep.subr.bf16.mxu0 %v1157_v0  ;;  %v154_v47 = vand.u32 4294901760, %v153_v38  ;;  %v159_v49 = vand.u32 4294901760, %v1226_v23  ;;  %v166_v52 = vand.u32 4294901760, %v1236_v32  ;;  %v68_v53 = vand.u32 4294901760, %v31_v40 }
   0xc   :  { %v1035_v51 = vpack.c.bf16 %v140_v44, %v133_v43  ;;  %v71_v54 = vand.u32 4294901760, %v32_v41  ;;  %v1275_v55 = vsub.f32 %v30_v27, %v65_v39  ;;  %v173_v57 = vand.u32 4294901760, %v1244_v35 }
   0xd   :  { %v160_v56 = vsub.f32 %v1226_v23, %v159_v49  ;;  %v180_v58 = vand.u32 4294901760, %v1246_v36  ;;  %v1038_v60 = vpack.c.bf16 %v154_v47, %v147_v46  ;;  %v1286_v61 = vpack.c.bf16 %v65_v39, %v62_v31  ;;  %v20_v31 = vld [vmem:[%s1501_s0] sm:$0xff] }
   0xe   :  { %1018 = vmatpush3.bf16.msra.mxu0 %v1261_v42  ;;  %1036 = vmatpush3.bf16.msra.mxu1 %v1035_v51  ;;  %v167_v62 = vsub.f32 %v1236_v32, %v166_v52  ;;  %v74_v63 = vand.u32 4294901760, %v1272_v50  ;;  %v1297_v3 = vsub.f32 %v31_v40, %v68_v53  ;;  %v174_v4 = vsub.f32 %v1244_v35, %v173_v57 }
   0xf   :  { %1019 = vmatprep.subr.bf16.mxu0 %v1157_v0  ;;  %1037 = vmatprep.subr.bf16.mxu1 %v1157_v0  ;;  %v161_v2 = vand.u32 4294901760, %v160_v56  ;;  %v181_v5 = vsub.f32 %v1246_v36, %v180_v58  ;;  %v1308_v8 = vsub.f32 %v32_v41, %v71_v54  ;;  %v77_v9 = vand.u32 4294901760, %v34_v59 }
  0x10   :  { %v168_v7 = vand.u32 4294901760, %v167_v62  ;;  %v187_v11 = vand.u32 4294901760, %v1266_v48  ;;  %v175_v12 = vand.u32 4294901760, %v174_v4  ;;  %v194_v14 = vand.u32 4294901760, %v1275_v55 }
  0x11   :  { %v182_v13 = vand.u32 4294901760, %v181_v5  ;;  %v80_v19 = vand.u32 4294901760, %v35_v1  ;;  %v1314_v26 = vsub.f32 %v1272_v50, %v74_v63  ;;  %v1316_v27 = vsub.f32 %v34_v59, %v77_v9 }
  0x12   :  { %1021 = vmatpush3.bf16.msra.mxu0 %v1263_v45  ;;  %1039 = vmatpush3.bf16.msra.mxu1 %v1038_v60  ;;  %v1041_v20 = vpack.c.bf16 %v168_v7, %v161_v2  ;;  %v83_v28 = vand.u32 4294901760, %v36_v6  ;;  %v188_v33 = vsub.f32 %v1266_v48, %v187_v11  ;;  %v195_v34 = vsub.f32 %v1275_v55, %v194_v14 }
  0x13   :  { %1022 = vmatprep.subr.bf16.mxu0 %v1157_v0  ;;  %1040 = vmatprep.subr.bf16.mxu1 %v1157_v0  ;;  %v201_v37 = vand.u32 4294901760, %v1297_v3  ;;  %v1330_v38 = vpack.c.bf16 %v71_v54, %v68_v53  ;;  %v1044_v39 = vpack.c.bf16 %v182_v13, %v175_v12  ;;  %v1332_v40 = vsub.f32 %v35_v1, %v80_v19 }
  0x14   :  { %v208_v41 = vand.u32 4294901760, %v1308_v8  ;;  %v189_v43 = vand.u32 4294901760, %v188_v33  ;;  %v196_v44 = vand.u32 4294901760, %v195_v34  ;;  %v1338_v47 = vand.u32 4294901760, %v20_v31 }
  0x15   :  { %v202_v46 = vsub.f32 %v1297_v3, %v201_v37  ;;  %v1341_v50 = vsub.f32 %v36_v6, %v83_v28  ;;  %v215_v53 = vand.u32 4294901760, %v1314_v26  ;;  %v222_v54 = vand.u32 4294901760, %v1316_v27 }
  0x16   :  { %1024 = vmatpush3.bf16.msra.mxu0 %v1286_v61  ;;  %1042 = vmatpush3.bf16.msra.mxu1 %v1041_v20  ;;  %v209_v51 = vsub.f32 %v1308_v8, %v208_v41  ;;  %v1351_v56 = vsub.f32 %v20_v31, %v1338_v47  ;;  %v1353_v59 = vpack.c.bf16 %v77_v9, %v74_v63  ;;  %v229_v2 = vand.u32 4294901760, %v1332_v40 }
  0x17   :  { %1025 = vmatprep.subr.bf16.mxu0 %v1157_v0  ;;  %1043 = vmatprep.subr.bf16.mxu1 %v1157_v0  ;;  %v1047_v60 = vpack.c.bf16 %v196_v44, %v189_v43  ;;  %v203_v62 = vand.u32 4294901760, %v202_v46  ;;  %v216_v5 = vsub.f32 %v1314_v26, %v215_v53  ;;  %v223_v6 = vsub.f32 %v1316_v27, %v222_v54 }
  0x18   :  { %v120_v1 = vand.u32 4294901760, %v1351_v56  ;;  %v210_v4 = vand.u32 4294901760, %v209_v51  ;;  %v236_v63 = vand.u32 4294901760, %v1341_v50  ;;  %v1367_v7 = vpack.c.bf16 %v83_v28, %v80_v19 }
  0x19   :  { %v230_v12 = vsub.f32 %v1332_v40, %v229_v2  ;;  %v217_v20 = vand.u32 4294901760, %v216_v5  ;;  %v224_v31 = vand.u32 4294901760, %v223_v6  ;;  %v1059_v34 = vpack.c.bf16 %v1211_v17, %v1209_v16 }
  0x1a   :  { %1027 = vmatpush3.bf16.msra.mxu0 %v1330_v38  ;;  %1045 = vmatpush3.bf16.msra.mxu1 %v1044_v39  ;;  %v121_v9 = vsub.f32 %v1351_v56, %v120_v1  ;;  %v1050_v13 = vpack.c.bf16 %v210_v4, %v203_v62  ;;  %v237_v33 = vsub.f32 %v1341_v50, %v236_v63 }
  0x1b   :  { %1028 = vmatprep.subr.bf16.mxu0 %v1157_v0  ;;  %1046 = vmatprep.subr.bf16.mxu1 %v1157_v0  ;;  %v1053_v28 = vpack.c.bf16 %v224_v31, %v217_v20  ;;  %v231_v39 = vand.u32 4294901760, %v230_v12  ;;  %v1062_v46 = vpack.c.bf16 %v1223_v22, %v1213_v18  ;;  %v1065_v51 = vpack.c.bf16 %v1236_v32, %v1226_v23 }
  0x1c   :  { %v122_v19 = vand.u32 4294901760, %v121_v9  ;;  %v238_v43 = vand.u32 4294901760, %v237_v33  ;;  %v1071_v62 = vpack.c.bf16 %v1275_v55, %v1266_v48  ;;  %v1074_v4 = vpack.c.bf16 %v1308_v8, %v1297_v3 }
  0x1d   :  { %v1077_v5 = vpack.c.bf16 %v1316_v27, %v1314_v26  ;;  %v1080_v6 = vpack.c.bf16 %v1341_v50, %v1332_v40  ;;  %v1107_v9 = vpack.c.bf16 %v138_v25, %v131_v24  ;;  %v1110_v12 = vpack.c.bf16 %v152_v30, %v145_v29 }
  0x1e   :  { %1030 = vmatpush3.bf16.msra.mxu0 %v1353_v59  ;;  %1048 = vmatpush3.bf16.msra.mxu1 %v1047_v60  ;;  %v1056_v44 = vpack.c.bf16 %v238_v43, %v231_v39  ;;  %v1068_v60 = vpack.c.bf16 %v1246_v36, %v1244_v35  ;;  %v1113_v16 = vpack.c.bf16 %v166_v52, %v159_v49 }
  0x1f   :  { %1031 = vmatprep.subr.bf16.mxu0 %v1157_v0  ;;  %1049 = vmatprep.subr.bf16.mxu1 %v1157_v0  ;;  %v1116_v17 = vpack.c.bf16 %v180_v58, %v173_v57  ;;  %v1125_v18 = vpack.c.bf16 %v222_v54, %v215_v53 }
  0x22   :  { %1033 = vmatpush3.bf16.msra.mxu0 %v1367_v7  ;;  %1051 = vmatpush3.bf16.msra.mxu1 %v1050_v13 }
  0x23   :  { %1052 = vmatprep.subr.bf16.mxu1 %v1157_v0  ;;  %1058 = vmatprep.subr.bf16.mxu0 %v1157_v0 }
  0x25   :  { %833 = vmatmul.mubr.f32.vlgmr.msra.gmra.mrb[0].mxu0 %v122_v19 }
  0x26   :  { %1054 = vmatpush3.bf16.msra.mxu1 %v1053_v28  ;;  %1060 = vmatpush3.bf16.msra.mxu0 %v1059_v34 }
  0x27   :  { %1055 = vmatprep.subr.bf16.mxu1 %v1157_v0  ;;  %1061 = vmatprep.subr.bf16.mxu0 %v1157_v0 }
  0x28   :  { %902 = vmatprep.mubr.msk.f32.mxu0 %vm1158_vm0, %v1159_v10 }
  0x2a   :  { %1057 = vmatpush3.bf16.msra.mxu1 %v1056_v44  ;;  %1063 = vmatpush3.bf16.msra.mxu0 %v1062_v46 }
  0x2b   :  { %1064 = vmatprep.subr.bf16.mxu0 %v1157_v0  ;;  %1082 = vmatprep.subr.bf16.mxu1 %v1157_v0 }
  0x2d   :  { %868 = vmatmul.mubr.f32.vlgmr.msra.gmra.mrb[0].mxu1 %v1338_v47 }
  0x2e   :  { %1066 = vmatpush3.bf16.msra.mxu0 %v1065_v51  ;;  %1084 = vmatpush3.bf16.msra.mxu1 %v1207_v15 }
  0x2f   :  { %1067 = vmatprep.subr.bf16.mxu0 %v1157_v0  ;;  %1085 = vmatprep.subr.bf16.mxu1 %v1157_v0 }
  0x30   :  { %937 = vmatprep.mubr.msk.f32.mxu1 %vm1158_vm0, %v1159_v10 }
  0x32   :  { %1069 = vmatpush3.bf16.msra.mxu0 %v1068_v60  ;;  %1087 = vmatpush3.bf16.msra.mxu1 %v1221_v21 }
  0x33   :  { %1070 = vmatprep.subr.bf16.mxu0 %v1157_v0  ;;  %1088 = vmatprep.subr.bf16.mxu1 %v1157_v0 }
  0x36   :  { %1072 = vmatpush3.bf16.msra.mxu0 %v1071_v62  ;;  %1090 = vmatpush3.bf16.msra.mxu1 %v1261_v42 }
  0x37   :  { %1073 = vmatprep.subr.bf16.mxu0 %v1157_v0  ;;  %1091 = vmatprep.subr.bf16.mxu1 %v1157_v0 }
  0x3a   :  { %1075 = vmatpush3.bf16.msra.mxu0 %v1074_v4  ;;  %1093 = vmatpush3.bf16.msra.mxu1 %v1263_v45 }
  0x3b   :  { %1076 = vmatprep.subr.bf16.mxu0 %v1157_v0  ;;  %1094 = vmatprep.subr.bf16.mxu1 %v1157_v0 }
  0x3e   :  { %1078 = vmatpush3.bf16.msra.mxu0 %v1077_v5  ;;  %1096 = vmatpush3.bf16.msra.mxu1 %v1286_v61 }
  0x3f   :  { %1079 = vmatprep.subr.bf16.mxu0 %v1157_v0  ;;  %1097 = vmatprep.subr.bf16.mxu1 %v1157_v0 }
  0x42   :  { %1081 = vmatpush3.bf16.msra.mxu0 %v1080_v6  ;;  %1099 = vmatpush3.bf16.msra.mxu1 %v1330_v38 }
  0x43   :  { %1100 = vmatprep.subr.bf16.mxu1 %v1157_v0  ;;  %1106 = vmatprep.subr.bf16.mxu0 %v1157_v0 }
  0x45   :  { %903 = vmatmul.mubr.f32.vlgmr.msra.gmra.mrb[2].mxu0 %v1351_v56 }
  0x46   :  { %1102 = vmatpush3.bf16.msra.mxu1 %v1353_v59  ;;  %1108 = vmatpush3.bf16.msra.mxu0 %v1107_v9 }
  0x47   :  { %1103 = vmatprep.subr.bf16.mxu1 %v1157_v0  ;;  %1109 = vmatprep.subr.bf16.mxu0 %v1157_v0 }
  0x48   :  { %972 = vmatprep.mubr.msk.f32.mxu0 %vm1158_vm0, %v1159_v10 }
  0x4a   :  { %1105 = vmatpush3.bf16.msra.mxu1 %v1367_v7  ;;  %1111 = vmatpush3.bf16.msra.mxu0 %v1110_v12 }
  0x4b   :  { %1112 = vmatprep.subr.bf16.mxu0 %v1157_v0  ;;  %1130 = vmatprep.subr.bf16.mxu1 %v1157_v0 }
  0x4d   :  { %938 = vmatmul.mubr.f32.vlgmr.msra.gmra.mrb[2].mxu1 %v120_v1 }
  0x4e   :  { %1114 = vmatpush3.bf16.msra.mxu0 %v1113_v16  ;;  %1132 = vmatpush3.bf16.msra.mxu1 %v1207_v15  ;;  %v1119_v15 = vpack.c.bf16 %v194_v14, %v187_v11 }
  0x4f   :  { %1115 = vmatprep.subr.bf16.mxu0 %v1157_v0  ;;  %1133 = vmatprep.subr.bf16.mxu1 %v1157_v0 }
  0x50   :  { %1007 = vmatprep.mubr.msk.f32.mxu1 %vm1158_vm0, %v1159_v10  ;;  %v1122_v10 = vpack.c.bf16 %v208_v41, %v201_v37 }
  0x52   :  { %1117 = vmatpush3.bf16.msra.mxu0 %v1116_v17  ;;  %1135 = vmatpush3.bf16.msra.mxu1 %v1221_v21  ;;  %v1128_v21 = vpack.c.bf16 %v236_v63, %v229_v2 }
  0x53   :  { %1118 = vmatprep.subr.bf16.mxu0 %v1157_v0  ;;  %1136 = vmatprep.subr.bf16.mxu1 %v1157_v0 }
  0x56   :  { %1120 = vmatpush3.bf16.msra.mxu0 %v1119_v15  ;;  %1138 = vmatpush3.bf16.msra.mxu1 %v1261_v42 }
  0x57   :  { %1121 = vmatprep.subr.bf16.mxu0 %v1157_v0  ;;  %1139 = vmatprep.subr.bf16.mxu1 %v1157_v0 }
  0x5a   :  { %1123 = vmatpush3.bf16.msra.mxu0 %v1122_v10  ;;  %1141 = vmatpush3.bf16.msra.mxu1 %v1263_v45 }
  0x5b   :  { %1124 = vmatprep.subr.bf16.mxu0 %v1157_v0  ;;  %1142 = vmatprep.subr.bf16.mxu1 %v1157_v0 }
  0x5e   :  { %1126 = vmatpush3.bf16.msra.mxu0 %v1125_v18  ;;  %1144 = vmatpush3.bf16.msra.mxu1 %v1286_v61 }
  0x5f   :  { %1127 = vmatprep.subr.bf16.mxu0 %v1157_v0  ;;  %1145 = vmatprep.subr.bf16.mxu1 %v1157_v0 }
  0x62   :  { %1129 = vmatpush3.bf16.msra.mxu0 %v1128_v21  ;;  %1147 = vmatpush3.bf16.msra.mxu1 %v1330_v38 }
  0x63   :  { %1148 = vmatprep.subr.bf16.mxu1 %v1157_v0 }
  0x65   :  { %973 = vmatmul.mubr.f32.vlgmr.msra.gmra.mrb[4].mxu0 %v1338_v47 }
  0x66   :  { %1150 = vmatpush3.bf16.msra.mxu1 %v1353_v59 }
  0x67   :  { %1151 = vmatprep.subr.bf16.mxu1 %v1157_v0  ;;  %v697_v0 = vld [vmem:[%s1502_s2] ss:$0 sm:$0xff] }
  0x6a   :  { %1153 = vmatpush3.bf16.msra.mxu1 %v1367_v7 }
  0x6d   :  { %1008 = vmatmul.mubr.f32.vlgmr.msra.gmra.mrb[4].mxu1 %v1338_v47 }
  0xf8   :  { %v124_v22 = vpop.f32.mrb[0].mxu0 }
  0xf9   :  { %v834_v23 = vpop.f32.mrb[1].mxu0 }
 0x100   :  { %v275_v24 = vpop.f32.mrb[0].mxu1 }
 0x101   :  { %v276_v25 = vadd.f32 %v275_v24, %v124_v22  ;;  %v869_v29 = vpop.f32.mrb[1].mxu1 }
 0x118   :  { %v379_v30 = vpop.f32.mrb[2].mxu0 }
 0x119   :  { %v380_v32 = vadd.f32 %v379_v30, %v276_v25  ;;  %v904_v35 = vpop.f32.mrb[3].mxu0 }
 0x120   :  { %v468_v36 = vpop.f32.mrb[2].mxu1 }
 0x121   :  { %v469_v42 = vadd.f32 %v468_v36, %v380_v32  ;;  %v939_v45 = vpop.f32.mrb[3].mxu1 }
 0x138   :  { %v587_v48 = vpop.f32.mrb[4].mxu0 }
 0x139   :  { %v588_v49 = vadd.f32 %v587_v48, %v469_v42  ;;  %v974_v52 = vpop.f32.mrb[5].mxu0 }
 0x140   :  { %v674_v55 = vpop.f32.mrb[4].mxu1 }
 0x141   :  { %v675_v57 = vadd.f32 %v674_v55, %v588_v49  ;;  %v1009_v58 = vpop.f32.mrb[5].mxu1 }
 0x143   :  { %v691_v61 = vadd.f32 %v697_v0, %v675_v57 }
 0x145   :  { %692 = vst [vmem:[%s1503_s3] sm:$0xff] %v691_v61 }

// kernel: vit_forward.18
= control target key start
LH: loop header
LB: loop body
LE: loop exit
PB: predicated region body
PF: predicated region fallthrough
CT: control target
= control target key end

     0   :  { %s9089_s12 = smov 0   ;;  %s10373_s0 = inlined_call_operand.vmem [shape: f32[2,17,96], index: 0, kind: input, shape index: {}]   ;;  %s10374_s1 = inlined_call_operand.vmem [shape: f32[4,8,32], index: 1, kind: input, shape index: {}]   ;;  %s10375_s2 = inlined_call_operand.vmem [shape: f32[1,32], index: 2, kind: input, shape index: {}]   ;;  %s10376_s3 = inlined_call_operand.vmem [shape: f32[2,17,32], index: 3, kind: output, shape index: {}]  }
   0x1 LB: > { %s7202_s13 = sadd.s32 4294967295, %s9053_s12   ;;  %p7206_p0 = scmp.ge.s32.totalorder %s9053_s12, 1  ;;  %s9053_s12 = sphi %s9089_s12, %s13_s12  }
   0x2   : > { %p137_p1 = scmp.lt.s32.totalorder %s9053_s12, 3 }
   0x4   : > { %p138_p2 = pnand %p7206_p0, %p137_p1 }
   0x5   : > { %p161_p3 = scmp.lt.s32.totalorder (!%p138_p2), %s7202_s13, 1  ;;  %v9055_v0 = vmov (!%p138_p2), 0.0|0.0   ;;  %s9056_s18 = smov (!%p138_p2), 96   ;;  %vm9057_vm0 = vmmov (!%p138_p2), 0   ;;  %v9058_v4 = vmov (!%p138_p2), 0.0   ;;  %vm183_vm1 = vcmask (!%p138_p2), 64512  }
   0x6   : > { %141 = sbr.rel (%p138_p2) target bundleno = 3919 (0xf4f), region = 32  ;;  %8583 = vmatprep.subr.bf16.mxu0 (!%p138_p2), %v9055_v0  ;;  %8601 = vmatprep.subr.bf16.mxu1 (!%p138_p2), %v9055_v0  ;;  %vm757_vm2 = vcmask (!%p138_p2), 138240   ;;  %vm764_vm3 = vcmask (!%p138_p2), 131072   ;;  %s9059_s19 = smov (!%p138_p2), 64   ;;  %vm809_vm4 = vcmask (!%p138_p2), 1040384   ;;  %vm7142_vm5 = vcmask (!%p138_p2), 261120  }
   0x7   : > { %7605 = vmatprep.mubr.msk.f32.mxu0 (!%p138_p2), %vm9057_vm0, %v9058_v4  ;;  %7695 = vmatprep.mubr.msk.f32.mxu1 (!%p138_p2), %vm9057_vm0, %v9058_v4  ;;  %s9060_s20 = smov (!%p138_p2), 88   ;;  %s9061_s21 = smov (!%p138_p2), 120   ;;  %vm7145_vm6 = vcmask (!%p138_p2), 253952  }
   0x8   : > { %s9062_s22 = smov (!%p138_p2), 56   ;;  %s9063_s23 = smov (!%p138_p2), 80  }
   0x9   : > { %s9064_s24 = smov (!%p138_p2), 112   ;;  %s9065_s29 = smov (!%p138_p2), 48  }
   0xa   : > { %s9066_s30 = smov (!%p138_p2), 72   ;;  %s9067_s4 = smov (!%p138_p2), 104  }
   0xb   : > { %s9068_s7 = smov (!%p138_p2), 40  }
   0xd   : > { %s10378_s13 = smov (!%p161_p3, %s7202_s13), 1 }
   0xe   : > { %s8970_s14 = smul.u32 24, %s10378_s13 }
  0x10   : > { %s9107_s17 = scalar_lea.vmem %s10373_s0, %s8970_s14 }
  0x11   : > { %v9110_v1 = vld [vmem:[%s9107_s17] sm:$0xff]  ;;  %v9113_v2 = vld [vmem:[%s9107_s17 + $0x10] sm:$0x1]  ;;  %v9118_v3 = vld [vmem:[%s9107_s17 + $0x8] sm:$0xff] }
  0x12   : > { %177 = vrot.lane.b32.xlu0 %v9110_v1, %s9056_s18  ;;  %181 = vrot.lane.b32.xlu1 %v9113_v2, %s9056_s18  ;;  %v184_v5 = vsel %vm183_vm1, %v9110_v1, 0  ;;  %v186_v10 = vsel %vm183_vm1, %v9118_v3, 0  ;;  %v188_v18 = vsel %vm183_vm1, %v9113_v2, 0 }
  0x13   : > { %v9128_v8 = vand.u32 4294901760, %v184_v5  ;;  %v9136_v14 = vand.u32 4294901760, %v186_v10  ;;  %v9149_v24 = vand.u32 4294901760, %v188_v18 }
  0x15   : > { %v9134_v13 = vsub.f32 %v184_v5, %v9128_v8  ;;  %v9147_v23 = vsub.f32 %v186_v10, %v9136_v14  ;;  %v285_v31 = vsub.f32 %v188_v18, %v9149_v24 }
  0x16   : > { %179 = vrot.lane.b32.xlu0 %v9118_v3, %s9056_s18 }
  0x17   : > { %v266_v22 = vand.u32 4294901760, %v9134_v13  ;;  %v276_v30 = vand.u32 4294901760, %v9147_v23  ;;  %v286_v37 = vand.u32 4294901760, %v285_v31 }
  0x19   : > { %v267_v29 = vsub.f32 %v9134_v13, %v266_v22  ;;  %v277_v36 = vsub.f32 %v9147_v23, %v276_v30  ;;  %v287_v42 = vsub.f32 %v285_v31, %v286_v37 }
  0x1b   : > { %v268_v35 = vand.u32 4294901760, %v267_v29  ;;  %v278_v41 = vand.u32 4294901760, %v277_v36  ;;  %v288_v44 = vand.u32 4294901760, %v287_v42 }
  0x84   : > { %v178_v6 = vpop.permute.xlu0 %177  ;;  %v182_v17 = vpop.permute.xlu1 %181 }
  0x85   : > { %v190_v7 = vsel %vm183_vm1, %v178_v6, 0  ;;  %v194_v21 = vsel %vm183_vm1, %v182_v17, 0 }
  0x86   : > { %v197_v9 = vand.u32 4294901760, %v190_v7  ;;  %v9154_v28 = vand.u32 4294901760, %v194_v21 }
  0x88   : > { %v180_v11 = vpop.permute.xlu0 %179  ;;  %v9138_v15 = vsub.f32 %v190_v7, %v197_v9  ;;  %v310_v34 = vsub.f32 %v194_v21, %v9154_v28 }
  0x89   : > { %v192_v12 = vsel %vm183_vm1, %v180_v11, 0 }
  0x8a   : > { %v200_v16 = vand.u32 4294901760, %v192_v12  ;;  %v297_v25 = vand.u32 4294901760, %v9138_v15  ;;  %v311_v39 = vand.u32 4294901760, %v310_v34 }
  0x8c   : > { %v9142_v19 = vpack.c.bf16 %v200_v16, %v197_v9  ;;  %v303_v20 = vsub.f32 %v192_v12, %v200_v16  ;;  %v298_v32 = vsub.f32 %v9138_v15, %v297_v25  ;;  %v312_v43 = vsub.f32 %v310_v34, %v311_v39 }
  0x8e   : > { %v304_v26 = vand.u32 4294901760, %v303_v20  ;;  %8585 = vmatpush3.bf16.xpose.msra.mxu0 %v9142_v19  ;;  %v299_v38 = vand.u32 4294901760, %v298_v32  ;;  %v313_v45 = vand.u32 4294901760, %v312_v43  ;;  %v8590_v46 = vpack.c.bf16 %v303_v20, %v9138_v15 }
  0x8f   : > { %7603 = vmatprep.subr.mxu0 %v9058_v4 }
  0x90   : > { %v305_v27 = vsub.f32 %v303_v20, %v304_v26  ;;  %v8596_v47 = vpack.c.bf16 %v304_v26, %v297_v25 }
  0x92   : > { %v306_v33 = vand.u32 4294901760, %v305_v27 }
  0x94   : > { %v8587_v40 = vpack.c.bf16 %v306_v33, %v299_v38 }
  0x96   : > { %7604 = vmatpush3.xpose.msra.mxu0 %v9154_v28 }
  0x97   : > { %8586 = vmatprep.subr.bf16.mxu0 %v9055_v0 }
  0x99   : > { %7606 = vmatmul.mubr.f32.vlgmr.msra.gmra.mrb[0].mxu0 %v268_v35 }
  0x9a   : > { %8588 = vmatpush3.bf16.xpose.msra.mxu0 %v8587_v40  ;;  %7608 = vmatprep.mubr.msk.f32.mxu0 %vm9057_vm0, %v9058_v4 }
  0x9b   : > { %7618 = vmatprep.subr.mxu0 %v9058_v4 }
  0x9d   : > { %7609 = vmatmul.mubr.f32.gmra.mrb[2].mxu0 %v278_v41 }
  0x9e   : > { %7611 = vmatprep.mubr.msk.f32.mxu0 %vm9057_vm0, %v9058_v4 }
  0xa1   : > { %7612 = vmatmul.mubr.f32.gmra.mrb[4].mxu0 %v288_v44 }
  0xa2   : > { %7619 = vmatpush3.xpose.msra.mxu0 %v313_v45  ;;  %7620 = vmatprep.mubr.msk.f32.mxu0 %vm9057_vm0, %v9058_v4 }
  0xa3   : > { %8589 = vmatprep.subr.bf16.mxu0 %v9055_v0 }
  0xa5   : > { %7621 = vmatmul.mubr.f32.vlgmr.msra.gmra.mrb[0].mxu0 %v9128_v8 }
  0xa6   : > { %8591 = vmatpush3.bf16.xpose.msra.mxu0 %v8590_v46  ;;  %7623 = vmatprep.mubr.msk.f32.mxu0 %vm9057_vm0, %v9058_v4 }
  0xa7   : > { %7633 = vmatprep.subr.mxu0 %v9058_v4 }
  0xa9   : > { %7624 = vmatmul.mubr.f32.gmra.mrb[2].mxu0 %v9136_v14 }
  0xaa   : > { %7626 = vmatprep.mubr.msk.f32.mxu0 %vm9057_vm0, %v9058_v4 }
  0xad   : > { %7627 = vmatmul.mubr.f32.gmra.mrb[4].mxu0 %v9149_v24 }
  0xae   : > { %7634 = vmatpush3.xpose.msra.mxu0 %v310_v34  ;;  %7635 = vmatprep.mubr.msk.f32.mxu0 %vm9057_vm0, %v9058_v4 }
  0xaf   : > { %8592 = vmatprep.subr.bf16.mxu0 %v9055_v0 }
  0xb1   : > { %7636 = vmatmul.mubr.f32.vlgmr.msra.gmra.mrb[0].mxu0 %v9134_v13 }
  0xb2   : > { %8594 = vmatpush3.bf16.xpose.msra.mxu0 %v9142_v19  ;;  %7638 = vmatprep.mubr.msk.f32.mxu0 %vm9057_vm0, %v9058_v4 }
  0xb3   : > { %7648 = vmatprep.subr.mxu0 %v9058_v4 }
  0xb5   : > { %7639 = vmatmul.mubr.f32.gmra.mrb[2].mxu0 %v9147_v23 }
  0xb6   : > { %7641 = vmatprep.mubr.msk.f32.mxu0 %vm9057_vm0, %v9058_v4 }
  0xb9   : > { %7642 = vmatmul.mubr.f32.gmra.mrb[4].mxu0 %v285_v31 }
  0xba   : > { %7649 = vmatpush3.xpose.msra.mxu0 %v9154_v28  ;;  %7650 = vmatprep.mubr.msk.f32.mxu0 %vm9057_vm0, %v9058_v4 }
  0xbb   : > { %8595 = vmatprep.subr.bf16.mxu0 %v9055_v0 }
  0xbd   : > { %7651 = vmatmul.mubr.f32.vlgmr.msra.gmra.mrb[0].mxu0 %v266_v22 }
  0xbe   : > { %8597 = vmatpush3.bf16.xpose.msra.mxu0 %v8596_v47  ;;  %7653 = vmatprep.mubr.msk.f32.mxu0 %vm9057_vm0, %v9058_v4 }
  0xbf   : > { %7663 = vmatprep.subr.mxu0 %v9058_v4 }
  0xc1   : > { %7654 = vmatmul.mubr.f32.gmra.mrb[2].mxu0 %v276_v30 }
  0xc2   : > { %7656 = vmatprep.mubr.msk.f32.mxu0 %vm9057_vm0, %v9058_v4 }
  0xc5   : > { %7657 = vmatmul.mubr.f32.gmra.mrb[4].mxu0 %v286_v37 }
  0xc6   : > { %7664 = vmatpush3.xpose.msra.mxu0 %v311_v39  ;;  %7665 = vmatprep.mubr.msk.f32.mxu0 %vm9057_vm0, %v9058_v4 }
  0xc7   : > { %8598 = vmatprep.subr.bf16.mxu0 %v9055_v0 }
  0xc9   : > { %7666 = vmatmul.mubr.f32.vlgmr.msra.gmra.mrb[0].mxu0 %v9128_v8 }
  0xca   : > { %8600 = vmatpush3.bf16.xpose.msra.mxu0 %v9142_v19  ;;  %7668 = vmatprep.mubr.msk.f32.mxu0 %vm9057_vm0, %v9058_v4 }
  0xcb   : > { %7678 = vmatprep.subr.mxu0 %v9058_v4 }
  0xcd   : > { %7669 = vmatmul.mubr.f32.gmra.mrb[2].mxu0 %v9136_v14 }
  0xce   : > { %7671 = vmatprep.mubr.msk.f32.mxu0 %vm9057_vm0, %v9058_v4 }
  0xd1   : > { %7672 = vmatmul.mubr.f32.gmra.mrb[4].mxu0 %v9149_v24 }
  0xd2   : > { %7679 = vmatpush3.xpose.msra.mxu0 %v9154_v28  ;;  %7680 = vmatprep.mubr.msk.f32.mxu0 %vm9057_vm0, %v9058_v4 }
  0xd3   : > { %8637 = vmatprep.subr.bf16.mxu0 %v9055_v0 }
  0xd5   : > { %7681 = vmatmul.mubr.f32.vlgmr.msra.gmra.mrb[0].mxu0 %v9128_v8 }
  0xd6   : > { %7683 = vmatprep.mubr.msk.f32.mxu0 %vm9057_vm0, %v9058_v4 }
  0xd9   : > { %7684 = vmatmul.mubr.f32.gmra.mrb[2].mxu0 %v9136_v14 }
  0xda   : > { %7686 = vmatprep.mubr.msk.f32.mxu0 %vm9057_vm0, %v9058_v4 }
  0xdd   : > { %7687 = vmatmul.mubr.f32.gmra.mrb[4].mxu0 %v9149_v24 }
  0xde   : > { %7875 = vmatprep.mubr.msk.f32.mxu0 %vm9057_vm0, %v9058_v4 }
 0x1a8   : > { %v738_v48 = vpop.f32.mrb[0].mxu0 }
 0x1a9   : > { %v754_v49 = vmul.f32 0.35355338, %v738_v48  ;;  %v7682_v50 = vpop.f32.mrb[1].mxu0 }
 0x1ab   : > { %v758_v51 = vsel %vm757_vm2, %v754_v49, -inf }
 0x1ac   : > { %759 = vmax.xlane.f32.xlu1 %v758_v51  ;;  %v744_v52 = vpop.f32.mrb[2].mxu0 }
 0x1ad   : > { %v755_v53 = vmul.f32 0.35355338, %v744_v52  ;;  %v7685_v54 = vpop.f32.mrb[3].mxu0 }
 0x1af   : > { %v761_v55 = vsel %vm757_vm2, %v755_v53, -inf }
 0x1b0   : > { %762 = vmax.xlane.f32.xlu0 %v761_v55  ;;  %v750_v56 = vpop.f32.mrb[4].mxu0 }
 0x1b1   : > { %v756_v57 = vmul.f32 0.35355338, %v750_v56  ;;  %v7688_v58 = vpop.f32.mrb[5].mxu0 }
 0x1b3   : > { %v765_v59 = vsel %vm764_vm3, %v756_v57, -inf }
 0x1b4   : > { %766 = vmax.xlane.f32.xlu0 %v765_v59 }
 0x239   : > { %v760_v60 = vpop.xlane.xlu1 %759 }
 0x23a   : > { %v768_v61 = vsub.f32 %v754_v49, %v760_v60 }
 0x23c   : > { %v771_v62 = vmul.f32 1.442695, %v768_v61 }
 0x23d   : > { %v763_v63 = vpop.xlane.xlu0 %762 }
 0x23e   : > { %8993 = vpow2.f32 %v771_v62  ;;  %v769_v5 = vsub.f32 %v755_v53, %v763_v63 }
 0x240   : > { %v773_v6 = vmul.f32 1.442695, %v769_v5 }
 0x241   : > { %v767_v11 = vpop.xlane.xlu0 %766 }
 0x242   : > { %8995 = vpow2.f32 %v773_v6  ;;  %v770_v12 = vsub.f32 %v756_v57, %v767_v11 }
 0x244   : > { %v775_v13 = vmul.f32 1.442695, %v770_v12 }
 0x246   : > { %8997 = vpow2.f32 %v775_v13 }
 0x248   : > { %v8994_v7 = vpop.eup %8993 }
 0x249   : > { %v777_v8 = vsel %vm757_vm2, %v8994_v7, 0.0 }
 0x24a   : > { %778 = vadd.xlane.f32.xlu1 %v777_v8 }
 0x24c   : > { %v8996_v9 = vpop.eup %8995 }
 0x24d   : > { %v780_v10 = vsel %vm757_vm2, %v8996_v9, 0.0 }
 0x24e   : > { %781 = vadd.xlane.f32.xlu0 %v780_v10 }
 0x250   : > { %v8998_v14 = vpop.eup %8997 }
 0x251   : > { %v783_v15 = vsel %vm764_vm3, %v8998_v14, 0.0 }
 0x25b   : > { %794 = vrot.lane.b32.xlu1 %v9118_v3, %s9059_s19 }
 0x264   : > { %792 = vrot.lane.b32.xlu0 %v9110_v1, %s9059_s19 }
 0x268   : > { %1377 = vrot.lane.b32.xlu0 %v9110_v1, %s9060_s20 }
 0x26c   : > { %1371 = vrot.lane.b32.xlu0 %v9110_v1, %s9061_s21 }
 0x270   : > { %1381 = vrot.lane.b32.xlu0 %v9113_v2, %s9060_s20 }
 0x27f   : > { %784 = vadd.xlane.f32.xlu1 %v783_v15 }
 0x290   : > { %796 = vrot.lane.b32.xlu1 %v9113_v2, %s9059_s19 }
 0x294   : > { %1379 = vrot.lane.b32.xlu1 %v9118_v3, %s9060_s20 }
 0x298   : > { %1373 = vrot.lane.b32.xlu1 %v9118_v3, %s9061_s21 }
 0x29c   : > { %1375 = vrot.lane.b32.xlu1 %v9113_v2, %s9061_s21 }
 0x2d7   : > { %v779_v16 = vpop.xlane.xlu1 %778 }
 0x2d8   : > { %8999 = vrcp.f32 %v779_v16 }
 0x2db   : > { %v782_v17 = vpop.xlane.xlu0 %781  ;;  %v795_v18 = vpop.permute.xlu1 %794 }
 0x2dc   : > { %v816_v20 = vand.u32 4294901760, %v795_v18  ;;  %9001 = vrcp.f32 %v782_v17 }
 0x2de   : > { %v9251_v31 = vsub.f32 %v795_v18, %v816_v20 }
 0x2df   : > { %v793_v19 = vpop.permute.xlu0 %792 }
 0x2e0   : > { %v813_v21 = vand.u32 4294901760, %v793_v19  ;;  %v920_v35 = vand.u32 4294901760, %v9251_v31 }
 0x2e2   : > { %v9241_v22 = vpack.c.bf16 %v816_v20, %v813_v21  ;;  %v9000_v23 = vpop.eup %8999  ;;  %v9248_v29 = vsub.f32 %v793_v19, %v813_v21  ;;  %v921_v40 = vsub.f32 %v9251_v31, %v920_v35 }
 0x2e3   : > { %v789_v24 = vmul.f32 %v9000_v23, %v8994_v7  ;;  %v1378_v7 = vpop.permute.xlu0 %1377 }
 0x2e4   : > { %8603 = vmatpush3.bf16.msra.mxu1 %v9241_v22  ;;  %v913_v34 = vand.u32 4294901760, %v9248_v29  ;;  %v922_v46 = vand.u32 4294901760, %v921_v40  ;;  %v8608_v5 = vpack.c.bf16 %v9251_v31, %v9248_v29  ;;  %v1389_v10 = vsel %vm183_vm1, %v1378_v7, 0 }
 0x2e5   : > { %7693 = vmatprep.subr.mxu1 %v9058_v4  ;;  %v801_v27 = vsel %vm757_vm2, %v789_v24, 0 }
 0x2e6   : > { %v9002_v25 = vpop.eup %9001  ;;  %v9246_v28 = vand.u32 4294901760, %v801_v27  ;;  %v914_v38 = vsub.f32 %v9248_v29, %v913_v34  ;;  %v8614_v6 = vpack.c.bf16 %v920_v35, %v913_v34 }
 0x2e7   : > { %v790_v26 = vmul.f32 %v9002_v25, %v8996_v9  ;;  %v1372_v11 = vpop.permute.xlu0 %1371 }
 0x2e8   : > { %v9254_v32 = vsub.f32 %v801_v27, %v9246_v28  ;;  %v915_v43 = vand.u32 4294901760, %v914_v38  ;;  %v1383_v15 = vsel %vm183_vm1, %v1372_v11, 0 }
 0x2e9   : > { %v804_v30 = vsel %vm757_vm2, %v790_v26, 0  ;;  %v9344_v16 = vand.u32 4294901760, %v1383_v15 }
 0x2ea   : > { %v9256_v33 = vand.u32 4294901760, %v804_v30  ;;  %v882_v36 = vand.u32 4294901760, %v9254_v32  ;;  %v8605_v51 = vpack.c.bf16 %v922_v46, %v915_v43 }
 0x2eb   : > { %v9358_v23 = vsub.f32 %v1383_v15, %v9344_v16 }
 0x2ec   : > { %v9262_v37 = vsub.f32 %v804_v30, %v9256_v33  ;;  %v883_v41 = vsub.f32 %v9254_v32, %v882_v36 }
 0x2ed   : > { %v1465_v30 = vand.u32 4294901760, %v9358_v23 }
 0x2ee   : > { %v892_v42 = vand.u32 4294901760, %v9262_v37  ;;  %v884_v48 = vand.u32 4294901760, %v883_v41 }
 0x2f0   : > { %v893_v49 = vsub.f32 %v9262_v37, %v892_v42 }
 0x2f2   : > { %v894_v54 = vand.u32 4294901760, %v893_v49 }
 0x30c   : > { %v785_v39 = vpop.xlane.xlu1 %784 }
 0x30d   : > { %9003 = vrcp.f32 %v785_v39 }
 0x310   : > { %v797_v44 = vpop.permute.xlu1 %796 }
 0x311   : > { %v810_v45 = vsel %vm809_vm4, %v797_v44, 0 }
 0x312   : > { %v9275_v47 = vand.u32 4294901760, %v810_v45 }
 0x314   : > { %v926_v50 = vsub.f32 %v810_v45, %v9275_v47  ;;  %7694 = vmatpush3.msra.mxu1 %v9275_v47  ;;  %v1380_v8 = vpop.permute.xlu1 %1379 }
 0x315   : > { %7696 = vmatmul.mubr.f32.vlgmr.msra.gmra.mrb[0].mxu1 %v884_v48  ;;  %8604 = vmatprep.subr.bf16.mxu1 %v9055_v0  ;;  %v1391_v9 = vsel %vm183_vm1, %v1380_v8, 0 }
 0x316   : > { %v927_v52 = vand.u32 4294901760, %v926_v50  ;;  %8606 = vmatpush3.bf16.msra.mxu1 %v8605_v51  ;;  %7698 = vmatprep.mubr.msk.f32.mxu1 %vm9057_vm0, %v9058_v4  ;;  %v1399_v13 = vand.u32 4294901760, %v1391_v9 }
 0x317   : > { %v9004_v53 = vpop.eup %9003  ;;  %7708 = vmatprep.subr.mxu1 %v9058_v4 }
 0x318   : > { %v791_v55 = vmul.f32 %v9004_v53, %v8998_v14  ;;  %v928_v56 = vsub.f32 %v926_v50, %v927_v52  ;;  %v1374_v12 = vpop.permute.xlu1 %1373  ;;  %v1396_v14 = vand.u32 4294901760, %v1389_v10  ;;  %v9347_v17 = vsub.f32 %v1391_v9, %v1399_v13 }
 0x319   : > { %7699 = vmatmul.mubr.f32.gmra.mrb[2].mxu1 %v894_v54  ;;  %v1385_v19 = vsel %vm183_vm1, %v1374_v12, 0 }
 0x31a   : > { %v929_v57 = vand.u32 4294901760, %v928_v56  ;;  %7701 = vmatprep.mubr.msk.f32.mxu1 %vm9057_vm0, %v9058_v4  ;;  %v807_v58 = vsel %vm757_vm2, %v791_v55, 0  ;;  %v9349_v18 = vsub.f32 %v1389_v10, %v1396_v14  ;;  %v9353_v21 = vpack.c.bf16 %v1399_v13, %v1396_v14 }
 0x31b   : > { %v9287_v59 = vand.u32 4294901760, %v807_v58  ;;  %v9360_v24 = vand.u32 4294901760, %v1385_v19  ;;  %v1503_v25 = vand.u32 4294901760, %v9347_v17 }
 0x31c   : > { %7709 = vmatpush3.msra.mxu1 %v929_v57  ;;  %v1376_v20 = vpop.permute.xlu1 %1375  ;;  %v1496_v26 = vand.u32 4294901760, %v9349_v18  ;;  %v8626_v51 = vpack.c.bf16 %v9347_v17, %v9349_v18 }
 0x31d   : > { %v901_v60 = vsub.f32 %v807_v58, %v9287_v59  ;;  %8607 = vmatprep.subr.bf16.mxu1 %v9055_v0  ;;  %v1387_v27 = vsel %vm183_vm1, %v1376_v20, 0  ;;  %v9372_v31 = vsub.f32 %v1385_v19, %v9360_v24 }
 0x31e   : > { %v1497_v34 = vsub.f32 %v9349_v18, %v1496_v26 }
 0x31f   : > { %v902_v61 = vand.u32 4294901760, %v901_v60 }
 0x320   : > { %v1498_v40 = vand.u32 4294901760, %v1497_v34 }
 0x321   : > { %v903_v62 = vsub.f32 %v901_v60, %v902_v61 }
 0x323   : > { %v904_v63 = vand.u32 4294901760, %v903_v62 }
 0x325   : > { %7702 = vmatmul.mubr.f32.gmra.mrb[4].mxu1 %v904_v63 }
 0x326   : > { %7710 = vmatprep.mubr.msk.f32.mxu1 %vm9057_vm0, %v9058_v4 }
 0x329   : > { %7711 = vmatmul.mubr.f32.vlgmr.msra.gmra.mrb[0].mxu1 %v9246_v28 }
 0x32a   : > { %8609 = vmatpush3.bf16.msra.mxu1 %v8608_v5  ;;  %7713 = vmatprep.mubr.msk.f32.mxu1 %vm9057_vm0, %v9058_v4 }
 0x32b   : > { %7723 = vmatprep.subr.mxu1 %v9058_v4 }
 0x32d   : > { %7714 = vmatmul.mubr.f32.gmra.mrb[2].mxu1 %v9256_v33 }
 0x32e   : > { %7724 = vmatpush3.msra.mxu1 %v926_v50  ;;  %7716 = vmatprep.mubr.msk.f32.mxu1 %vm9057_vm0, %v9058_v4 }
 0x32f   : > { %8610 = vmatprep.subr.bf16.mxu1 %v9055_v0 }
 0x331   : > { %7717 = vmatmul.mubr.f32.gmra.mrb[4].mxu1 %v9287_v59 }
 0x332   : > { %7725 = vmatprep.mubr.msk.f32.mxu1 %vm9057_vm0, %v9058_v4 }
 0x335   : > { %7726 = vmatmul.mubr.f32.vlgmr.msra.gmra.mrb[0].mxu1 %v9254_v32  ;;  %v9374_v32 = vand.u32 4294901760, %v1387_v27 }
 0x336   : > { %8612 = vmatpush3.bf16.msra.mxu1 %v9241_v22  ;;  %7728 = vmatprep.mubr.msk.f32.mxu1 %vm9057_vm0, %v9058_v4 }
 0x337   : > { %7738 = vmatprep.subr.mxu1 %v9058_v4  ;;  %v1484_v38 = vsub.f32 %v1387_v27, %v9374_v32 }
 0x339   : > { %7729 = vmatmul.mubr.f32.gmra.mrb[2].mxu1 %v9262_v37  ;;  %v1475_v37 = vand.u32 4294901760, %v9372_v31 }
 0x33a   : > { %7739 = vmatpush3.msra.mxu1 %v9275_v47  ;;  %7731 = vmatprep.mubr.msk.f32.mxu1 %vm9057_vm0, %v9058_v4 }
 0x33b   : > { %8613 = vmatprep.subr.bf16.mxu1 %v9055_v0  ;;  %v1476_v43 = vsub.f32 %v9372_v31, %v1475_v37 }
 0x33d   : > { %7732 = vmatmul.mubr.f32.gmra.mrb[4].mxu1 %v901_v60  ;;  %v1477_v46 = vand.u32 4294901760, %v1476_v43 }
 0x33e   : > { %7740 = vmatprep.mubr.msk.f32.mxu1 %vm9057_vm0, %v9058_v4 }
 0x341   : > { %7741 = vmatmul.mubr.f32.vlgmr.msra.gmra.mrb[0].mxu1 %v882_v36  ;;  %v1466_v36 = vsub.f32 %v9358_v23, %v1465_v30 }
 0x342   : > { %8615 = vmatpush3.bf16.msra.mxu1 %v8614_v6  ;;  %7743 = vmatprep.mubr.msk.f32.mxu1 %vm9057_vm0, %v9058_v4 }
 0x343   : > { %7753 = vmatprep.subr.mxu1 %v9058_v4 }
 0x345   : > { %7744 = vmatmul.mubr.f32.gmra.mrb[2].mxu1 %v892_v42  ;;  %v1485_v42 = vand.u32 4294901760, %v1484_v38 }
 0x346   : > { %7754 = vmatpush3.msra.mxu1 %v927_v52  ;;  %7746 = vmatprep.mubr.msk.f32.mxu1 %vm9057_vm0, %v9058_v4  ;;  %v8632_v52 = vpack.c.bf16 %v1503_v25, %v1496_v26 }
 0x347   : > { %8616 = vmatprep.subr.bf16.mxu1 %v9055_v0 }
 0x349   : > { %7747 = vmatmul.mubr.f32.gmra.mrb[4].mxu1 %v902_v61 }
 0x34a   : > { %7755 = vmatprep.mubr.msk.f32.mxu1 %vm9057_vm0, %v9058_v4 }
 0x34d   : > { %7756 = vmatmul.mubr.f32.vlgmr.msra.gmra.mrb[0].mxu1 %v9246_v28 }
 0x34e   : > { %8618 = vmatpush3.bf16.msra.mxu1 %v9241_v22  ;;  %7758 = vmatprep.mubr.msk.f32.mxu1 %vm9057_vm0, %v9058_v4  ;;  %v1382_v22 = vpop.permute.xlu0 %1381 }
 0x34f   : > { %7768 = vmatprep.subr.mxu1 %v9058_v4  ;;  %v1393_v29 = vsel %vm183_vm1, %v1382_v22, 0 }
 0x350   : > { %v9383_v35 = vand.u32 4294901760, %v1393_v29 }
 0x351   : > { %7759 = vmatmul.mubr.f32.gmra.mrb[2].mxu1 %v9256_v33 }
 0x352   : > { %7769 = vmatpush3.msra.mxu1 %v9275_v47  ;;  %7761 = vmatprep.mubr.msk.f32.mxu1 %vm9057_vm0, %v9058_v4  ;;  %v1509_v41 = vsub.f32 %v1393_v29, %v9383_v35  ;;  %v1486_v47 = vsub.f32 %v1484_v38, %v1485_v42 }
 0x353   : > { %8619 = vmatprep.subr.bf16.mxu1 %v9055_v0 }
 0x354   : > { %v1510_v44 = vand.u32 4294901760, %v1509_v41  ;;  %v1487_v49 = vand.u32 4294901760, %v1486_v47 }
 0x355   : > { %7762 = vmatmul.mubr.f32.gmra.mrb[4].mxu1 %v9287_v59 }
 0x356   : > { %7770 = vmatprep.mubr.msk.f32.mxu1 %vm9057_vm0, %v9058_v4  ;;  %v1511_v48 = vsub.f32 %v1509_v41, %v1510_v44 }
 0x358   : > { %v1512_v50 = vand.u32 4294901760, %v1511_v48 }
 0x359   : > { %7771 = vmatmul.mubr.f32.vlgmr.msra.gmra.mrb[0].mxu1 %v9246_v28  ;;  %v1504_v28 = vsub.f32 %v9347_v17, %v1503_v25 }
 0x35a   : > { %8621 = vmatpush3.bf16.xpose.msra.mxu1 %v9353_v21  ;;  %7773 = vmatprep.mubr.msk.f32.mxu1 %vm9057_vm0, %v9058_v4 }
 0x35b   : > { %7783 = vmatprep.subr.mxu1 %v9058_v4  ;;  %v1505_v39 = vand.u32 4294901760, %v1504_v28 }
 0x35d   : > { %7774 = vmatmul.mubr.f32.gmra.mrb[2].mxu1 %v9256_v33  ;;  %v1467_v33 = vand.u32 4294901760, %v1466_v36  ;;  %v8623_v45 = vpack.c.bf16 %v1505_v39, %v1498_v40 }
 0x35e   : > { %7776 = vmatprep.mubr.msk.f32.mxu1 %vm9057_vm0, %v9058_v4 }
 0x361   : > { %7777 = vmatmul.mubr.f32.gmra.mrb[4].mxu1 %v9287_v59 }
 0x362   : > { %7784 = vmatpush3.xpose.msra.mxu1 %v9383_v35  ;;  %7785 = vmatprep.mubr.msk.f32.mxu1 %vm9057_vm0, %v9058_v4 }
 0x363   : > { %8622 = vmatprep.subr.bf16.mxu1 %v9055_v0 }
 0x365   : > { %7786 = vmatmul.mubr.f32.vlgmr.msra.gmra.mrb[6].mxu1 %v1467_v33 }
 0x366   : > { %8624 = vmatpush3.bf16.xpose.msra.mxu1 %v8623_v45  ;;  %7788 = vmatprep.mubr.msk.f32.mxu1 %vm9057_vm0, %v9058_v4 }
 0x367   : > { %7798 = vmatprep.subr.mxu1 %v9058_v4 }
 0x369   : > { %7789 = vmatmul.mubr.f32.gmra.mrb[8].mxu1 %v1477_v46 }
 0x36a   : > { %7791 = vmatprep.mubr.msk.f32.mxu1 %vm9057_vm0, %v9058_v4 }
 0x36d   : > { %7792 = vmatmul.mubr.f32.gmra.mrb[10].mxu1 %v1487_v49 }
 0x36e   : > { %7799 = vmatpush3.xpose.msra.mxu1 %v1512_v50  ;;  %7800 = vmatprep.mubr.msk.f32.mxu1 %vm9057_vm0, %v9058_v4 }
 0x36f   : > { %8625 = vmatprep.subr.bf16.mxu1 %v9055_v0 }
 0x371   : > { %7801 = vmatmul.mubr.f32.vlgmr.msra.gmra.mrb[6].mxu1 %v9344_v16 }
 0x372   : > { %8627 = vmatpush3.bf16.xpose.msra.mxu1 %v8626_v51  ;;  %7803 = vmatprep.mubr.msk.f32.mxu1 %vm9057_vm0, %v9058_v4 }
 0x373   : > { %7813 = vmatprep.subr.mxu1 %v9058_v4 }
 0x375   : > { %7804 = vmatmul.mubr.f32.gmra.mrb[8].mxu1 %v9360_v24 }
 0x376   : > { %7806 = vmatprep.mubr.msk.f32.mxu1 %vm9057_vm0, %v9058_v4 }
 0x379   : > { %7807 = vmatmul.mubr.f32.gmra.mrb[10].mxu1 %v9374_v32 }
 0x37a   : > { %7814 = vmatpush3.xpose.msra.mxu1 %v1509_v41  ;;  %7815 = vmatprep.mubr.msk.f32.mxu1 %vm9057_vm0, %v9058_v4 }
 0x37b   : > { %8628 = vmatprep.subr.bf16.mxu1 %v9055_v0 }
 0x37d   : > { %7816 = vmatmul.mubr.f32.vlgmr.msra.gmra.mrb[6].mxu1 %v9358_v23 }
 0x37e   : > { %8630 = vmatpush3.bf16.xpose.msra.mxu1 %v9353_v21  ;;  %7818 = vmatprep.mubr.msk.f32.mxu1 %vm9057_vm0, %v9058_v4 }
 0x37f   : > { %7828 = vmatprep.subr.mxu1 %v9058_v4 }
 0x381   : > { %7819 = vmatmul.mubr.f32.gmra.mrb[8].mxu1 %v9372_v31 }
 0x382   : > { %7821 = vmatprep.mubr.msk.f32.mxu1 %vm9057_vm0, %v9058_v4 }
 0x385   : > { %7822 = vmatmul.mubr.f32.gmra.mrb[10].mxu1 %v1484_v38 }
 0x386   : > { %7829 = vmatpush3.xpose.msra.mxu1 %v9383_v35  ;;  %7830 = vmatprep.mubr.msk.f32.mxu1 %vm9057_vm0, %v9058_v4 }
 0x387   : > { %8631 = vmatprep.subr.bf16.mxu1 %v9055_v0 }
 0x389   : > { %7831 = vmatmul.mubr.f32.vlgmr.msra.gmra.mrb[6].mxu1 %v1465_v30 }
 0x38a   : > { %8633 = vmatpush3.bf16.xpose.msra.mxu1 %v8632_v52  ;;  %7833 = vmatprep.mubr.msk.f32.mxu1 %vm9057_vm0, %v9058_v4 }
 0x38b   : > { %7843 = vmatprep.subr.mxu1 %v9058_v4 }
 0x38d   : > { %7834 = vmatmul.mubr.f32.gmra.mrb[8].mxu1 %v1475_v37 }
 0x38e   : > { %7836 = vmatprep.mubr.msk.f32.mxu1 %vm9057_vm0, %v9058_v4 }
 0x391   : > { %7837 = vmatmul.mubr.f32.gmra.mrb[10].mxu1 %v1485_v42 }
 0x392   : > { %7844 = vmatpush3.xpose.msra.mxu1 %v1510_v44  ;;  %7845 = vmatprep.mubr.msk.f32.mxu1 %vm9057_vm0, %v9058_v4 }
 0x393   : > { %8634 = vmatprep.subr.bf16.mxu1 %v9055_v0 }
 0x395   : > { %7846 = vmatmul.mubr.f32.vlgmr.msra.gmra.mrb[6].mxu1 %v9344_v16 }
 0x396   : > { %8636 = vmatpush3.bf16.xpose.msra.mxu1 %v9353_v21  ;;  %7848 = vmatprep.mubr.msk.f32.mxu1 %vm9057_vm0, %v9058_v4 }
 0x397   : > { %7858 = vmatprep.subr.mxu1 %v9058_v4 }
 0x399   : > { %7849 = vmatmul.mubr.f32.gmra.mrb[8].mxu1 %v9360_v24 }
 0x39a   : > { %7851 = vmatprep.mubr.msk.f32.mxu1 %vm9057_vm0, %v9058_v4 }
 0x39d   : > { %7852 = vmatmul.mubr.f32.gmra.mrb[10].mxu1 %v9374_v32 }
 0x39e   : > { %7859 = vmatpush3.xpose.msra.mxu1 %v9383_v35  ;;  %7860 = vmatprep.mubr.msk.f32.mxu1 %vm9057_vm0, %v9058_v4 }
 0x39f   : > { %8727 = vmatprep.subr.bf16.mxu1 %v9055_v0 }
 0x3a1   : > { %7861 = vmatmul.mubr.f32.vlgmr.msra.gmra.mrb[6].mxu1 %v9344_v16 }
 0x3a2   : > { %7863 = vmatprep.mubr.msk.f32.mxu1 %vm9057_vm0, %v9058_v4 }
 0x3a5   : > { %7864 = vmatmul.mubr.f32.gmra.mrb[8].mxu1 %v9360_v24 }
 0x3a6   : > { %7866 = vmatprep.mubr.msk.f32.mxu1 %vm9057_vm0, %v9058_v4 }
 0x3a9   : > { %7867 = vmatmul.mubr.f32.gmra.mrb[10].mxu1 %v9374_v32 }
 0x3aa   : > { %7881 = vmatprep.mubr.msk.f32.mxu1 %vm9057_vm0, %v9058_v4 }
 0x42c   : > { %v9465_v53 = vpop.f32.mrb[0].mxu1 }
 0x42d   : > { %v7772_v54 = vpop.f32.mrb[1].mxu1 }
 0x430   : > { %v9467_v55 = vpop.f32.mrb[2].mxu1 }
 0x431   : > { %v7775_v56 = vpop.f32.mrb[3].mxu1 }
 0x434   : > { %v9469_v57 = vpop.f32.mrb[4].mxu1 }
 0x435   : > { %v7778_v58 = vpop.f32.mrb[5].mxu1 }
 0x474   : > { %v1937_v59 = vpop.f32.mrb[6].mxu1 }
 0x475   : > { %v1953_v60 = vmul.f32 0.35355338, %v1937_v59  ;;  %v7862_v61 = vpop.f32.mrb[7].mxu1 }
 0x477   : > { %v1956_v62 = vsel %vm757_vm2, %v1953_v60, -inf }
 0x478   : > { %1957 = vmax.xlane.f32.xlu0 %v1956_v62  ;;  %v1943_v63 = vpop.f32.mrb[8].mxu1 }
 0x479   : > { %v1954_v5 = vmul.f32 0.35355338, %v1943_v63  ;;  %v7865_v6 = vpop.f32.mrb[9].mxu1 }
 0x47b   : > { %v1959_v7 = vsel %vm757_vm2, %v1954_v5, -inf }
 0x47c   : > { %1960 = vmax.xlane.f32.xlu1 %v1959_v7  ;;  %v1949_v8 = vpop.f32.mrb[10].mxu1 }
 0x47d   : > { %v1955_v9 = vmul.f32 0.35355338, %v1949_v8  ;;  %v7868_v10 = vpop.f32.mrb[11].mxu1 }
 0x47f   : > { %v1962_v11 = vsel %vm764_vm3, %v1955_v9, -inf }
 0x480   : > { %1963 = vmax.xlane.f32.xlu0 %v1962_v11 }
 0x48d   : > { %1989 = vrot.lane.b32.xlu1 %v9110_v1, %s9062_s22 }
 0x505   : > { %v1958_v12 = vpop.xlane.xlu0 %1957 }
 0x506   : > { %v1965_v13 = vsub.f32 %v1953_v60, %v1958_v12 }
 0x508   : > { %v1968_v14 = vmul.f32 1.442695, %v1965_v13 }
 0x509   : > { %v1961_v15 = vpop.xlane.xlu1 %1960 }
 0x50a   : > { %9005 = vpow2.f32 %v1968_v14  ;;  %v1966_v16 = vsub.f32 %v1954_v5, %v1961_v15 }
 0x50c   : > { %v1970_v17 = vmul.f32 1.442695, %v1966_v16 }
 0x50d   : > { %v1964_v18 = vpop.xlane.xlu0 %1963  ;;  %v1990_v27 = vpop.permute.xlu1 %1989 }
 0x50e   : > { %9007 = vpow2.f32 %v1970_v17  ;;  %v1967_v19 = vsub.f32 %v1955_v9, %v1964_v18  ;;  %v2009_v31 = vand.u32 4294901760, %v1990_v27  ;;  %v9602_v18 = vld [vmem:[%s9107_s17] sm:$0xff] }
 0x510   : > { %v1972_v20 = vmul.f32 1.442695, %v1967_v19  ;;  %v9484_v34 = vsub.f32 %v1990_v27, %v2009_v31  ;;  %v9606_v19 = vld [vmem:[%s9107_s17 + $0x8] sm:$0xff] }
 0x512   : > { %9009 = vpow2.f32 %v1972_v20  ;;  %v9610_v20 = vld [vmem:[%s9107_s17 + $0x10] sm:$0x1] }
 0x514   : > { %v9006_v21 = vpop.eup %9005 }
 0x515   : > { %v1974_v22 = vsel %vm757_vm2, %v9006_v21, 0.0 }
 0x516   : > { %1975 = vadd.xlane.f32.xlu0 %v1974_v22 }
 0x518   : > { %v9008_v23 = vpop.eup %9007 }
 0x519   : > { %v1977_v24 = vsel %vm757_vm2, %v9008_v23, 0.0 }
 0x51a   : > { %1978 = vadd.xlane.f32.xlu1 %v1977_v24 }
 0x51c   : > { %v9010_v25 = vpop.eup %9009 }
 0x51d   : > { %v1980_v26 = vsel %vm764_vm3, %v9010_v25, 0.0 }
 0x51e   : > { %1981 = vadd.xlane.f32.xlu0 %v1980_v26 }
 0x52b   : > { %1993 = vrot.lane.b32.xlu1 %v9113_v2, %s9062_s22 }
 0x52f   : > { %3656 = vrot.lane.b32.xlu1 %v9110_v1, %s9063_s23 }
 0x533   : > { %3650 = vrot.lane.b32.xlu1 %v9602_v18, %s9064_s24 }
 0x534   : > { %1991 = vrot.lane.b32.xlu0 %v9118_v3, %s9062_s22 }
 0x537   : > { %3660 = vrot.lane.b32.xlu1 %v9610_v20, %s9063_s23 }
 0x538   : > { %3658 = vrot.lane.b32.xlu0 %v9118_v3, %s9063_s23  ;;  %v2109_v3 = vand.u32 4294901760, %v9484_v34 }
 0x53a   : > { %v2110_v45 = vsub.f32 %v9484_v34, %v2109_v3 }
 0x53c   : > { %v2111_v58 = vand.u32 4294901760, %v2110_v45  ;;  %3652 = vrot.lane.b32.xlu0 %v9606_v19, %s9064_s24 }
 0x540   : > { %3654 = vrot.lane.b32.xlu0 %v9610_v20, %s9064_s24 }
 0x5a3   : > { %v1976_v29 = vpop.xlane.xlu0 %1975 }
 0x5a4   : > { %9011 = vrcp.f32 %v1976_v29 }
 0x5a7   : > { %v1979_v30 = vpop.xlane.xlu1 %1978 }
 0x5a8   : > { %9013 = vrcp.f32 %v1979_v30 }
 0x5ab   : > { %v1982_v32 = vpop.xlane.xlu0 %1981  ;;  %v1994_v28 = vpop.permute.xlu1 %1993 }
 0x5ac   : > { %9015 = vrcp.f32 %v1982_v32  ;;  %v2006_v2 = vsel %vm809_vm4, %v1994_v28, 0 }
 0x5ad   : > { %v9487_v35 = vand.u32 4294901760, %v2006_v2 }
 0x5ae   : > { %v9012_v36 = vpop.eup %9011 }
 0x5af   : > { %v1986_v1 = vmul.f32 %v9012_v36, %v9006_v21  ;;  %v1992_v37 = vpop.permute.xlu0 %1991  ;;  %v9492_v40 = vsub.f32 %v2006_v2, %v9487_v35  ;;  %v7209_v21 = vld [vmem:[%s10374_s1 + $0x8] sm:$0xff] }
 0x5b0   : > { %v2012_v38 = vand.u32 4294901760, %v1992_v37  ;;  %v2578_v22 = vand.u32 4294901760, %v7209_v21 }
 0x5b1   : > { %v1998_v39 = vsel %vm757_vm2, %v1986_v1, 0  ;;  %v2123_v48 = vand.u32 4294901760, %v9492_v40 }
 0x5b2   : > { %v9014_v41 = vpop.eup %9013  ;;  %v9494_v33 = vand.u32 4294901760, %v1998_v39  ;;  %v9496_v42 = vpack.c.bf16 %v2012_v38, %v2009_v31  ;;  %v9498_v43 = vsub.f32 %v1992_v37, %v2012_v38 }
 0x5b3   : > { %v1987_v44 = vmul.f32 %v9014_v41, %v9008_v23  ;;  %v2124_v63 = vsub.f32 %v9492_v40, %v2123_v48  ;;  %v9618_v23 = vsub.f32 %v7209_v21, %v2578_v22 }
 0x5b4   : > { %v9504_v46 = vsub.f32 %v1998_v39, %v9494_v33  ;;  %v2116_v47 = vand.u32 4294901760, %v9498_v43  ;;  %8639 = vmatpush3.bf16.msra.mxu0 %v9496_v42  ;;  %8729 = vmatpush3.bf16.msra.mxu1 %v9496_v42  ;;  %v8644_v16 = vpack.c.bf16 %v9498_v43, %v9484_v34 }
 0x5b5   : > { %7873 = vmatprep.subr.mxu0 %v9058_v4  ;;  %8728 = vmatprep.subr.mxu1 %v9058_v4  ;;  %v2001_v49 = vsel %vm757_vm2, %v1987_v44, 0  ;;  %v2125_v11 = vand.u32 4294901760, %v2124_v63  ;;  %v2676_v24 = vand.u32 4294901760, %v9618_v23 }
 0x5b6   : > { %v9016_v50 = vpop.eup %9015  ;;  %v2117_v51 = vsub.f32 %v9498_v43, %v2116_v47  ;;  %v2078_v52 = vand.u32 4294901760, %v9504_v46  ;;  %v9517_v54 = vand.u32 4294901760, %v2001_v49  ;;  %v8650_v17 = vpack.c.bf16 %v2116_v47, %v2109_v3 }
 0x5b7   : > { %v1988_v56 = vmul.f32 %v9016_v50, %v9010_v25  ;;  %v2677_v25 = vsub.f32 %v9618_v23, %v2676_v24 }
 0x5b8   : > { %v2118_v59 = vand.u32 4294901760, %v2117_v51  ;;  %7874 = vmatpush3.msra.mxu0 %v9487_v35  ;;  %8730 = vmatpush3.msra.mxu1 %v9487_v35  ;;  %v2079_v60 = vsub.f32 %v9504_v46, %v2078_v52  ;;  %v2087_v61 = vsub.f32 %v2001_v49, %v9517_v54 }
 0x5b9   : > { %v2004_v62 = vsel %vm757_vm2, %v1988_v56, 0  ;;  %8640 = vmatprep.subr.bf16.mxu0 %v9055_v0  ;;  %7959 = vmatprep.subr.mxu1 %v9058_v4  ;;  %v2678_v26 = vand.u32 4294901760, %v2677_v25 }
 0x5ba   : > { %v9529_v5 = vand.u32 4294901760, %v2004_v62  ;;  %v2080_v6 = vand.u32 4294901760, %v2079_v60  ;;  %v8641_v7 = vpack.c.bf16 %v2118_v59, %v2111_v58  ;;  %v2088_v8 = vand.u32 4294901760, %v2087_v61 }
 0x5bb   : > { %v3110_v60 = vsel %vm183_vm1, %v9465_v53, 0 }
 0x5bc   : > { %v2097_v9 = vsub.f32 %v2004_v62, %v9529_v5  ;;  %7876 = vmatmul.mubr.f32.vlgmr.msra.gmra.mrb[6].mxu0 %v2080_v6  ;;  %v2089_v10 = vsub.f32 %v2087_v61, %v2088_v8  ;;  %v3113_v62 = vsel %vm183_vm1, %v9467_v55, 0 }
 0x5bd   : > { %8642 = vmatpush3.bf16.msra.mxu0 %v8641_v7  ;;  %7878 = vmatprep.mubr.msk.f32.mxu0 %vm9057_vm0, %v9058_v4  ;;  %v9698_v63 = vand.u32 4294901760, %v3113_v62 }
 0x5be   : > { %7888 = vmatprep.subr.mxu0 %v9058_v4  ;;  %v2090_v12 = vand.u32 4294901760, %v2089_v10  ;;  %v2098_v13 = vand.u32 4294901760, %v2097_v9 }
 0x5bf   : > { %v3195_v6 = vsub.f32 %v3113_v62, %v9698_v63 }
 0x5c0   : > { %7879 = vmatmul.mubr.f32.gmra.mrb[8].mxu0 %v2090_v12  ;;  %v2099_v14 = vsub.f32 %v2097_v9, %v2098_v13 }
 0x5c1   : > { %7889 = vmatpush3.msra.mxu0 %v2125_v11  ;;  %7890 = vmatprep.mubr.msk.f32.mxu0 %vm9057_vm0, %v9058_v4 }
 0x5c2   : > { %8643 = vmatprep.subr.bf16.mxu0 %v9055_v0  ;;  %v2100_v15 = vand.u32 4294901760, %v2099_v14 }
 0x5c4   : > { %7882 = vmatmul.mubr.f32.vlgmr.msra.gmra.mrb[12].mxu1 %v2100_v15  ;;  %7891 = vmatmul.mubr.f32.vlgmr.msra.gmra.mrb[6].mxu0 %v9494_v33 }
 0x5c5   : > { %8645 = vmatpush3.bf16.msra.mxu0 %v8644_v16  ;;  %7893 = vmatprep.mubr.msk.f32.mxu0 %vm9057_vm0, %v9058_v4  ;;  %v3657_v16 = vpop.permute.xlu1 %3656 }
 0x5c6   : > { %7903 = vmatprep.subr.mxu0 %v9058_v4  ;;  %7961 = vmatprep.mubr.msk.f32.mxu1 %vm9057_vm0, %v9058_v4  ;;  %v3668_v21 = vsel %vm183_vm1, %v3657_v16, 0 }
 0x5c7   : > { %7960 = vmatpush3.msra.mxu1 %v2578_v22  ;;  %v3675_v25 = vand.u32 4294901760, %v3668_v21 }
 0x5c8   : > { %7894 = vmatmul.mubr.f32.gmra.mrb[8].mxu0 %v9517_v54  ;;  %7981 = vmatprep.subr.mxu1 %v9058_v4 }
 0x5c9   : > { %7904 = vmatpush3.msra.mxu0 %v9492_v40  ;;  %7896 = vmatprep.mubr.msk.f32.mxu0 %vm9057_vm0, %v9058_v4 }
 0x5ca   : > { %8646 = vmatprep.subr.bf16.mxu0 %v9055_v0 }
 0x5cc   : > { %7897 = vmatmul.mubr.f32.gmra.mrb[10].mxu0 %v9529_v5 }
 0x5cd   : > { %7905 = vmatprep.mubr.msk.f32.mxu0 %vm9057_vm0, %v9058_v4 }
 0x5d0   : > { %7906 = vmatmul.mubr.f32.vlgmr.msra.gmra.mrb[6].mxu0 %v9504_v46 }
 0x5d1   : > { %8648 = vmatpush3.bf16.msra.mxu0 %v9496_v42  ;;  %7908 = vmatprep.mubr.msk.f32.mxu0 %vm9057_vm0, %v9058_v4 }
 0x5d2   : > { %7918 = vmatprep.subr.mxu0 %v9058_v4 }
 0x5d4   : > { %7909 = vmatmul.mubr.f32.gmra.mrb[8].mxu0 %v2087_v61  ;;  %v9687_v61 = vand.u32 4294901760, %v3110_v60 }
 0x5d5   : > { %7919 = vmatpush3.msra.mxu0 %v9487_v35  ;;  %7911 = vmatprep.mubr.msk.f32.mxu0 %vm9057_vm0, %v9058_v4 }
 0x5d6   : > { %8649 = vmatprep.subr.bf16.mxu0 %v9055_v0  ;;  %v3185_v53 = vsub.f32 %v3110_v60, %v9687_v61 }
 0x5d8   : > { %7912 = vmatmul.mubr.f32.gmra.mrb[10].mxu0 %v2097_v9  ;;  %v3186_v55 = vand.u32 4294901760, %v3185_v53 }
 0x5d9   : > { %7920 = vmatprep.mubr.msk.f32.mxu0 %vm9057_vm0, %v9058_v4 }
 0x5dc   : > { %7921 = vmatmul.mubr.f32.vlgmr.msra.gmra.mrb[6].mxu0 %v2078_v52 }
 0x5dd   : > { %8651 = vmatpush3.bf16.msra.mxu0 %v8650_v17  ;;  %7923 = vmatprep.mubr.msk.f32.mxu0 %vm9057_vm0, %v9058_v4  ;;  %v3659_v17 = vpop.permute.xlu0 %3658 }
 0x5de   : > { %7933 = vmatprep.subr.mxu0 %v9058_v4 }
 0x5e0   : > { %7924 = vmatmul.mubr.f32.gmra.mrb[8].mxu0 %v2088_v8  ;;  %v3196_v8 = vand.u32 4294901760, %v3195_v6 }
 0x5e1   : > { %7934 = vmatpush3.msra.mxu0 %v2123_v48  ;;  %7926 = vmatprep.mubr.msk.f32.mxu0 %vm9057_vm0, %v9058_v4 }
 0x5e2   : > { %8652 = vmatprep.subr.bf16.mxu0 %v9055_v0  ;;  %v3197_v12 = vsub.f32 %v3195_v6, %v3196_v8 }
 0x5e4   : > { %7927 = vmatmul.mubr.f32.gmra.mrb[10].mxu0 %v2098_v13  ;;  %v3198_v13 = vand.u32 4294901760, %v3197_v12 }
 0x5e5   : > { %7935 = vmatprep.mubr.msk.f32.mxu0 %vm9057_vm0, %v9058_v4 }
 0x5e8   : > { %7936 = vmatmul.mubr.f32.vlgmr.msra.gmra.mrb[6].mxu0 %v9494_v33 }
 0x5e9   : > { %8654 = vmatpush3.bf16.msra.mxu0 %v9496_v42  ;;  %7938 = vmatprep.mubr.msk.f32.mxu0 %vm9057_vm0, %v9058_v4 }
 0x5ea   : > { %7948 = vmatprep.subr.mxu0 %v9058_v4 }
 0x5ec   : > { %7939 = vmatmul.mubr.f32.gmra.mrb[8].mxu0 %v9517_v54 }
 0x5ed   : > { %7949 = vmatpush3.msra.mxu0 %v9487_v35  ;;  %7941 = vmatprep.mubr.msk.f32.mxu0 %vm9057_vm0, %v9058_v4 }
 0x5ee   : > { %7970 = vmatprep.subr.mxu0 %v9058_v4 }
 0x5f0   : > { %7942 = vmatmul.mubr.f32.gmra.mrb[10].mxu0 %v9529_v5 }
 0x5f1   : > { %7950 = vmatprep.mubr.msk.f32.mxu0 %vm9057_vm0, %v9058_v4 }
 0x5f4   : > { %7951 = vmatmul.mubr.f32.vlgmr.msra.gmra.mrb[6].mxu0 %v9494_v33  ;;  %v1370_v33 = vld [vmem:[%s10374_s1] sm:$0xff] }
 0x5f5   : > { %7953 = vmatprep.mubr.msk.f32.mxu0 %vm9057_vm0, %v9058_v4  ;;  %7971 = vmatpush3.msra.mxu0 %v2678_v26  ;;  %v9647_v47 = vand.u32 4294901760, %v1370_v33 }
 0x5f6   : > { %7992 = vmatprep.subr.mxu0 %v9058_v4 }
 0x5f7   : > { %v9658_v51 = vsub.f32 %v1370_v33, %v9647_v47 }
 0x5f8   : > { %7954 = vmatmul.mubr.f32.gmra.mrb[8].mxu0 %v9517_v54 }
 0x5f9   : > { %7956 = vmatprep.mubr.msk.f32.mxu0 %vm9057_vm0, %v9058_v4  ;;  %v3217_v56 = vand.u32 4294901760, %v9658_v51 }
 0x5fb   : > { %v3218_v58 = vsub.f32 %v9658_v51, %v3217_v56 }
 0x5fc   : > { %7957 = vmatmul.mubr.f32.gmra.mrb[10].mxu0 %v9529_v5  ;;  %v3116_v5 = vsel %vm183_vm1, %v9469_v57, 0  ;;  %v3187_v57 = vsub.f32 %v3185_v53, %v3186_v55 }
 0x5fd   : > { %7972 = vmatprep.mubr.msk.f32.mxu0 %vm9057_vm0, %v9058_v4  ;;  %v3219_v59 = vand.u32 4294901760, %v3218_v58  ;;  %v9709_v7 = vand.u32 4294901760, %v3116_v5 }
 0x5fe   : > { %v3188_v10 = vand.u32 4294901760, %v3187_v57 }
 0x5ff   : > { %v3205_v9 = vsub.f32 %v3116_v5, %v9709_v7 }
 0x601   : > { %v3206_v11 = vand.u32 4294901760, %v3205_v9 }
 0x603   : > { %v3207_v14 = vsub.f32 %v3205_v9, %v3206_v11 }
 0x605   : > { %v3208_v15 = vand.u32 4294901760, %v3207_v14 }
 0x697   : > { %v2102_v27 = vpop.f32.mrb[12].mxu1 }
 0x698   : > { %v7883_v29 = vpop.f32.mrb[13].mxu1 }
 0x6c7   : > { %v2550_v30 = vpop.f32.mrb[6].mxu0 }
 0x6c8   : > { %v2569_v31 = vsel %vm183_vm1, %v2550_v30, 0  ;;  %v7952_v32 = vpop.f32.mrb[7].mxu0  ;;  %v9762_v30 = vsub.f32 %v3668_v21, %v3675_v25 }
 0x6c9   : > { %v9627_v28 = vand.u32 4294901760, %v2569_v31 }
 0x6cb   : > { %v2644_v34 = vsub.f32 %v2569_v31, %v9627_v28  ;;  %v2556_v2 = vpop.f32.mrb[8].mxu0  ;;  %7973 = vmatmul.mubr.f32.vlgmr.msra.gmra.mrb[12].mxu0 %v9627_v28 }
 0x6cc   : > { %v2572_v35 = vsel %vm183_vm1, %v2556_v2, 0  ;;  %v7955_v36 = vpop.f32.mrb[9].mxu0  ;;  %7975 = vmatprep.mubr.msk.f32.mxu0 %vm9057_vm0, %v9058_v4  ;;  %7993 = vmatpush3.msra.mxu0 %v2578_v22 }
 0x6cd   : > { %v2645_v1 = vand.u32 4294901760, %v2644_v34  ;;  %v9634_v37 = vand.u32 4294901760, %v2572_v35  ;;  %8014 = vmatprep.subr.mxu0 %v9058_v4 }
 0x6cf   : > { %v2646_v3 = vsub.f32 %v2644_v34, %v2645_v1  ;;  %v2654_v38 = vsub.f32 %v2572_v35, %v9634_v37  ;;  %v2562_v39 = vpop.f32.mrb[10].mxu0  ;;  %7976 = vmatmul.mubr.f32.gmra.mrb[14].mxu0 %v9634_v37 }
 0x6d0   : > { %v8731_v40 = vadd.f32 %v2562_v39, %v2102_v27  ;;  %v7958_v41 = vpop.f32.mrb[11].mxu0  ;;  %7978 = vmatprep.mubr.msk.f32.mxu0 %vm9057_vm0, %v9058_v4 }
 0x6d1   : > { %v2647_v42 = vand.u32 4294901760, %v2646_v3  ;;  %v2655_v43 = vand.u32 4294901760, %v2654_v38 }
 0x6d2   : > { %v2575_v44 = vsel %vm183_vm1, %v8731_v40, 0 }
 0x6d3   : > { %v9645_v45 = vand.u32 4294901760, %v2575_v44  ;;  %7962 = vmatmul.mubr.f32.vlgmr.msra.gmra.mrb[14].mxu1 %v2647_v42  ;;  %v2656_v46 = vsub.f32 %v2654_v38, %v2655_v43 }
 0x6d4   : > { %7964 = vmatprep.mubr.msk.f32.mxu1 %vm9057_vm0, %v9058_v4  ;;  %7982 = vmatpush3.msra.mxu1 %v9618_v23  ;;  %v3651_v23 = vpop.permute.xlu1 %3650 }
 0x6d5   : > { %v2664_v48 = vsub.f32 %v2575_v44, %v9645_v45  ;;  %7979 = vmatmul.mubr.f32.gmra.mrb[16].mxu0 %v9645_v45  ;;  %v2657_v49 = vand.u32 4294901760, %v2656_v46  ;;  %8003 = vmatprep.subr.mxu1 %v9058_v4  ;;  %v3662_v27 = vsel %vm183_vm1, %v3651_v23, 0 }
 0x6d6   : > { %7994 = vmatprep.mubr.msk.f32.mxu0 %vm9057_vm0, %v9058_v4  ;;  %v9760_v29 = vand.u32 4294901760, %v3662_v27 }
 0x6d7   : > { %7965 = vmatmul.mubr.f32.gmra.mrb[16].mxu1 %v2657_v49  ;;  %v2665_v50 = vand.u32 4294901760, %v2664_v48 }
 0x6d8   : > { %7967 = vmatprep.mubr.msk.f32.mxu1 %vm9057_vm0, %v9058_v4  ;;  %v3661_v2 = vpop.permute.xlu1 %3660  ;;  %v9775_v35 = vsub.f32 %v3662_v27, %v9760_v29 }
 0x6d9   : > { %7995 = vmatmul.mubr.f32.vlgmr.msra.gmra.mrb[18].mxu0 %v2645_v1  ;;  %v2666_v52 = vsub.f32 %v2664_v48, %v2665_v50  ;;  %v3775_v1 = vand.u32 4294901760, %v9762_v30 }
 0x6da   : > { %7997 = vmatprep.mubr.msk.f32.mxu0 %vm9057_vm0, %v9058_v4  ;;  %8015 = vmatpush3.msra.mxu0 %v2578_v22  ;;  %v3670_v22 = vsel %vm183_vm1, %v3659_v17, 0  ;;  %v3744_v39 = vand.u32 4294901760, %v9775_v35 }
 0x6db   : > { %v2667_v54 = vand.u32 4294901760, %v2666_v52  ;;  %8036 = vmatprep.subr.mxu0 %v9058_v4  ;;  %v3678_v26 = vand.u32 4294901760, %v3670_v22  ;;  %v3776_v33 = vsub.f32 %v9762_v30, %v3775_v1 }
 0x6dc   : > { %v3745_v44 = vsub.f32 %v9775_v35, %v3744_v39 }
 0x6dd   : > { %7968 = vmatmul.mubr.f32.gmra.mrb[18].mxu1 %v2667_v54  ;;  %7998 = vmatmul.mubr.f32.gmra.mrb[20].mxu0 %v2655_v43  ;;  %v9764_v31 = vsub.f32 %v3670_v22, %v3678_v26 }
 0x6de   : > { %7983 = vmatprep.mubr.msk.f32.mxu1 %vm9057_vm0, %v9058_v4  ;;  %8000 = vmatprep.mubr.msk.f32.mxu0 %vm9057_vm0, %v9058_v4 }
 0x6e1   : > { %7984 = vmatmul.mubr.f32.vlgmr.msra.gmra.mrb[20].mxu1 %v2644_v34  ;;  %8001 = vmatmul.mubr.f32.gmra.mrb[22].mxu0 %v2665_v50  ;;  %v9768_v34 = vpack.c.bf16 %v3678_v26, %v3675_v25  ;;  %v3746_v50 = vand.u32 4294901760, %v3745_v44 }
 0x6e2   : > { %7986 = vmatprep.mubr.msk.f32.mxu1 %vm9057_vm0, %v9058_v4  ;;  %8016 = vmatprep.mubr.msk.f32.mxu0 %vm9057_vm0, %v9058_v4 }
 0x6e3   : > { %8004 = vmatpush3.msra.mxu1 %v2676_v24  ;;  %v3653_v24 = vpop.permute.xlu0 %3652 }
 0x6e4   : > { %8025 = vmatprep.subr.mxu1 %v9058_v4  ;;  %v3664_v32 = vsel %vm183_vm1, %v3653_v24, 0 }
 0x6e5   : > { %7987 = vmatmul.mubr.f32.gmra.mrb[22].mxu1 %v2654_v38  ;;  %8017 = vmatmul.mubr.f32.vlgmr.msra.gmra.mrb[24].mxu0 %v9627_v28  ;;  %v9777_v36 = vand.u32 4294901760, %v3664_v32  ;;  %v3672_v38 = vsel %vm183_vm1, %v3661_v2, 0 }
 0x6e6   : > { %7989 = vmatprep.mubr.msk.f32.mxu1 %vm9057_vm0, %v9058_v4  ;;  %8019 = vmatprep.mubr.msk.f32.mxu0 %vm9057_vm0, %v9058_v4  ;;  %v9803_v43 = vand.u32 4294901760, %v3672_v38 }
 0x6e7   : > { %8037 = vmatpush3.msra.mxu0 %v3219_v59  ;;  %v9790_v40 = vsub.f32 %v3664_v32, %v9777_v36 }
 0x6e8   : > { %8058 = vmatprep.subr.mxu0 %v9058_v4  ;;  %v3788_v49 = vsub.f32 %v3672_v38, %v9803_v43 }
 0x6e9   : > { %7990 = vmatmul.mubr.f32.gmra.mrb[24].mxu1 %v2664_v48  ;;  %8020 = vmatmul.mubr.f32.gmra.mrb[26].mxu0 %v9634_v37 }
 0x6ea   : > { %8005 = vmatprep.mubr.msk.f32.mxu1 %vm9057_vm0, %v9058_v4  ;;  %8022 = vmatprep.mubr.msk.f32.mxu0 %vm9057_vm0, %v9058_v4  ;;  %v3789_v54 = vand.u32 4294901760, %v3788_v49 }
 0x6ec   : > { %v3790_v60 = vsub.f32 %v3788_v49, %v3789_v54 }
 0x6ed   : > { %8006 = vmatmul.mubr.f32.vlgmr.msra.gmra.mrb[26].mxu1 %v9627_v28  ;;  %8023 = vmatmul.mubr.f32.gmra.mrb[28].mxu0 %v9645_v45  ;;  %v3655_v28 = vpop.permute.xlu0 %3654 }
 0x6ee   : > { %8008 = vmatprep.mubr.msk.f32.mxu1 %vm9057_vm0, %v9058_v4  ;;  %8038 = vmatprep.mubr.msk.f32.mxu0 %vm9057_vm0, %v9058_v4  ;;  %v3666_v3 = vsel %vm183_vm1, %v3655_v28, 0  ;;  %v3791_v62 = vand.u32 4294901760, %v3790_v60 }
 0x6ef   : > { %8026 = vmatpush3.msra.mxu1 %v9647_v47  ;;  %v9792_v41 = vand.u32 4294901760, %v3666_v3 }
 0x6f0   : > { %8047 = vmatprep.subr.mxu1 %v9058_v4 }
 0x6f1   : > { %8009 = vmatmul.mubr.f32.gmra.mrb[28].mxu1 %v9634_v37  ;;  %8039 = vmatmul.mubr.f32.vlgmr.msra.gmra.mrb[30].mxu0 %v9687_v61  ;;  %v3782_v37 = vand.u32 4294901760, %v9764_v31  ;;  %v3763_v46 = vsub.f32 %v3666_v3, %v9792_v41 }
 0x6f2   : > { %8011 = vmatprep.mubr.msk.f32.mxu1 %vm9057_vm0, %v9058_v4  ;;  %8041 = vmatprep.mubr.msk.f32.mxu0 %vm9057_vm0, %v9058_v4 }
 0x6f3   : > { %8059 = vmatpush3.msra.mxu0 %v9647_v47  ;;  %v3783_v42 = vsub.f32 %v9764_v31, %v3782_v37 }
 0x6f4   : > { %8080 = vmatprep.subr.mxu0 %v9058_v4 }
 0x6f5   : > { %8012 = vmatmul.mubr.f32.gmra.mrb[30].mxu1 %v9645_v45  ;;  %8042 = vmatmul.mubr.f32.gmra.mrb[32].mxu0 %v9698_v63  ;;  %v3754_v45 = vand.u32 4294901760, %v9790_v40  ;;  %v3784_v48 = vand.u32 4294901760, %v3783_v42 }
 0x6f6   : > { %8027 = vmatprep.mubr.msk.f32.mxu1 %vm9057_vm0, %v9058_v4  ;;  %8044 = vmatprep.mubr.msk.f32.mxu0 %vm9057_vm0, %v9058_v4 }
 0x6f7   : > { %v3755_v52 = vsub.f32 %v9790_v40, %v3754_v45 }
 0x6f9   : > { %8028 = vmatmul.mubr.f32.vlgmr.msra.gmra.mrb[32].mxu1 %v3188_v10  ;;  %8045 = vmatmul.mubr.f32.gmra.mrb[34].mxu0 %v9709_v7  ;;  %v3756_v58 = vand.u32 4294901760, %v3755_v52 }
 0x6fa   : > { %8030 = vmatprep.mubr.msk.f32.mxu1 %vm9057_vm0, %v9058_v4  ;;  %8060 = vmatprep.mubr.msk.f32.mxu0 %vm9057_vm0, %v9058_v4 }
 0x6fb   : > { %8048 = vmatpush3.msra.mxu1 %v9658_v51  ;;  %v3764_v51 = vand.u32 4294901760, %v3763_v46 }
 0x6fc   : > { %8069 = vmatprep.subr.mxu1 %v9058_v4 }
 0x6fd   : > { %8031 = vmatmul.mubr.f32.gmra.mrb[34].mxu1 %v3198_v13  ;;  %8061 = vmatmul.mubr.f32.vlgmr.msra.gmra.mrb[36].mxu0 %v3186_v55  ;;  %v3765_v59 = vsub.f32 %v3763_v46, %v3764_v51 }
 0x6fe   : > { %8033 = vmatprep.mubr.msk.f32.mxu1 %vm9057_vm0, %v9058_v4  ;;  %8063 = vmatprep.mubr.msk.f32.mxu0 %vm9057_vm0, %v9058_v4 }
 0x6ff   : > { %8081 = vmatpush3.msra.mxu0 %v9647_v47  ;;  %v3777_v47 = vand.u32 4294901760, %v3776_v33 }
 0x700   : > { %8673 = vmatprep.subr.bf16.mxu0 %v9055_v0 }
 0x701   : > { %8034 = vmatmul.mubr.f32.gmra.mrb[36].mxu1 %v3208_v15  ;;  %8064 = vmatmul.mubr.f32.gmra.mrb[38].mxu0 %v3196_v8 }
 0x702   : > { %8049 = vmatprep.mubr.msk.f32.mxu1 %vm9057_vm0, %v9058_v4  ;;  %8066 = vmatprep.mubr.msk.f32.mxu0 %vm9057_vm0, %v9058_v4 }
 0x705   : > { %8050 = vmatmul.mubr.f32.vlgmr.msra.gmra.mrb[38].mxu1 %v3185_v53  ;;  %8067 = vmatmul.mubr.f32.gmra.mrb[40].mxu0 %v3206_v11  ;;  %v8662_v53 = vpack.c.bf16 %v9764_v31, %v9762_v30 }
 0x706   : > { %8052 = vmatprep.mubr.msk.f32.mxu1 %vm9057_vm0, %v9058_v4  ;;  %8082 = vmatprep.mubr.msk.f32.mxu0 %vm9057_vm0, %v9058_v4 }
 0x707   : > { %8070 = vmatpush3.msra.mxu1 %v3217_v56  ;;  %v8659_v56 = vpack.c.bf16 %v3784_v48, %v3777_v47 }
 0x708   : > { %8655 = vmatprep.subr.bf16.mxu1 %v9055_v0 }
 0x709   : > { %8053 = vmatmul.mubr.f32.gmra.mrb[40].mxu1 %v3195_v6  ;;  %8083 = vmatmul.mubr.f32.vlgmr.msra.gmra.mrb[42].mxu0 %v9687_v61 }
 0x70a   : > { %8055 = vmatprep.mubr.msk.f32.mxu1 %vm9057_vm0, %v9058_v4  ;;  %8085 = vmatprep.mubr.msk.f32.mxu0 %vm9057_vm0, %v9058_v4 }
 0x70d   : > { %8056 = vmatmul.mubr.f32.gmra.mrb[42].mxu1 %v3205_v9  ;;  %8086 = vmatmul.mubr.f32.gmra.mrb[44].mxu0 %v9698_v63 }
 0x70e   : > { %8071 = vmatprep.mubr.msk.f32.mxu1 %vm9057_vm0, %v9058_v4  ;;  %8088 = vmatprep.mubr.msk.f32.mxu0 %vm9057_vm0, %v9058_v4 }
 0x711   : > { %8072 = vmatmul.mubr.f32.vlgmr.msra.gmra.mrb[44].mxu1 %v9687_v61  ;;  %8089 = vmatmul.mubr.f32.gmra.mrb[46].mxu0 %v9709_v7  ;;  %v3766_v61 = vand.u32 4294901760, %v3765_v59 }
 0x712   : > { %8657 = vmatpush3.bf16.xpose.msra.mxu1 %v9768_v34  ;;  %8074 = vmatprep.mubr.msk.f32.mxu1 %vm9057_vm0, %v9058_v4 }
 0x713   : > { %8095 = vmatprep.subr.mxu1 %v9058_v4  ;;  %8187 = vmatprep.mubr.msk.f32.mxu0 %vm9057_vm0, %v9058_v4 }
 0x715   : > { %8075 = vmatmul.mubr.f32.gmra.mrb[46].mxu1 %v9698_v63  ;;  %v8668_v63 = vpack.c.bf16 %v3782_v37, %v3775_v1 }
 0x716   : > { %8077 = vmatprep.mubr.msk.f32.mxu1 %vm9057_vm0, %v9058_v4 }
 0x719   : > { %8078 = vmatmul.mubr.f32.gmra.mrb[48].mxu1 %v9709_v7 }
 0x71a   : > { %8096 = vmatpush3.xpose.msra.mxu1 %v9803_v43  ;;  %8097 = vmatprep.mubr.msk.f32.mxu1 %vm9057_vm0, %v9058_v4 }
 0x71b   : > { %8658 = vmatprep.subr.bf16.mxu1 %v9055_v0 }
 0x71d   : > { %8098 = vmatmul.mubr.f32.vlgmr.msra.gmra.mrb[50].mxu1 %v3746_v50 }
 0x71e   : > { %8660 = vmatpush3.bf16.xpose.msra.mxu1 %v8659_v56  ;;  %8100 = vmatprep.mubr.msk.f32.mxu1 %vm9057_vm0, %v9058_v4 }
 0x71f   : > { %8110 = vmatprep.subr.mxu1 %v9058_v4 }
 0x721   : > { %8101 = vmatmul.mubr.f32.gmra.mrb[52].mxu1 %v3756_v58 }
 0x722   : > { %8103 = vmatprep.mubr.msk.f32.mxu1 %vm9057_vm0, %v9058_v4 }
 0x725   : > { %8104 = vmatmul.mubr.f32.gmra.mrb[54].mxu1 %v3766_v61 }
 0x726   : > { %8111 = vmatpush3.xpose.msra.mxu1 %v3791_v62  ;;  %8112 = vmatprep.mubr.msk.f32.mxu1 %vm9057_vm0, %v9058_v4 }
 0x727   : > { %8661 = vmatprep.subr.bf16.mxu1 %v9055_v0 }
 0x729   : > { %8113 = vmatmul.mubr.f32.vlgmr.msra.gmra.mrb[50].mxu1 %v9760_v29 }
 0x72a   : > { %8663 = vmatpush3.bf16.xpose.msra.mxu1 %v8662_v53  ;;  %8115 = vmatprep.mubr.msk.f32.mxu1 %vm9057_vm0, %v9058_v4 }
 0x72b   : > { %8125 = vmatprep.subr.mxu1 %v9058_v4 }
 0x72d   : > { %8116 = vmatmul.mubr.f32.gmra.mrb[52].mxu1 %v9777_v36 }
 0x72e   : > { %8118 = vmatprep.mubr.msk.f32.mxu1 %vm9057_vm0, %v9058_v4 }
 0x731   : > { %8119 = vmatmul.mubr.f32.gmra.mrb[54].mxu1 %v9792_v41 }
 0x732   : > { %8126 = vmatpush3.xpose.msra.mxu1 %v3788_v49  ;;  %8127 = vmatprep.mubr.msk.f32.mxu1 %vm9057_vm0, %v9058_v4 }
 0x733   : > { %8664 = vmatprep.subr.bf16.mxu1 %v9055_v0 }
 0x735   : > { %8128 = vmatmul.mubr.f32.vlgmr.msra.gmra.mrb[50].mxu1 %v9775_v35 }
 0x736   : > { %8666 = vmatpush3.bf16.xpose.msra.mxu1 %v9768_v34  ;;  %8130 = vmatprep.mubr.msk.f32.mxu1 %vm9057_vm0, %v9058_v4 }
 0x737   : > { %8140 = vmatprep.subr.mxu1 %v9058_v4 }
 0x739   : > { %8131 = vmatmul.mubr.f32.gmra.mrb[52].mxu1 %v9790_v40 }
 0x73a   : > { %8133 = vmatprep.mubr.msk.f32.mxu1 %vm9057_vm0, %v9058_v4 }
 0x73d   : > { %8134 = vmatmul.mubr.f32.gmra.mrb[54].mxu1 %v3763_v46 }
 0x73e   : > { %8141 = vmatpush3.xpose.msra.mxu1 %v9803_v43  ;;  %8142 = vmatprep.mubr.msk.f32.mxu1 %vm9057_vm0, %v9058_v4 }
 0x73f   : > { %8667 = vmatprep.subr.bf16.mxu1 %v9055_v0 }
 0x741   : > { %8143 = vmatmul.mubr.f32.vlgmr.msra.gmra.mrb[50].mxu1 %v3744_v39 }
 0x742   : > { %8669 = vmatpush3.bf16.xpose.msra.mxu1 %v8668_v63  ;;  %8145 = vmatprep.mubr.msk.f32.mxu1 %vm9057_vm0, %v9058_v4 }
 0x743   : > { %8155 = vmatprep.subr.mxu1 %v9058_v4 }
 0x745   : > { %8146 = vmatmul.mubr.f32.gmra.mrb[52].mxu1 %v3754_v45 }
 0x746   : > { %8148 = vmatprep.mubr.msk.f32.mxu1 %vm9057_vm0, %v9058_v4 }
 0x749   : > { %8149 = vmatmul.mubr.f32.gmra.mrb[54].mxu1 %v3764_v51 }
 0x74a   : > { %8156 = vmatpush3.xpose.msra.mxu1 %v3789_v54  ;;  %8157 = vmatprep.mubr.msk.f32.mxu1 %vm9057_vm0, %v9058_v4 }
 0x74b   : > { %8670 = vmatprep.subr.bf16.mxu1 %v9055_v0 }
 0x74d   : > { %8158 = vmatmul.mubr.f32.vlgmr.msra.gmra.mrb[50].mxu1 %v9760_v29 }
 0x74e   : > { %8672 = vmatpush3.bf16.xpose.msra.mxu1 %v9768_v34  ;;  %8160 = vmatprep.mubr.msk.f32.mxu1 %vm9057_vm0, %v9058_v4 }
 0x74f   : > { %8170 = vmatprep.subr.mxu1 %v9058_v4 }
 0x751   : > { %8161 = vmatmul.mubr.f32.gmra.mrb[52].mxu1 %v9777_v36 }
 0x752   : > { %8163 = vmatprep.mubr.msk.f32.mxu1 %vm9057_vm0, %v9058_v4 }
 0x755   : > { %8164 = vmatmul.mubr.f32.gmra.mrb[54].mxu1 %v9792_v41 }
 0x756   : > { %8171 = vmatpush3.xpose.msra.mxu1 %v9803_v43  ;;  %8172 = vmatprep.mubr.msk.f32.mxu1 %vm9057_vm0, %v9058_v4 }
 0x757   : > { %8271 = vmatprep.subr.mxu1 %v9058_v4 }
 0x759   : > { %8173 = vmatmul.mubr.f32.vlgmr.msra.gmra.mrb[50].mxu1 %v9760_v29 }
 0x75a   : > { %8175 = vmatprep.mubr.msk.f32.mxu1 %vm9057_vm0, %v9058_v4 }
 0x75d   : > { %8176 = vmatmul.mubr.f32.gmra.mrb[52].mxu1 %v9777_v36 }
 0x75e   : > { %8178 = vmatprep.mubr.msk.f32.mxu1 %vm9057_vm0, %v9058_v4 }
 0x761   : > { %8179 = vmatmul.mubr.f32.gmra.mrb[54].mxu1 %v9792_v41 }
 0x762   : > { %8273 = vmatprep.mubr.msk.f32.mxu1 %vm9057_vm0, %v9058_v4 }
 0x79e   : > { %v2745_v5 = vpop.f32.mrb[12].mxu0 }
 0x79f   : > { %v7974_v55 = vpop.f32.mrb[13].mxu0 }
 0x7a2   : > { %v2751_v6 = vpop.f32.mrb[14].mxu0 }
 0x7a3   : > { %v7977_v7 = vpop.f32.mrb[15].mxu0 }
 0x7a6   : > { %v2649_v57 = vpop.f32.mrb[14].mxu1 }
 0x7a7   : > { %v2746_v8 = vadd.f32 %v2745_v5, %v2649_v57  ;;  %v7963_v9 = vpop.f32.mrb[15].mxu1 }
 0x7a8   : > { %v2757_v10 = vpop.f32.mrb[16].mxu0 }
 0x7a9   : > { %v7980_v11 = vpop.f32.mrb[17].mxu0 }
 0x7aa   : > { %v2659_v12 = vpop.f32.mrb[16].mxu1 }
 0x7ab   : > { %v2752_v13 = vadd.f32 %v2751_v6, %v2659_v12  ;;  %v7966_v14 = vpop.f32.mrb[17].mxu1 }
 0x7ac   : > { %v2919_v15 = vpop.f32.mrb[18].mxu0 }
 0x7ad   : > { %v7996_v16 = vpop.f32.mrb[19].mxu0 }
 0x7b0   : > { %v2669_v17 = vpop.f32.mrb[18].mxu1  ;;  %v2927_v21 = vpop.f32.mrb[20].mxu0 }
 0x7b1   : > { %v2758_v22 = vadd.f32 %v2757_v10, %v2669_v17  ;;  %v7969_v23 = vpop.f32.mrb[19].mxu1  ;;  %v7999_v24 = vpop.f32.mrb[21].mxu0 }
 0x7b4   : > { %v2831_v25 = vpop.f32.mrb[20].mxu1  ;;  %v2935_v26 = vpop.f32.mrb[22].mxu0 }
 0x7b5   : > { %v2832_v27 = vadd.f32 %v2831_v25, %v2746_v8  ;;  %v7985_v29 = vpop.f32.mrb[21].mxu1  ;;  %v8002_v30 = vpop.f32.mrb[23].mxu0 }
 0x7b7   : > { %v2920_v31 = vadd.f32 %v2919_v15, %v2832_v27 }
 0x7b8   : > { %v2838_v32 = vpop.f32.mrb[22].mxu1  ;;  %v3093_v28 = vpop.f32.mrb[24].mxu0 }
 0x7b9   : > { %v2839_v34 = vadd.f32 %v2838_v32, %v2752_v13  ;;  %v7988_v2 = vpop.f32.mrb[23].mxu1  ;;  %v8018_v35 = vpop.f32.mrb[25].mxu0 }
 0x7bb   : > { %v2928_v36 = vadd.f32 %v2927_v21, %v2839_v34 }
 0x7bc   : > { %v2845_v1 = vpop.f32.mrb[24].mxu1  ;;  %v3099_v37 = vpop.f32.mrb[26].mxu0 }
 0x7bd   : > { %v2846_v3 = vadd.f32 %v2845_v1, %v2758_v22  ;;  %v7991_v38 = vpop.f32.mrb[25].mxu1  ;;  %v8021_v39 = vpop.f32.mrb[27].mxu0 }
 0x7bf   : > { %v2936_v40 = vadd.f32 %v2935_v26, %v2846_v3 }
 0x7c0   : > { %v3009_v41 = vpop.f32.mrb[26].mxu1  ;;  %v3105_v33 = vpop.f32.mrb[28].mxu0 }
 0x7c1   : > { %v3010_v42 = vadd.f32 %v3009_v41, %v2920_v31  ;;  %v8007_v43 = vpop.f32.mrb[27].mxu1  ;;  %v8024_v44 = vpop.f32.mrb[29].mxu0 }
 0x7c3   : > { %v3094_v45 = vadd.f32 %v3093_v28, %v3010_v42 }
 0x7c4   : > { %v3015_v46 = vpop.f32.mrb[28].mxu1  ;;  %v3286_v47 = vpop.f32.mrb[30].mxu0 }
 0x7c5   : > { %v3016_v48 = vadd.f32 %v3015_v46, %v2928_v36  ;;  %v8010_v49 = vpop.f32.mrb[29].mxu1  ;;  %v8040_v50 = vpop.f32.mrb[31].mxu0 }
 0x7c7   : > { %v3100_v51 = vadd.f32 %v3099_v37, %v3016_v48 }
 0x7c8   : > { %v3021_v52 = vpop.f32.mrb[30].mxu1  ;;  %v3292_v54 = vpop.f32.mrb[32].mxu0 }
 0x7c9   : > { %v3022_v56 = vadd.f32 %v3021_v52, %v2936_v40  ;;  %v8013_v58 = vpop.f32.mrb[31].mxu1  ;;  %v8043_v59 = vpop.f32.mrb[33].mxu0 }
 0x7cb   : > { %v3106_v60 = vadd.f32 %v3105_v33, %v3022_v56 }
 0x7cc   : > { %v3190_v61 = vpop.f32.mrb[32].mxu1  ;;  %v3298_v62 = vpop.f32.mrb[34].mxu0 }
 0x7cd   : > { %v3191_v53 = vadd.f32 %v3190_v61, %v3094_v45  ;;  %v8029_v63 = vpop.f32.mrb[33].mxu1  ;;  %v8046_v5 = vpop.f32.mrb[35].mxu0 }
 0x7cf   : > { %v3287_v55 = vadd.f32 %v3286_v47, %v3191_v53 }
 0x7d0   : > { %v3200_v6 = vpop.f32.mrb[34].mxu1  ;;  %v3460_v7 = vpop.f32.mrb[36].mxu0 }
 0x7d1   : > { %v3201_v57 = vadd.f32 %v3200_v6, %v3100_v51  ;;  %v8032_v8 = vpop.f32.mrb[35].mxu1  ;;  %v8062_v9 = vpop.f32.mrb[37].mxu0 }
 0x7d3   : > { %v3293_v10 = vadd.f32 %v3292_v54, %v3201_v57 }
 0x7d4   : > { %v3210_v11 = vpop.f32.mrb[36].mxu1  ;;  %v3468_v12 = vpop.f32.mrb[38].mxu0 }
 0x7d5   : > { %v3211_v13 = vadd.f32 %v3210_v11, %v3106_v60  ;;  %v8035_v14 = vpop.f32.mrb[37].mxu1  ;;  %v8065_v15 = vpop.f32.mrb[39].mxu0 }
 0x7d7   : > { %v3299_v16 = vadd.f32 %v3298_v62, %v3211_v13 }
 0x7d8   : > { %v3372_v17 = vpop.f32.mrb[38].mxu1  ;;  %v3476_v21 = vpop.f32.mrb[40].mxu0 }
 0x7d9   : > { %v3373_v22 = vadd.f32 %v3372_v17, %v3287_v55  ;;  %v8051_v23 = vpop.f32.mrb[39].mxu1  ;;  %v8068_v24 = vpop.f32.mrb[41].mxu0 }
 0x7db   : > { %v3461_v25 = vadd.f32 %v3460_v7, %v3373_v22 }
 0x7dc   : > { %v3379_v26 = vpop.f32.mrb[40].mxu1  ;;  %v3634_v27 = vpop.f32.mrb[42].mxu0 }
 0x7dd   : > { %v3380_v29 = vadd.f32 %v3379_v26, %v3293_v10  ;;  %v8054_v30 = vpop.f32.mrb[41].mxu1  ;;  %v8084_v31 = vpop.f32.mrb[43].mxu0 }
 0x7df   : > { %v3469_v32 = vadd.f32 %v3468_v12, %v3380_v29 }
 0x7e0   : > { %v3386_v28 = vpop.f32.mrb[42].mxu1  ;;  %v3640_v34 = vpop.f32.mrb[44].mxu0 }
 0x7e1   : > { %v3387_v2 = vadd.f32 %v3386_v28, %v3299_v16  ;;  %v8057_v35 = vpop.f32.mrb[43].mxu1  ;;  %v8087_v36 = vpop.f32.mrb[45].mxu0 }
 0x7e3   : > { %v3477_v1 = vadd.f32 %v3476_v21, %v3387_v2 }
 0x7e4   : > { %v3550_v37 = vpop.f32.mrb[44].mxu1  ;;  %v3646_v3 = vpop.f32.mrb[46].mxu0 }
 0x7e5   : > { %v3551_v38 = vadd.f32 %v3550_v37, %v3461_v25  ;;  %v8073_v39 = vpop.f32.mrb[45].mxu1  ;;  %v8090_v40 = vpop.f32.mrb[47].mxu0 }
 0x7e7   : > { %v9885_v41 = vadd.f32 %v3634_v27, %v3551_v38 }
 0x7e8   : > { %v3556_v33 = vpop.f32.mrb[46].mxu1 }
 0x7e9   : > { %v3557_v42 = vadd.f32 %v3556_v33, %v3469_v32  ;;  %v8076_v43 = vpop.f32.mrb[47].mxu1 }
 0x7eb   : > { %v9887_v44 = vadd.f32 %v3640_v34, %v3557_v42 }
 0x7ec   : > { %v3562_v45 = vpop.f32.mrb[48].mxu1 }
 0x7ed   : > { %v3563_v46 = vadd.f32 %v3562_v45, %v3477_v1  ;;  %v8079_v47 = vpop.f32.mrb[49].mxu1 }
 0x7ef   : > { %v9889_v48 = vadd.f32 %v3646_v3, %v3563_v46 }
 0x82c   : > { %v4216_v49 = vpop.f32.mrb[50].mxu1 }
 0x82d   : > { %v4232_v50 = vmul.f32 0.35355338, %v4216_v49  ;;  %v8174_v51 = vpop.f32.mrb[51].mxu1 }
 0x82f   : > { %v4235_v52 = vsel %vm757_vm2, %v4232_v50, -inf }
 0x830   : > { %4236 = vmax.xlane.f32.xlu1 %v4235_v52  ;;  %v4222_v54 = vpop.f32.mrb[52].mxu1 }
 0x831   : > { %v4233_v56 = vmul.f32 0.35355338, %v4222_v54  ;;  %v8177_v58 = vpop.f32.mrb[53].mxu1 }
 0x833   : > { %v4238_v59 = vsel %vm757_vm2, %v4233_v56, -inf }
 0x834   : > { %4239 = vmax.xlane.f32.xlu0 %v4238_v59  ;;  %v4228_v60 = vpop.f32.mrb[54].mxu1 }
 0x835   : > { %v4234_v61 = vmul.f32 0.35355338, %v4228_v60  ;;  %v8180_v62 = vpop.f32.mrb[55].mxu1 }
 0x837   : > { %v4241_v53 = vsel %vm764_vm3, %v4234_v61, -inf }
 0x838   : > { %4242 = vmax.xlane.f32.xlu0 %v4241_v53 }
 0x8bd   : > { %v4237_v63 = vpop.xlane.xlu1 %4236 }
 0x8be   : > { %v4244_v5 = vsub.f32 %v4232_v50, %v4237_v63 }
 0x8c0   : > { %v4247_v55 = vmul.f32 1.442695, %v4244_v5 }
 0x8c1   : > { %v4240_v6 = vpop.xlane.xlu0 %4239 }
 0x8c2   : > { %9017 = vpow2.f32 %v4247_v55  ;;  %v4245_v7 = vsub.f32 %v4233_v56, %v4240_v6 }
 0x8c4   : > { %v4249_v57 = vmul.f32 1.442695, %v4245_v7 }
 0x8c5   : > { %v4243_v12 = vpop.xlane.xlu0 %4242 }
 0x8c6   : > { %9019 = vpow2.f32 %v4249_v57  ;;  %v4246_v13 = vsub.f32 %v4234_v61, %v4243_v12 }
 0x8c8   : > { %v4251_v14 = vmul.f32 1.442695, %v4246_v13 }
 0x8ca   : > { %9021 = vpow2.f32 %v4251_v14 }
 0x8cc   : > { %v9018_v8 = vpop.eup %9017 }
 0x8cd   : > { %v4253_v9 = vsel %vm757_vm2, %v9018_v8, 0.0 }
 0x8ce   : > { %4254 = vadd.xlane.f32.xlu1 %v4253_v9 }
 0x8d0   : > { %v9020_v10 = vpop.eup %9019 }
 0x8d1   : > { %v4256_v11 = vsel %vm757_vm2, %v9020_v10, 0.0 }
 0x8d2   : > { %4257 = vadd.xlane.f32.xlu0 %v4256_v11 }
 0x8d4   : > { %v9022_v15 = vpop.eup %9021 }
 0x8d5   : > { %v4259_v16 = vsel %vm764_vm3, %v9022_v15, 0.0 }
 0x8df   : > { %4270 = vrot.lane.b32.xlu1 %v9606_v19, %s9065_s29 }
 0x8e8   : > { %4268 = vrot.lane.b32.xlu0 %v9602_v18, %s9065_s29 }
 0x8ec   : > { %5397 = vrot.lane.b32.xlu0 %v9602_v18, %s9066_s30 }
 0x8f0   : > { %5391 = vrot.lane.b32.xlu0 %v9602_v18, %s9067_s4 }
 0x8f4   : > { %5401 = vrot.lane.b32.xlu0 %v9610_v20, %s9066_s30 }
 0x903   : > { %4260 = vadd.xlane.f32.xlu1 %v4259_v16 }
 0x914   : > { %4272 = vrot.lane.b32.xlu1 %v9610_v20, %s9065_s29 }
 0x918   : > { %5399 = vrot.lane.b32.xlu1 %v9606_v19, %s9066_s30 }
 0x91c   : > { %5393 = vrot.lane.b32.xlu1 %v9606_v19, %s9067_s4 }
 0x920   : > { %5395 = vrot.lane.b32.xlu1 %v9610_v20, %s9067_s4 }
 0x95b   : > { %v4255_v17 = vpop.xlane.xlu1 %4254 }
 0x95c   : > { %9023 = vrcp.f32 %v4255_v17 }
 0x95f   : > { %v4258_v21 = vpop.xlane.xlu0 %4257  ;;  %v4271_v22 = vpop.permute.xlu1 %4270 }
 0x960   : > { %v4291_v24 = vand.u32 4294901760, %v4271_v22  ;;  %9025 = vrcp.f32 %v4258_v21 }
 0x962   : > { %v9916_v2 = vsub.f32 %v4271_v22, %v4291_v24 }
 0x963   : > { %v4269_v23 = vpop.permute.xlu0 %4268 }
 0x964   : > { %v4288_v25 = vand.u32 4294901760, %v4269_v23  ;;  %v4395_v36 = vand.u32 4294901760, %v9916_v2 }
 0x966   : > { %v9900_v26 = vpack.c.bf16 %v4291_v24, %v4288_v25  ;;  %v9024_v27 = vpop.eup %9023  ;;  %v9913_v34 = vsub.f32 %v4269_v23, %v4288_v25  ;;  %v4396_v39 = vsub.f32 %v9916_v2, %v4395_v36 }
 0x967   : > { %v4265_v29 = vmul.f32 %v9024_v27, %v9018_v8  ;;  %v7210_v8 = vld [vmem:[%s10374_s1 + $0x10] sm:$0xff] }
 0x968   : > { %8675 = vmatpush3.bf16.msra.mxu0 %v9900_v26  ;;  %v4388_v35 = vand.u32 4294901760, %v9913_v34  ;;  %v4397_v46 = vand.u32 4294901760, %v4396_v39  ;;  %v8680_v7 = vpack.c.bf16 %v9916_v2, %v9913_v34  ;;  %v4857_v9 = vand.u32 4294901760, %v7210_v8 }
 0x969   : > { %8185 = vmatprep.subr.mxu0 %v9058_v4  ;;  %v4277_v31 = vsel %vm757_vm2, %v4265_v29, 0 }
 0x96a   : > { %v9026_v30 = vpop.eup %9025  ;;  %v9911_v28 = vand.u32 4294901760, %v4277_v31  ;;  %v4389_v3 = vsub.f32 %v9913_v34, %v4388_v35  ;;  %v8686_v57 = vpack.c.bf16 %v4395_v36, %v4388_v35  ;;  %8272 = vmatpush3.msra.mxu1 %v4857_v9 }
 0x96b   : > { %v4266_v32 = vmul.f32 %v9026_v30, %v9020_v10  ;;  %v10016_v10 = vsub.f32 %v7210_v8, %v4857_v9  ;;  %8293 = vmatprep.subr.mxu1 %v9058_v4 }
 0x96c   : > { %v9919_v19 = vsub.f32 %v4277_v31, %v9911_v28  ;;  %v4390_v42 = vand.u32 4294901760, %v4389_v3 }
 0x96d   : > { %v4280_v18 = vsel %vm757_vm2, %v4266_v32, 0  ;;  %v4955_v11 = vand.u32 4294901760, %v10016_v10 }
 0x96e   : > { %v9921_v20 = vand.u32 4294901760, %v4280_v18  ;;  %v4357_v1 = vand.u32 4294901760, %v9919_v19  ;;  %v8677_v52 = vpack.c.bf16 %v4397_v46, %v4390_v42 }
 0x96f   : > { %v4956_v12 = vsub.f32 %v10016_v10, %v4955_v11 }
 0x970   : > { %v9927_v37 = vsub.f32 %v4280_v18, %v9921_v20  ;;  %v4358_v40 = vsub.f32 %v9919_v19, %v4357_v1 }
 0x971   : > { %v4957_v13 = vand.u32 4294901760, %v4956_v12 }
 0x972   : > { %v4367_v33 = vand.u32 4294901760, %v9927_v37  ;;  %v4359_v49 = vand.u32 4294901760, %v4358_v40 }
 0x974   : > { %v4368_v50 = vsub.f32 %v9927_v37, %v4367_v33 }
 0x976   : > { %v4369_v58 = vand.u32 4294901760, %v4368_v50 }
 0x990   : > { %v4261_v38 = vpop.xlane.xlu1 %4260 }
 0x991   : > { %9027 = vrcp.f32 %v4261_v38 }
 0x994   : > { %v4273_v43 = vpop.permute.xlu1 %4272 }
 0x995   : > { %v4285_v45 = vsel %vm809_vm4, %v4273_v43, 0 }
 0x996   : > { %v9940_v47 = vand.u32 4294901760, %v4285_v45 }
 0x998   : > { %v4401_v51 = vsub.f32 %v4285_v45, %v9940_v47  ;;  %8186 = vmatpush3.msra.mxu0 %v9940_v47  ;;  %v5400_v3 = vpop.permute.xlu1 %5399 }
 0x999   : > { %8188 = vmatmul.mubr.f32.vlgmr.msra.gmra.mrb[48].mxu0 %v4359_v49  ;;  %8676 = vmatprep.subr.bf16.mxu0 %v9055_v0  ;;  %v5411_v38 = vsel %vm183_vm1, %v5400_v3, 0 }
 0x99a   : > { %v4402_v54 = vand.u32 4294901760, %v4401_v51  ;;  %8678 = vmatpush3.bf16.msra.mxu0 %v8677_v52  ;;  %8190 = vmatprep.mubr.msk.f32.mxu0 %vm9057_vm0, %v9058_v4  ;;  %v5419_v42 = vand.u32 4294901760, %v5411_v38 }
 0x99b   : > { %v9028_v56 = vpop.eup %9027  ;;  %8200 = vmatprep.subr.mxu0 %v9058_v4 }
 0x99c   : > { %v4267_v59 = vmul.f32 %v9028_v56, %v9022_v15  ;;  %v4403_v60 = vsub.f32 %v4401_v51, %v4402_v54 }
 0x99d   : > { %8191 = vmatmul.mubr.f32.gmra.mrb[50].mxu0 %v4369_v58 }
 0x99e   : > { %v4404_v61 = vand.u32 4294901760, %v4403_v60  ;;  %8193 = vmatprep.mubr.msk.f32.mxu0 %vm9057_vm0, %v9058_v4  ;;  %v4283_v62 = vsel %vm757_vm2, %v4267_v59, 0 }
 0x99f   : > { %v4375_v53 = vand.u32 4294901760, %v4283_v62 }
 0x9a0   : > { %8201 = vmatpush3.msra.mxu0 %v4404_v61 }
 0x9a1   : > { %v4376_v63 = vsub.f32 %v4283_v62, %v4375_v53  ;;  %8679 = vmatprep.subr.bf16.mxu0 %v9055_v0 }
 0x9a3   : > { %v4377_v5 = vand.u32 4294901760, %v4376_v63 }
 0x9a5   : > { %v4378_v55 = vsub.f32 %v4376_v63, %v4377_v5 }
 0x9a7   : > { %v4379_v6 = vand.u32 4294901760, %v4378_v55 }
 0x9a9   : > { %8194 = vmatmul.mubr.f32.gmra.mrb[52].mxu0 %v4379_v6 }
 0x9aa   : > { %8202 = vmatprep.mubr.msk.f32.mxu0 %vm9057_vm0, %v9058_v4 }
 0x9ad   : > { %8203 = vmatmul.mubr.f32.vlgmr.msra.gmra.mrb[48].mxu0 %v9911_v28 }
 0x9ae   : > { %8681 = vmatpush3.bf16.msra.mxu0 %v8680_v7  ;;  %8205 = vmatprep.mubr.msk.f32.mxu0 %vm9057_vm0, %v9058_v4 }
 0x9af   : > { %8215 = vmatprep.subr.mxu0 %v9058_v4 }
 0x9b1   : > { %8206 = vmatmul.mubr.f32.gmra.mrb[50].mxu0 %v9921_v20 }
 0x9b2   : > { %8216 = vmatpush3.msra.mxu0 %v4401_v51  ;;  %8208 = vmatprep.mubr.msk.f32.mxu0 %vm9057_vm0, %v9058_v4 }
 0x9b3   : > { %8682 = vmatprep.subr.bf16.mxu0 %v9055_v0 }
 0x9b5   : > { %8209 = vmatmul.mubr.f32.gmra.mrb[52].mxu0 %v4375_v53 }
 0x9b6   : > { %8217 = vmatprep.mubr.msk.f32.mxu0 %vm9057_vm0, %v9058_v4 }
 0x9b9   : > { %8218 = vmatmul.mubr.f32.vlgmr.msra.gmra.mrb[48].mxu0 %v9919_v19 }
 0x9ba   : > { %8684 = vmatpush3.bf16.msra.mxu0 %v9900_v26  ;;  %8220 = vmatprep.mubr.msk.f32.mxu0 %vm9057_vm0, %v9058_v4 }
 0x9bb   : > { %8230 = vmatprep.subr.mxu0 %v9058_v4 }
 0x9bd   : > { %8221 = vmatmul.mubr.f32.gmra.mrb[50].mxu0 %v9927_v37  ;;  %v5398_v37 = vpop.permute.xlu0 %5397 }
 0x9be   : > { %8231 = vmatpush3.msra.mxu0 %v9940_v47  ;;  %8223 = vmatprep.mubr.msk.f32.mxu0 %vm9057_vm0, %v9058_v4  ;;  %v5409_v39 = vsel %vm183_vm1, %v5398_v37, 0 }
 0x9bf   : > { %8685 = vmatprep.subr.bf16.mxu0 %v9055_v0  ;;  %v5416_v43 = vand.u32 4294901760, %v5409_v39 }
 0x9c1   : > { %8224 = vmatmul.mubr.f32.gmra.mrb[52].mxu0 %v4376_v63  ;;  %v5392_v40 = vpop.permute.xlu0 %5391  ;;  %v10074_v49 = vsub.f32 %v5409_v39, %v5416_v43  ;;  %v10078_v52 = vpack.c.bf16 %v5419_v42, %v5416_v43 }
 0x9c2   : > { %8232 = vmatprep.mubr.msk.f32.mxu0 %vm9057_vm0, %v9058_v4  ;;  %v5403_v45 = vsel %vm183_vm1, %v5392_v40, 0 }
 0x9c3   : > { %v10070_v46 = vand.u32 4294901760, %v5403_v45  ;;  %v5516_v60 = vand.u32 4294901760, %v10074_v49 }
 0x9c5   : > { %8233 = vmatmul.mubr.f32.vlgmr.msra.gmra.mrb[48].mxu0 %v4357_v1  ;;  %v10085_v56 = vsub.f32 %v5403_v45, %v10070_v46  ;;  %v5517_v6 = vsub.f32 %v10074_v49, %v5516_v60 }
 0x9c6   : > { %8687 = vmatpush3.bf16.msra.mxu0 %v8686_v57  ;;  %8235 = vmatprep.mubr.msk.f32.mxu0 %vm9057_vm0, %v9058_v4 }
 0x9c7   : > { %8245 = vmatprep.subr.mxu0 %v9058_v4 }
 0x9c9   : > { %8236 = vmatmul.mubr.f32.gmra.mrb[50].mxu0 %v4367_v33  ;;  %v5394_v33 = vpop.permute.xlu1 %5393 }
 0x9ca   : > { %8246 = vmatpush3.msra.mxu0 %v4402_v54  ;;  %8238 = vmatprep.mubr.msk.f32.mxu0 %vm9057_vm0, %v9058_v4  ;;  %v5405_v50 = vsel %vm183_vm1, %v5394_v33, 0  ;;  %v5402_v54 = vpop.permute.xlu0 %5401 }
 0x9cb   : > { %8688 = vmatprep.subr.bf16.mxu0 %v9055_v0  ;;  %v10087_v58 = vand.u32 4294901760, %v5405_v50  ;;  %v5413_v62 = vsel %vm183_vm1, %v5402_v54, 0 }
 0x9cc   : > { %v10113_v7 = vand.u32 4294901760, %v5413_v62 }
 0x9cd   : > { %8239 = vmatmul.mubr.f32.gmra.mrb[52].mxu0 %v4377_v5  ;;  %v5396_v51 = vpop.permute.xlu1 %5395  ;;  %v10100_v63 = vsub.f32 %v5405_v50, %v10087_v58 }
 0x9ce   : > { %8247 = vmatprep.mubr.msk.f32.mxu0 %vm9057_vm0, %v9058_v4  ;;  %v5407_v61 = vsel %vm183_vm1, %v5396_v51, 0  ;;  %v5529_v12 = vsub.f32 %v5413_v62, %v10113_v7 }
 0x9cf   : > { %v10102_v5 = vand.u32 4294901760, %v5407_v61  ;;  %v5495_v8 = vand.u32 4294901760, %v10100_v63 }
 0x9d1   : > { %8248 = vmatmul.mubr.f32.vlgmr.msra.gmra.mrb[48].mxu0 %v9911_v28 }
 0x9d2   : > { %8690 = vmatpush3.bf16.msra.mxu0 %v9900_v26  ;;  %8250 = vmatprep.mubr.msk.f32.mxu0 %vm9057_vm0, %v9058_v4 }
 0x9d3   : > { %8260 = vmatprep.subr.mxu0 %v9058_v4 }
 0x9d5   : > { %8251 = vmatmul.mubr.f32.gmra.mrb[50].mxu0 %v9921_v20 }
 0x9d6   : > { %8261 = vmatpush3.msra.mxu0 %v9940_v47  ;;  %8253 = vmatprep.mubr.msk.f32.mxu0 %vm9057_vm0, %v9058_v4  ;;  %v10072_v47 = vsub.f32 %v5411_v38, %v5419_v42 }
 0x9d7   : > { %8282 = vmatprep.subr.mxu0 %v9058_v4 }
 0x9d8   : > { %v5523_v59 = vand.u32 4294901760, %v10072_v47 }
 0x9d9   : > { %8254 = vmatmul.mubr.f32.gmra.mrb[52].mxu0 %v4375_v53 }
 0x9da   : > { %8262 = vmatprep.mubr.msk.f32.mxu0 %vm9057_vm0, %v9058_v4  ;;  %v5524_v55 = vsub.f32 %v10072_v47, %v5523_v59 }
 0x9dd   : > { %8263 = vmatmul.mubr.f32.vlgmr.msra.gmra.mrb[48].mxu0 %v9911_v28 }
 0x9de   : > { %8265 = vmatprep.mubr.msk.f32.mxu0 %vm9057_vm0, %v9058_v4  ;;  %8283 = vmatpush3.msra.mxu0 %v4957_v13 }
 0x9df   : > { %8304 = vmatprep.subr.mxu0 %v9058_v4 }
 0x9e1   : > { %8266 = vmatmul.mubr.f32.gmra.mrb[50].mxu0 %v9921_v20 }
 0x9e2   : > { %8268 = vmatprep.mubr.msk.f32.mxu0 %vm9057_vm0, %v9058_v4 }
 0x9e5   : > { %8269 = vmatmul.mubr.f32.gmra.mrb[52].mxu0 %v4375_v53  ;;  %v5485_v53 = vand.u32 4294901760, %v10085_v56 }
 0x9e6   : > { %8284 = vmatprep.mubr.msk.f32.mxu0 %vm9057_vm0, %v9058_v4 }
 0x9e7   : > { %v5486_v57 = vsub.f32 %v10085_v56, %v5485_v53 }
 0x9e9   : > { %v5487_v13 = vand.u32 4294901760, %v5486_v57 }
 0xab0   : > { %v4829_v14 = vpop.f32.mrb[48].mxu0 }
 0xab1   : > { %v4848_v15 = vsel %vm183_vm1, %v4829_v14, 0  ;;  %v8264_v16 = vpop.f32.mrb[49].mxu0 }
 0xab2   : > { %v10023_v17 = vand.u32 4294901760, %v4848_v15  ;;  %v5530_v16 = vand.u32 4294901760, %v5529_v12 }
 0xab4   : > { %v4923_v21 = vsub.f32 %v4848_v15, %v10023_v17  ;;  %v4835_v22 = vpop.f32.mrb[50].mxu0  ;;  %8285 = vmatmul.mubr.f32.vlgmr.msra.gmra.mrb[54].mxu0 %v10023_v17  ;;  %v5496_v15 = vsub.f32 %v10100_v63, %v5495_v8 }
 0xab5   : > { %v4851_v23 = vsel %vm183_vm1, %v4835_v22, 0  ;;  %v8267_v24 = vpop.f32.mrb[51].mxu0  ;;  %8287 = vmatprep.mubr.msk.f32.mxu0 %vm9057_vm0, %v9058_v4  ;;  %8305 = vmatpush3.msra.mxu0 %v4857_v9 }
 0xab6   : > { %v4924_v25 = vand.u32 4294901760, %v4923_v21  ;;  %v10030_v26 = vand.u32 4294901760, %v4851_v23  ;;  %8326 = vmatprep.subr.mxu0 %v9058_v4 }
 0xab8   : > { %v4925_v27 = vsub.f32 %v4923_v21, %v4924_v25  ;;  %v4933_v29 = vsub.f32 %v4851_v23, %v10030_v26  ;;  %v4841_v30 = vpop.f32.mrb[52].mxu0  ;;  %8288 = vmatmul.mubr.f32.gmra.mrb[56].mxu0 %v10030_v26  ;;  %v5531_v23 = vsub.f32 %v5529_v12, %v5530_v16 }
 0xab9   : > { %v4854_v31 = vsel %vm183_vm1, %v4841_v30, 0  ;;  %v8270_v32 = vpop.f32.mrb[53].mxu0  ;;  %8290 = vmatprep.mubr.msk.f32.mxu0 %vm9057_vm0, %v9058_v4 }
 0xaba   : > { %v4926_v28 = vand.u32 4294901760, %v4925_v27  ;;  %v4934_v34 = vand.u32 4294901760, %v4933_v29  ;;  %v10038_v18 = vand.u32 4294901760, %v4854_v31  ;;  %v8704_v27 = vpack.c.bf16 %v5523_v59, %v5516_v60 }
 0xabc   : > { %v4943_v2 = vsub.f32 %v4854_v31, %v10038_v18  ;;  %8274 = vmatmul.mubr.f32.vlgmr.msra.gmra.mrb[56].mxu1 %v4926_v28  ;;  %8291 = vmatmul.mubr.f32.gmra.mrb[58].mxu0 %v10038_v18  ;;  %v4935_v19 = vsub.f32 %v4933_v29, %v4934_v34 }
 0xabd   : > { %8276 = vmatprep.mubr.msk.f32.mxu1 %vm9057_vm0, %v9058_v4  ;;  %8306 = vmatprep.mubr.msk.f32.mxu0 %vm9057_vm0, %v9058_v4 }
 0xabe   : > { %v4944_v20 = vand.u32 4294901760, %v4943_v2  ;;  %v4936_v35 = vand.u32 4294901760, %v4935_v19  ;;  %8294 = vmatpush3.msra.mxu1 %v10016_v10  ;;  %v5525_v10 = vand.u32 4294901760, %v5524_v55 }
 0xabf   : > { %8315 = vmatprep.subr.mxu1 %v9058_v4 }
 0xac0   : > { %8277 = vmatmul.mubr.f32.gmra.mrb[58].mxu1 %v4936_v35  ;;  %8307 = vmatmul.mubr.f32.vlgmr.msra.gmra.mrb[60].mxu0 %v4924_v25  ;;  %v4945_v36 = vsub.f32 %v4943_v2, %v4944_v20  ;;  %v5532_v25 = vand.u32 4294901760, %v5531_v23 }
 0xac1   : > { %8279 = vmatprep.mubr.msk.f32.mxu1 %vm9057_vm0, %v9058_v4  ;;  %8309 = vmatprep.mubr.msk.f32.mxu0 %vm9057_vm0, %v9058_v4 }
 0xac2   : > { %v4946_v1 = vand.u32 4294901760, %v4945_v36  ;;  %8327 = vmatpush3.msra.mxu0 %v4857_v9  ;;  %v5504_v9 = vsub.f32 %v5407_v61, %v10102_v5 }
 0xac3   : > { %8709 = vmatprep.subr.bf16.mxu0 %v9055_v0 }
 0xac4   : > { %8280 = vmatmul.mubr.f32.gmra.mrb[60].mxu1 %v4946_v1  ;;  %8310 = vmatmul.mubr.f32.gmra.mrb[62].mxu0 %v4934_v34  ;;  %v5505_v14 = vand.u32 4294901760, %v5504_v9 }
 0xac5   : > { %8295 = vmatprep.mubr.msk.f32.mxu1 %vm9057_vm0, %v9058_v4  ;;  %8312 = vmatprep.mubr.msk.f32.mxu0 %vm9057_vm0, %v9058_v4 }
 0xac6   : > { %v5506_v22 = vsub.f32 %v5504_v9, %v5505_v14 }
 0xac8   : > { %8296 = vmatmul.mubr.f32.vlgmr.msra.gmra.mrb[62].mxu1 %v4923_v21  ;;  %8313 = vmatmul.mubr.f32.gmra.mrb[64].mxu0 %v4944_v20  ;;  %v5497_v21 = vand.u32 4294901760, %v5496_v15  ;;  %v5507_v24 = vand.u32 4294901760, %v5506_v22 }
 0xac9   : > { %8298 = vmatprep.mubr.msk.f32.mxu1 %vm9057_vm0, %v9058_v4  ;;  %8328 = vmatprep.mubr.msk.f32.mxu0 %vm9057_vm0, %v9058_v4 }
 0xaca   : > { %8316 = vmatpush3.msra.mxu1 %v4955_v11  ;;  %v5518_v11 = vand.u32 4294901760, %v5517_v6 }
 0xacb   : > { %8691 = vmatprep.subr.bf16.mxu1 %v9055_v0 }
 0xacc   : > { %8299 = vmatmul.mubr.f32.gmra.mrb[64].mxu1 %v4933_v29  ;;  %8329 = vmatmul.mubr.f32.vlgmr.msra.gmra.mrb[66].mxu0 %v10023_v17 }
 0xacd   : > { %8301 = vmatprep.mubr.msk.f32.mxu1 %vm9057_vm0, %v9058_v4  ;;  %8331 = vmatprep.mubr.msk.f32.mxu0 %vm9057_vm0, %v9058_v4 }
 0xad0   : > { %8302 = vmatmul.mubr.f32.gmra.mrb[66].mxu1 %v4943_v2  ;;  %8332 = vmatmul.mubr.f32.gmra.mrb[68].mxu0 %v10030_v26 }
 0xad1   : > { %8317 = vmatprep.mubr.msk.f32.mxu1 %vm9057_vm0, %v9058_v4  ;;  %8334 = vmatprep.mubr.msk.f32.mxu0 %vm9057_vm0, %v9058_v4 }
 0xad4   : > { %8318 = vmatmul.mubr.f32.vlgmr.msra.gmra.mrb[68].mxu1 %v10023_v17  ;;  %8335 = vmatmul.mubr.f32.gmra.mrb[70].mxu0 %v10038_v18  ;;  %v8695_v17 = vpack.c.bf16 %v5525_v10, %v5518_v11 }
 0xad5   : > { %8693 = vmatpush3.bf16.xpose.msra.mxu1 %v10078_v52  ;;  %8320 = vmatprep.mubr.msk.f32.mxu1 %vm9057_vm0, %v9058_v4 }
 0xad6   : > { %8341 = vmatprep.subr.mxu1 %v9058_v4  ;;  %8433 = vmatprep.mubr.msk.f32.mxu0 %vm9057_vm0, %v9058_v4 }
 0xad8   : > { %8321 = vmatmul.mubr.f32.gmra.mrb[70].mxu1 %v10030_v26  ;;  %v8698_v26 = vpack.c.bf16 %v10072_v47, %v10074_v49 }
 0xad9   : > { %8323 = vmatprep.mubr.msk.f32.mxu1 %vm9057_vm0, %v9058_v4 }
 0xadc   : > { %8324 = vmatmul.mubr.f32.gmra.mrb[72].mxu1 %v10038_v18 }
 0xadd   : > { %8342 = vmatpush3.xpose.msra.mxu1 %v10113_v7  ;;  %8343 = vmatprep.mubr.msk.f32.mxu1 %vm9057_vm0, %v9058_v4 }
 0xade   : > { %8694 = vmatprep.subr.bf16.mxu1 %v9055_v0 }
 0xae0   : > { %8344 = vmatmul.mubr.f32.vlgmr.msra.gmra.mrb[74].mxu1 %v5487_v13 }
 0xae1   : > { %8696 = vmatpush3.bf16.xpose.msra.mxu1 %v8695_v17  ;;  %8346 = vmatprep.mubr.msk.f32.mxu1 %vm9057_vm0, %v9058_v4 }
 0xae2   : > { %8356 = vmatprep.subr.mxu1 %v9058_v4 }
 0xae4   : > { %8347 = vmatmul.mubr.f32.gmra.mrb[76].mxu1 %v5497_v21 }
 0xae5   : > { %8349 = vmatprep.mubr.msk.f32.mxu1 %vm9057_vm0, %v9058_v4 }
 0xae8   : > { %8350 = vmatmul.mubr.f32.gmra.mrb[78].mxu1 %v5507_v24 }
 0xae9   : > { %8357 = vmatpush3.xpose.msra.mxu1 %v5532_v25  ;;  %8358 = vmatprep.mubr.msk.f32.mxu1 %vm9057_vm0, %v9058_v4 }
 0xaea   : > { %8697 = vmatprep.subr.bf16.mxu1 %v9055_v0 }
 0xaec   : > { %8359 = vmatmul.mubr.f32.vlgmr.msra.gmra.mrb[74].mxu1 %v10070_v46 }
 0xaed   : > { %8699 = vmatpush3.bf16.xpose.msra.mxu1 %v8698_v26  ;;  %8361 = vmatprep.mubr.msk.f32.mxu1 %vm9057_vm0, %v9058_v4 }
 0xaee   : > { %8371 = vmatprep.subr.mxu1 %v9058_v4 }
 0xaf0   : > { %8362 = vmatmul.mubr.f32.gmra.mrb[76].mxu1 %v10087_v58 }
 0xaf1   : > { %8364 = vmatprep.mubr.msk.f32.mxu1 %vm9057_vm0, %v9058_v4 }
 0xaf4   : > { %8365 = vmatmul.mubr.f32.gmra.mrb[78].mxu1 %v10102_v5 }
 0xaf5   : > { %8372 = vmatpush3.xpose.msra.mxu1 %v5529_v12  ;;  %8373 = vmatprep.mubr.msk.f32.mxu1 %vm9057_vm0, %v9058_v4 }
 0xaf6   : > { %8700 = vmatprep.subr.bf16.mxu1 %v9055_v0 }
 0xaf8   : > { %8374 = vmatmul.mubr.f32.vlgmr.msra.gmra.mrb[74].mxu1 %v10085_v56 }
 0xaf9   : > { %8702 = vmatpush3.bf16.xpose.msra.mxu1 %v10078_v52  ;;  %8376 = vmatprep.mubr.msk.f32.mxu1 %vm9057_vm0, %v9058_v4 }
 0xafa   : > { %8386 = vmatprep.subr.mxu1 %v9058_v4 }
 0xafc   : > { %8377 = vmatmul.mubr.f32.gmra.mrb[76].mxu1 %v10100_v63 }
 0xafd   : > { %8379 = vmatprep.mubr.msk.f32.mxu1 %vm9057_vm0, %v9058_v4 }
 0xb00   : > { %8380 = vmatmul.mubr.f32.gmra.mrb[78].mxu1 %v5504_v9 }
 0xb01   : > { %8387 = vmatpush3.xpose.msra.mxu1 %v10113_v7  ;;  %8388 = vmatprep.mubr.msk.f32.mxu1 %vm9057_vm0, %v9058_v4 }
 0xb02   : > { %8703 = vmatprep.subr.bf16.mxu1 %v9055_v0 }
 0xb04   : > { %8389 = vmatmul.mubr.f32.vlgmr.msra.gmra.mrb[74].mxu1 %v5485_v53 }
 0xb05   : > { %8705 = vmatpush3.bf16.xpose.msra.mxu1 %v8704_v27  ;;  %8391 = vmatprep.mubr.msk.f32.mxu1 %vm9057_vm0, %v9058_v4 }
 0xb06   : > { %8401 = vmatprep.subr.mxu1 %v9058_v4 }
 0xb08   : > { %8392 = vmatmul.mubr.f32.gmra.mrb[76].mxu1 %v5495_v8 }
 0xb09   : > { %8394 = vmatprep.mubr.msk.f32.mxu1 %vm9057_vm0, %v9058_v4 }
 0xb0c   : > { %8395 = vmatmul.mubr.f32.gmra.mrb[78].mxu1 %v5505_v14 }
 0xb0d   : > { %8402 = vmatpush3.xpose.msra.mxu1 %v5530_v16  ;;  %8403 = vmatprep.mubr.msk.f32.mxu1 %vm9057_vm0, %v9058_v4 }
 0xb0e   : > { %8706 = vmatprep.subr.bf16.mxu1 %v9055_v0 }
 0xb10   : > { %8404 = vmatmul.mubr.f32.vlgmr.msra.gmra.mrb[74].mxu1 %v10070_v46 }
 0xb11   : > { %8708 = vmatpush3.bf16.xpose.msra.mxu1 %v10078_v52  ;;  %8406 = vmatprep.mubr.msk.f32.mxu1 %vm9057_vm0, %v9058_v4 }
 0xb12   : > { %8416 = vmatprep.subr.mxu1 %v9058_v4 }
 0xb14   : > { %8407 = vmatmul.mubr.f32.gmra.mrb[76].mxu1 %v10087_v58 }
 0xb15   : > { %8409 = vmatprep.mubr.msk.f32.mxu1 %vm9057_vm0, %v9058_v4 }
 0xb18   : > { %8410 = vmatmul.mubr.f32.gmra.mrb[78].mxu1 %v10102_v5 }
 0xb19   : > { %8417 = vmatpush3.xpose.msra.mxu1 %v10113_v7  ;;  %8418 = vmatprep.mubr.msk.f32.mxu1 %vm9057_vm0, %v9058_v4 }
 0xb1a   : > { %8517 = vmatprep.subr.mxu1 %v9058_v4 }
 0xb1c   : > { %8419 = vmatmul.mubr.f32.vlgmr.msra.gmra.mrb[74].mxu1 %v10070_v46 }
 0xb1d   : > { %8421 = vmatprep.mubr.msk.f32.mxu1 %vm9057_vm0, %v9058_v4 }
 0xb20   : > { %8422 = vmatmul.mubr.f32.gmra.mrb[76].mxu1 %v10087_v58 }
 0xb21   : > { %8424 = vmatprep.mubr.msk.f32.mxu1 %vm9057_vm0, %v9058_v4 }
 0xb24   : > { %8425 = vmatmul.mubr.f32.gmra.mrb[78].mxu1 %v10102_v5 }
 0xb25   : > { %8519 = vmatprep.mubr.msk.f32.mxu1 %vm9057_vm0, %v9058_v4 }
 0xb87   : > { %v5024_v29 = vpop.f32.mrb[54].mxu0 }
 0xb88   : > { %v8286_v30 = vpop.f32.mrb[55].mxu0 }
 0xb8b   : > { %v5030_v31 = vpop.f32.mrb[56].mxu0 }
 0xb8c   : > { %v8289_v32 = vpop.f32.mrb[57].mxu0 }
 0xb8f   : > { %v4928_v28 = vpop.f32.mrb[56].mxu1  ;;  %v5036_v34 = vpop.f32.mrb[58].mxu0 }
 0xb90   : > { %v5025_v18 = vadd.f32 %v5024_v29, %v4928_v28  ;;  %v8275_v2 = vpop.f32.mrb[57].mxu1  ;;  %v8292_v19 = vpop.f32.mrb[59].mxu0 }
 0xb93   : > { %v4938_v20 = vpop.f32.mrb[58].mxu1  ;;  %v5198_v35 = vpop.f32.mrb[60].mxu0 }
 0xb94   : > { %v5031_v36 = vadd.f32 %v5030_v31, %v4938_v20  ;;  %v8278_v1 = vpop.f32.mrb[59].mxu1  ;;  %v8308_v37 = vpop.f32.mrb[61].mxu0 }
 0xb97   : > { %v4948_v3 = vpop.f32.mrb[60].mxu1  ;;  %v5206_v38 = vpop.f32.mrb[62].mxu0 }
 0xb98   : > { %v5037_v39 = vadd.f32 %v5036_v34, %v4948_v3  ;;  %v8281_v40 = vpop.f32.mrb[61].mxu1  ;;  %v8311_v33 = vpop.f32.mrb[63].mxu0 }
 0xb9b   : > { %v5110_v42 = vpop.f32.mrb[62].mxu1  ;;  %v5214_v43 = vpop.f32.mrb[64].mxu0 }
 0xb9c   : > { %v5111_v45 = vadd.f32 %v5110_v42, %v5025_v18  ;;  %v8297_v46 = vpop.f32.mrb[63].mxu1  ;;  %v8314_v47 = vpop.f32.mrb[65].mxu0 }
 0xb9e   : > { %v5199_v49 = vadd.f32 %v5198_v35, %v5111_v45  ;;  %v9046_v45 = vld [vmem:[%s9107_s17 + $0x8] sm:$0xff] }
 0xb9f   : > { %v5117_v50 = vpop.f32.mrb[64].mxu1  ;;  %v5372_v51 = vpop.f32.mrb[66].mxu0 }
 0xba0   : > { %v5118_v52 = vadd.f32 %v5117_v50, %v5031_v36  ;;  %v8300_v54 = vpop.f32.mrb[65].mxu1  ;;  %v8330_v56 = vpop.f32.mrb[67].mxu0 }
 0xba2   : > { %v5207_v58 = vadd.f32 %v5206_v38, %v5118_v52 }
 0xba3   : > { %v5124_v59 = vpop.f32.mrb[66].mxu1  ;;  %v5378_v60 = vpop.f32.mrb[68].mxu0 }
 0xba4   : > { %v5125_v61 = vadd.f32 %v5124_v59, %v5037_v39  ;;  %v8303_v62 = vpop.f32.mrb[67].mxu1  ;;  %v8333_v53 = vpop.f32.mrb[69].mxu0 }
 0xba6   : > { %v5215_v63 = vadd.f32 %v5214_v43, %v5125_v61  ;;  %v9045_v43 = vld [vmem:[%s9107_s17 + $0x10] sm:$0x1] }
 0xba7   : > { %v5288_v5 = vpop.f32.mrb[68].mxu1  ;;  %v5384_v55 = vpop.f32.mrb[70].mxu0 }
 0xba8   : > { %v5289_v6 = vadd.f32 %v5288_v5, %v5199_v49  ;;  %v8319_v7 = vpop.f32.mrb[69].mxu1  ;;  %v8336_v57 = vpop.f32.mrb[71].mxu0 }
 0xbaa   : > { %v5373_v8 = vadd.f32 %v5372_v51, %v5289_v6 }
 0xbab   : > { %v5294_v9 = vpop.f32.mrb[70].mxu1 }
 0xbac   : > { %v10196_v10 = vadd.f32 %v5373_v8, %v9885_v41  ;;  %v5295_v11 = vadd.f32 %v5294_v9, %v5207_v58  ;;  %v8322_v12 = vpop.f32.mrb[71].mxu1 }
 0xbae   : > { %v5379_v13 = vadd.f32 %v5378_v60, %v5295_v11 }
 0xbaf   : > { %v5300_v14 = vpop.f32.mrb[72].mxu1 }
 0xbb0   : > { %v10199_v15 = vadd.f32 %v5379_v13, %v9887_v44  ;;  %v5301_v16 = vadd.f32 %v5300_v14, %v5215_v63  ;;  %v8325_v17 = vpop.f32.mrb[73].mxu1 }
 0xbb2   : > { %v5385_v21 = vadd.f32 %v5384_v55, %v5301_v16 }
 0xbb4   : > { %v10202_v22 = vadd.f32 %v5385_v21, %v9889_v48  ;;  %v9044_v48 = vld [vmem:[%s9107_s17] sm:$0xff]  ;;  %s170_s17 = scalar_lea.vmem %s10376_s3, %s8970_s14 }
 0xbef   : > { %v5957_v23 = vpop.f32.mrb[74].mxu1 }
 0xbf0   : > { %v5973_v24 = vmul.f32 0.35355338, %v5957_v23  ;;  %v8420_v25 = vpop.f32.mrb[75].mxu1 }
 0xbf2   : > { %v5976_v41 = vsel %vm757_vm2, %v5973_v24, -inf }
 0xbf3   : > { %5977 = vmax.xlane.f32.xlu0 %v5976_v41  ;;  %v5963_v26 = vpop.f32.mrb[76].mxu1 }
 0xbf4   : > { %v5974_v27 = vmul.f32 0.35355338, %v5963_v26  ;;  %v8423_v29 = vpop.f32.mrb[77].mxu1 }
 0xbf6   : > { %v5979_v30 = vsel %vm757_vm2, %v5974_v27, -inf }
 0xbf7   : > { %5980 = vmax.xlane.f32.xlu1 %v5979_v30  ;;  %v5969_v44 = vpop.f32.mrb[78].mxu1 }
 0xbf8   : > { %v5975_v31 = vmul.f32 0.35355338, %v5969_v44  ;;  %v8426_v32 = vpop.f32.mrb[79].mxu1 }
 0xbfa   : > { %v5982_v28 = vsel %vm764_vm3, %v5975_v31, -inf }
 0xbfb   : > { %5983 = vmax.xlane.f32.xlu0 %v5982_v28 }
 0xc08   : > { %6009 = vrot.lane.b32.xlu1 %v9044_v48, %s9068_s7 }
 0xc80   : > { %v5978_v34 = vpop.xlane.xlu0 %5977 }
 0xc81   : > { %v5985_v18 = vsub.f32 %v5973_v24, %v5978_v34 }
 0xc83   : > { %v5988_v2 = vmul.f32 1.442695, %v5985_v18 }
 0xc84   : > { %v5981_v19 = vpop.xlane.xlu1 %5980 }
 0xc85   : > { %9029 = vpow2.f32 %v5988_v2  ;;  %v5986_v20 = vsub.f32 %v5974_v27, %v5981_v19 }
 0xc87   : > { %v5990_v35 = vmul.f32 1.442695, %v5986_v20 }
 0xc88   : > { %v5984_v36 = vpop.xlane.xlu0 %5983  ;;  %v6010_v46 = vpop.permute.xlu1 %6009 }
 0xc89   : > { %9031 = vpow2.f32 %v5990_v35  ;;  %v5987_v1 = vsub.f32 %v5975_v31, %v5984_v36  ;;  %v6029_v50 = vand.u32 4294901760, %v6010_v46 }
 0xc8b   : > { %v5992_v37 = vmul.f32 1.442695, %v5987_v1  ;;  %v10213_v54 = vsub.f32 %v6010_v46, %v6029_v50 }
 0xc8d   : > { %9033 = vpow2.f32 %v5992_v37  ;;  %v6129_v62 = vand.u32 4294901760, %v10213_v54 }
 0xc8f   : > { %v9030_v3 = vpop.eup %9029  ;;  %v6130_v9 = vsub.f32 %v10213_v54, %v6129_v62 }
 0xc90   : > { %v5994_v38 = vsel %vm757_vm2, %v9030_v3, 0.0 }
 0xc91   : > { %5995 = vadd.xlane.f32.xlu0 %v5994_v38  ;;  %v6131_v25 = vand.u32 4294901760, %v6130_v9 }
 0xc93   : > { %v9032_v39 = vpop.eup %9031 }
 0xc94   : > { %v5997_v40 = vsel %vm757_vm2, %v9032_v39, 0.0 }
 0xc95   : > { %5998 = vadd.xlane.f32.xlu1 %v5997_v40 }
 0xc97   : > { %v9034_v33 = vpop.eup %9033 }
 0xc98   : > { %v6000_v42 = vsel %vm764_vm3, %v9034_v33, 0.0 }
 0xc99   : > { %6001 = vadd.xlane.f32.xlu0 %v6000_v42 }
 0xca6   : > { %6013 = vrot.lane.b32.xlu1 %v9045_v43, %s9068_s7 }
 0xcaf   : > { %6011 = vrot.lane.b32.xlu0 %v9046_v45, %s9068_s7 }
 0xd1e   : > { %v5996_v47 = vpop.xlane.xlu0 %5995 }
 0xd1f   : > { %9035 = vrcp.f32 %v5996_v47 }
 0xd22   : > { %v5999_v49 = vpop.xlane.xlu1 %5998 }
 0xd23   : > { %9037 = vrcp.f32 %v5999_v49 }
 0xd26   : > { %v6002_v51 = vpop.xlane.xlu0 %6001  ;;  %v6014_v52 = vpop.permute.xlu1 %6013 }
 0xd27   : > { %9039 = vrcp.f32 %v6002_v51  ;;  %v6026_v56 = vsel %vm809_vm4, %v6014_v52, 0 }
 0xd28   : > { %v10216_v58 = vand.u32 4294901760, %v6026_v56 }
 0xd29   : > { %v9036_v59 = vpop.eup %9035 }
 0xd2a   : > { %v6006_v60 = vmul.f32 %v9036_v59, %v9030_v3  ;;  %v6012_v61 = vpop.permute.xlu0 %6011  ;;  %v10221_v5 = vsub.f32 %v6026_v56, %v10216_v58 }
 0xd2b   : > { %v6032_v53 = vand.u32 4294901760, %v6012_v61 }
 0xd2c   : > { %v6018_v63 = vsel %vm757_vm2, %v6006_v60, 0  ;;  %v6143_v13 = vand.u32 4294901760, %v10221_v5 }
 0xd2d   : > { %v9038_v55 = vpop.eup %9037  ;;  %v10223_v6 = vand.u32 4294901760, %v6018_v63  ;;  %v10225_v7 = vpack.c.bf16 %v6032_v53, %v6029_v50  ;;  %v10227_v57 = vsub.f32 %v6012_v61, %v6032_v53 }
 0xd2e   : > { %v6007_v8 = vmul.f32 %v9038_v55, %v9032_v39  ;;  %v6144_v29 = vsub.f32 %v10221_v5, %v6143_v13 }
 0xd2f   : > { %v6097_v11 = vsub.f32 %v6018_v63, %v10223_v6  ;;  %v6136_v12 = vand.u32 4294901760, %v10227_v57  ;;  %8711 = vmatpush3.bf16.msra.mxu0 %v10225_v7  ;;  %v8716_v36 = vpack.c.bf16 %v10227_v57, %v10213_v54 }
 0xd30   : > { %8431 = vmatprep.subr.mxu0 %v9058_v4  ;;  %v6021_v14 = vsel %vm757_vm2, %v6007_v8, 0  ;;  %v6145_v18 = vand.u32 4294901760, %v6144_v29 }
 0xd31   : > { %v9040_v16 = vpop.eup %9039  ;;  %v6137_v17 = vsub.f32 %v10227_v57, %v6136_v12  ;;  %v6098_v21 = vand.u32 4294901760, %v6097_v11  ;;  %v10239_v23 = vand.u32 4294901760, %v6021_v14  ;;  %v8722_v1 = vpack.c.bf16 %v6136_v12, %v6129_v62 }
 0xd32   : > { %v6008_v24 = vmul.f32 %v9040_v16, %v9034_v33 }
 0xd33   : > { %v6138_v41 = vand.u32 4294901760, %v6137_v17  ;;  %8432 = vmatpush3.msra.mxu0 %v10216_v58  ;;  %v6099_v26 = vsub.f32 %v6097_v11, %v6098_v21  ;;  %v6107_v27 = vsub.f32 %v6021_v14, %v10239_v23 }
 0xd34   : > { %8712 = vmatprep.subr.bf16.mxu0 %v9055_v0  ;;  %v6024_v30 = vsel %vm757_vm2, %v6008_v24, 0 }
 0xd35   : > { %v6100_v44 = vand.u32 4294901760, %v6099_v26  ;;  %v8713_v31 = vpack.c.bf16 %v6138_v41, %v6131_v25  ;;  %v6108_v32 = vand.u32 4294901760, %v6107_v27  ;;  %v10248_v28 = vand.u32 4294901760, %v6024_v30 }
 0xd37   : > { %8434 = vmatmul.mubr.f32.vlgmr.msra.gmra.mrb[72].mxu0 %v6100_v44  ;;  %v6109_v48 = vsub.f32 %v6107_v27, %v6108_v32  ;;  %v6117_v34 = vsub.f32 %v6024_v30, %v10248_v28 }
 0xd38   : > { %8714 = vmatpush3.bf16.msra.mxu0 %v8713_v31  ;;  %8436 = vmatprep.mubr.msk.f32.mxu0 %vm9057_vm0, %v9058_v4 }
 0xd39   : > { %8446 = vmatprep.subr.mxu0 %v9058_v4  ;;  %v6110_v2 = vand.u32 4294901760, %v6109_v48  ;;  %v6118_v19 = vand.u32 4294901760, %v6117_v34 }
 0xd3b   : > { %8437 = vmatmul.mubr.f32.gmra.mrb[74].mxu0 %v6110_v2  ;;  %v6119_v20 = vsub.f32 %v6117_v34, %v6118_v19 }
 0xd3c   : > { %8447 = vmatpush3.msra.mxu0 %v6145_v18  ;;  %8439 = vmatprep.mubr.msk.f32.mxu0 %vm9057_vm0, %v9058_v4 }
 0xd3d   : > { %v6120_v35 = vand.u32 4294901760, %v6119_v20  ;;  %8715 = vmatprep.subr.bf16.mxu0 %v9055_v0 }
 0xd3f   : > { %8440 = vmatmul.mubr.f32.gmra.mrb[76].mxu0 %v6120_v35 }
 0xd40   : > { %8448 = vmatprep.mubr.msk.f32.mxu0 %vm9057_vm0, %v9058_v4 }
 0xd43   : > { %8449 = vmatmul.mubr.f32.vlgmr.msra.gmra.mrb[72].mxu0 %v10223_v6 }
 0xd44   : > { %8717 = vmatpush3.bf16.msra.mxu0 %v8716_v36  ;;  %8451 = vmatprep.mubr.msk.f32.mxu0 %vm9057_vm0, %v9058_v4 }
 0xd45   : > { %8461 = vmatprep.subr.mxu0 %v9058_v4 }
 0xd47   : > { %8452 = vmatmul.mubr.f32.gmra.mrb[74].mxu0 %v10239_v23 }
 0xd48   : > { %8462 = vmatpush3.msra.mxu0 %v10221_v5  ;;  %8454 = vmatprep.mubr.msk.f32.mxu0 %vm9057_vm0, %v9058_v4 }
 0xd49   : > { %8718 = vmatprep.subr.bf16.mxu0 %v9055_v0 }
 0xd4b   : > { %8455 = vmatmul.mubr.f32.gmra.mrb[76].mxu0 %v10248_v28 }
 0xd4c   : > { %8463 = vmatprep.mubr.msk.f32.mxu0 %vm9057_vm0, %v9058_v4 }
 0xd4f   : > { %8464 = vmatmul.mubr.f32.vlgmr.msra.gmra.mrb[72].mxu0 %v6097_v11 }
 0xd50   : > { %8720 = vmatpush3.bf16.msra.mxu0 %v10225_v7  ;;  %8466 = vmatprep.mubr.msk.f32.mxu0 %vm9057_vm0, %v9058_v4 }
 0xd51   : > { %8476 = vmatprep.subr.mxu0 %v9058_v4 }
 0xd53   : > { %8467 = vmatmul.mubr.f32.gmra.mrb[74].mxu0 %v6107_v27 }
 0xd54   : > { %8477 = vmatpush3.msra.mxu0 %v10216_v58  ;;  %8469 = vmatprep.mubr.msk.f32.mxu0 %vm9057_vm0, %v9058_v4 }
 0xd55   : > { %8721 = vmatprep.subr.bf16.mxu0 %v9055_v0 }
 0xd57   : > { %8470 = vmatmul.mubr.f32.gmra.mrb[76].mxu0 %v6117_v34 }
 0xd58   : > { %8478 = vmatprep.mubr.msk.f32.mxu0 %vm9057_vm0, %v9058_v4 }
 0xd5b   : > { %8479 = vmatmul.mubr.f32.vlgmr.msra.gmra.mrb[72].mxu0 %v6098_v21 }
 0xd5c   : > { %8723 = vmatpush3.bf16.msra.mxu0 %v8722_v1  ;;  %8481 = vmatprep.mubr.msk.f32.mxu0 %vm9057_vm0, %v9058_v4 }
 0xd5d   : > { %8491 = vmatprep.subr.mxu0 %v9058_v4 }
 0xd5f   : > { %8482 = vmatmul.mubr.f32.gmra.mrb[74].mxu0 %v6108_v32 }
 0xd60   : > { %8492 = vmatpush3.msra.mxu0 %v6143_v13  ;;  %8484 = vmatprep.mubr.msk.f32.mxu0 %vm9057_vm0, %v9058_v4 }
 0xd61   : > { %8724 = vmatprep.subr.bf16.mxu0 %v9055_v0  ;;  %v7211_v0 = vld [vmem:[%s10374_s1 + $0x18] sm:$0xff] }
 0xd62   : > { %v6598_v37 = vand.u32 4294901760, %v7211_v0 }
 0xd63   : > { %8485 = vmatmul.mubr.f32.gmra.mrb[76].mxu0 %v6118_v19 }
 0xd64   : > { %8493 = vmatprep.mubr.msk.f32.mxu0 %vm9057_vm0, %v9058_v4  ;;  %v6695_v3 = vsub.f32 %v7211_v0, %v6598_v37  ;;  %8518 = vmatpush3.msra.mxu1 %v6598_v37 }
 0xd65   : > { %8539 = vmatprep.subr.mxu1 %v9058_v4 }
 0xd66   : > { %v6696_v38 = vand.u32 4294901760, %v6695_v3 }
 0xd67   : > { %8494 = vmatmul.mubr.f32.vlgmr.msra.gmra.mrb[72].mxu0 %v10223_v6 }
 0xd68   : > { %8726 = vmatpush3.bf16.msra.mxu0 %v10225_v7  ;;  %8496 = vmatprep.mubr.msk.f32.mxu0 %vm9057_vm0, %v9058_v4  ;;  %v6697_v39 = vsub.f32 %v6695_v3, %v6696_v38 }
 0xd69   : > { %8506 = vmatprep.subr.mxu0 %v9058_v4 }
 0xd6a   : > { %v6698_v40 = vand.u32 4294901760, %v6697_v39 }
 0xd6b   : > { %8497 = vmatmul.mubr.f32.gmra.mrb[74].mxu0 %v10239_v23 }
 0xd6c   : > { %8507 = vmatpush3.msra.mxu0 %v10216_v58  ;;  %8499 = vmatprep.mubr.msk.f32.mxu0 %vm9057_vm0, %v9058_v4 }
 0xd6d   : > { %8528 = vmatprep.subr.mxu0 %v9058_v4 }
 0xd6f   : > { %8500 = vmatmul.mubr.f32.gmra.mrb[76].mxu0 %v10248_v28 }
 0xd70   : > { %8508 = vmatprep.mubr.msk.f32.mxu0 %vm9057_vm0, %v9058_v4 }
 0xd73   : > { %8509 = vmatmul.mubr.f32.vlgmr.msra.gmra.mrb[72].mxu0 %v10223_v6 }
 0xd74   : > { %8511 = vmatprep.mubr.msk.f32.mxu0 %vm9057_vm0, %v9058_v4  ;;  %8529 = vmatpush3.msra.mxu0 %v6698_v40 }
 0xd75   : > { %8550 = vmatprep.subr.mxu0 %v9058_v4 }
 0xd77   : > { %8512 = vmatmul.mubr.f32.gmra.mrb[74].mxu0 %v10239_v23 }
 0xd78   : > { %8514 = vmatprep.mubr.msk.f32.mxu0 %vm9057_vm0, %v9058_v4 }
 0xd7b   : > { %8515 = vmatmul.mubr.f32.gmra.mrb[76].mxu0 %v10248_v28 }
 0xd7c   : > { %8530 = vmatprep.mubr.msk.f32.mxu0 %vm9057_vm0, %v9058_v4 }
 0xe46   : > { %v6570_v33 = vpop.f32.mrb[72].mxu0 }
 0xe47   : > { %v6589_v42 = vsel %vm183_vm1, %v6570_v33, 0  ;;  %v8510_v43 = vpop.f32.mrb[73].mxu0 }
 0xe48   : > { %v6663_v45 = vand.u32 4294901760, %v6589_v42 }
 0xe4a   : > { %v6664_v46 = vsub.f32 %v6589_v42, %v6663_v45  ;;  %v6576_v47 = vpop.f32.mrb[74].mxu0  ;;  %8531 = vmatmul.mubr.f32.vlgmr.msra.gmra.mrb[78].mxu0 %v6663_v45 }
 0xe4b   : > { %v6592_v49 = vsel %vm183_vm1, %v6576_v47, 0  ;;  %v8513_v50 = vpop.f32.mrb[75].mxu0  ;;  %8533 = vmatprep.mubr.msk.f32.mxu0 %vm9057_vm0, %v9058_v4  ;;  %8551 = vmatpush3.msra.mxu0 %v6598_v37 }
 0xe4c   : > { %v6665_v51 = vand.u32 4294901760, %v6664_v46  ;;  %v6673_v52 = vand.u32 4294901760, %v6592_v49  ;;  %8572 = vmatprep.subr.mxu0 %v9058_v4 }
 0xe4e   : > { %v6666_v54 = vsub.f32 %v6664_v46, %v6665_v51  ;;  %v6674_v56 = vsub.f32 %v6592_v49, %v6673_v52  ;;  %v6582_v58 = vpop.f32.mrb[76].mxu0  ;;  %8534 = vmatmul.mubr.f32.gmra.mrb[80].mxu0 %v6673_v52  ;;  %v7212_v49 = vld [vmem:[%s10375_s2] ss:$0 sm:$0xff] }
 0xe4f   : > { %v6595_v59 = vsel %vm183_vm1, %v6582_v58, 0  ;;  %v8516_v60 = vpop.f32.mrb[77].mxu0  ;;  %8536 = vmatprep.mubr.msk.f32.mxu0 %vm9057_vm0, %v9058_v4 }
 0xe50   : > { %v6667_v61 = vand.u32 4294901760, %v6666_v54  ;;  %v6675_v62 = vand.u32 4294901760, %v6674_v56  ;;  %v6683_v53 = vand.u32 4294901760, %v6595_v59 }
 0xe52   : > { %v6684_v63 = vsub.f32 %v6595_v59, %v6683_v53  ;;  %8520 = vmatmul.mubr.f32.vlgmr.msra.gmra.mrb[80].mxu1 %v6667_v61  ;;  %8537 = vmatmul.mubr.f32.gmra.mrb[82].mxu0 %v6683_v53  ;;  %v6676_v5 = vsub.f32 %v6674_v56, %v6675_v62 }
 0xe53   : > { %8522 = vmatprep.mubr.msk.f32.mxu1 %vm9057_vm0, %v9058_v4  ;;  %8552 = vmatprep.mubr.msk.f32.mxu0 %vm9057_vm0, %v9058_v4 }
 0xe54   : > { %v6685_v55 = vand.u32 4294901760, %v6684_v63  ;;  %v6677_v6 = vand.u32 4294901760, %v6676_v5  ;;  %8540 = vmatpush3.msra.mxu1 %v6695_v3 }
 0xe55   : > { %8561 = vmatprep.subr.mxu1 %v9058_v4 }
 0xe56   : > { %8523 = vmatmul.mubr.f32.gmra.mrb[82].mxu1 %v6677_v6  ;;  %8553 = vmatmul.mubr.f32.vlgmr.msra.gmra.mrb[84].mxu0 %v6665_v51  ;;  %v6686_v7 = vsub.f32 %v6684_v63, %v6685_v55 }
 0xe57   : > { %8525 = vmatprep.mubr.msk.f32.mxu1 %vm9057_vm0, %v9058_v4  ;;  %8555 = vmatprep.mubr.msk.f32.mxu0 %vm9057_vm0, %v9058_v4 }
 0xe58   : > { %v6687_v57 = vand.u32 4294901760, %v6686_v7  ;;  %8573 = vmatpush3.msra.mxu0 %v6598_v37 }
 0xe5a   : > { %8526 = vmatmul.mubr.f32.gmra.mrb[84].mxu1 %v6687_v57  ;;  %8556 = vmatmul.mubr.f32.gmra.mrb[86].mxu0 %v6675_v62 }
 0xe5b   : > { %8541 = vmatprep.mubr.msk.f32.mxu1 %vm9057_vm0, %v9058_v4  ;;  %8558 = vmatprep.mubr.msk.f32.mxu0 %vm9057_vm0, %v9058_v4 }
 0xe5e   : > { %8542 = vmatmul.mubr.f32.vlgmr.msra.gmra.mrb[86].mxu1 %v6664_v46  ;;  %8559 = vmatmul.mubr.f32.gmra.mrb[88].mxu0 %v6685_v55 }
 0xe5f   : > { %8544 = vmatprep.mubr.msk.f32.mxu1 %vm9057_vm0, %v9058_v4  ;;  %8574 = vmatprep.mubr.msk.f32.mxu0 %vm9057_vm0, %v9058_v4 }
 0xe60   : > { %8562 = vmatpush3.msra.mxu1 %v6696_v38 }
 0xe62   : > { %8545 = vmatmul.mubr.f32.gmra.mrb[88].mxu1 %v6674_v56  ;;  %8575 = vmatmul.mubr.f32.vlgmr.msra.gmra.mrb[90].mxu0 %v6663_v45 }
 0xe63   : > { %8547 = vmatprep.mubr.msk.f32.mxu1 %vm9057_vm0, %v9058_v4  ;;  %8577 = vmatprep.mubr.msk.f32.mxu0 %vm9057_vm0, %v9058_v4 }
 0xe66   : > { %8548 = vmatmul.mubr.f32.gmra.mrb[90].mxu1 %v6684_v63  ;;  %8578 = vmatmul.mubr.f32.gmra.mrb[92].mxu0 %v6673_v52 }
 0xe67   : > { %8563 = vmatprep.mubr.msk.f32.mxu1 %vm9057_vm0, %v9058_v4  ;;  %8580 = vmatprep.mubr.msk.f32.mxu0 %vm9057_vm0, %v9058_v4 }
 0xe6a   : > { %8564 = vmatmul.mubr.f32.vlgmr.msra.gmra.mrb[92].mxu1 %v6663_v45  ;;  %8581 = vmatmul.mubr.f32.gmra.mrb[94].mxu0 %v6683_v53 }
 0xe6b   : > { %8566 = vmatprep.mubr.msk.f32.mxu1 %vm9057_vm0, %v9058_v4 }
 0xe6e   : > { %8567 = vmatmul.mubr.f32.gmra.mrb[94].mxu1 %v6673_v52 }
 0xe6f   : > { %8569 = vmatprep.mubr.msk.f32.mxu1 %vm9057_vm0, %v9058_v4 }
 0xe72   : > { %8570 = vmatmul.mubr.f32.gmra.mrb[96].mxu1 %v6683_v53 }
 0xf1d   : > { %v6765_v8 = vpop.f32.mrb[78].mxu0 }
 0xf1e   : > { %v8532_v9 = vpop.f32.mrb[79].mxu0 }
 0xf21   : > { %v6771_v11 = vpop.f32.mrb[80].mxu0 }
 0xf22   : > { %v8535_v12 = vpop.f32.mrb[81].mxu0 }
 0xf25   : > { %v6669_v13 = vpop.f32.mrb[80].mxu1  ;;  %v6777_v14 = vpop.f32.mrb[82].mxu0 }
 0xf26   : > { %v6766_v16 = vadd.f32 %v6765_v8, %v6669_v13  ;;  %v8521_v17 = vpop.f32.mrb[81].mxu1  ;;  %v8538_v21 = vpop.f32.mrb[83].mxu0 }
 0xf29   : > { %v6679_v23 = vpop.f32.mrb[82].mxu1  ;;  %v6939_v24 = vpop.f32.mrb[84].mxu0 }
 0xf2a   : > { %v6772_v25 = vadd.f32 %v6771_v11, %v6679_v23  ;;  %v8524_v41 = vpop.f32.mrb[83].mxu1  ;;  %v8554_v26 = vpop.f32.mrb[85].mxu0 }
 0xf2d   : > { %v6689_v27 = vpop.f32.mrb[84].mxu1  ;;  %v6947_v29 = vpop.f32.mrb[86].mxu0 }
 0xf2e   : > { %v6778_v30 = vadd.f32 %v6777_v14, %v6689_v27  ;;  %v8527_v44 = vpop.f32.mrb[85].mxu1  ;;  %v8557_v4 = vpop.f32.mrb[87].mxu0 }
 0xf31   : > { %v6851_v31 = vpop.f32.mrb[86].mxu1  ;;  %v6955_v32 = vpop.f32.mrb[88].mxu0 }
 0xf32   : > { %v6852_v28 = vadd.f32 %v6851_v31, %v6766_v16  ;;  %v8543_v48 = vpop.f32.mrb[87].mxu1  ;;  %v8560_v34 = vpop.f32.mrb[89].mxu0 }
 0xf34   : > { %v6940_v18 = vadd.f32 %v6939_v24, %v6852_v28 }
 0xf35   : > { %v6858_v2 = vpop.f32.mrb[88].mxu1  ;;  %v7113_v19 = vpop.f32.mrb[90].mxu0 }
 0xf36   : > { %v6859_v20 = vadd.f32 %v6858_v2, %v6772_v25  ;;  %v8546_v35 = vpop.f32.mrb[89].mxu1  ;;  %v8576_v36 = vpop.f32.mrb[91].mxu0 }
 0xf38   : > { %v6948_v1 = vadd.f32 %v6947_v29, %v6859_v20 }
 0xf39   : > { %v6865_v0 = vpop.f32.mrb[90].mxu1  ;;  %v7119_v37 = vpop.f32.mrb[92].mxu0 }
 0xf3a   : > { %v6866_v3 = vadd.f32 %v6865_v0, %v6778_v30  ;;  %v8549_v38 = vpop.f32.mrb[91].mxu1  ;;  %v8579_v39 = vpop.f32.mrb[93].mxu0 }
 0xf3c   : > { %v6956_v40 = vadd.f32 %v6955_v32, %v6866_v3 }
 0xf3d   : > { %v7029_v33 = vpop.f32.mrb[92].mxu1  ;;  %v7125_v42 = vpop.f32.mrb[94].mxu0 }
 0xf3e   : > { %v7030_v43 = vadd.f32 %v7029_v33, %v6940_v18  ;;  %v8565_v45 = vpop.f32.mrb[93].mxu1  ;;  %v8582_v46 = vpop.f32.mrb[95].mxu0 }
 0xf40   : > { %v7114_v47 = vadd.f32 %v7113_v19, %v7030_v43 }
 0xf41   : > { %v7035_v50 = vpop.f32.mrb[94].mxu1 }
 0xf42   : > { %v7129_v51 = vadd.f32 %v7114_v47, %v10196_v10  ;;  %v7036_v52 = vadd.f32 %v7035_v50, %v6948_v1  ;;  %v8568_v54 = vpop.f32.mrb[95].mxu1 }
 0xf44   : > { %v7139_v56 = vadd.f32 %v7212_v49, %v7129_v51  ;;  %v7120_v58 = vadd.f32 %v7119_v37, %v7036_v52 }
 0xf45   : > { %v7041_v59 = vpop.f32.mrb[96].mxu1 }
 0xf46   : > { %7143 = vst.msk [vmem:[%s170_s17] sm:$0xff] %vm7142_vm5, %v7139_v56  ;;  %v7130_v60 = vadd.f32 %v7120_v58, %v10199_v15  ;;  %v7042_v61 = vadd.f32 %v7041_v59, %v6956_v40  ;;  %v8571_v62 = vpop.f32.mrb[97].mxu1 }
 0xf48   : > { %v7140_v53 = vadd.f32 %v7212_v49, %v7130_v60  ;;  %v7126_v63 = vadd.f32 %v7125_v42, %v7042_v61 }
 0xf4a   : > { %7144 = vst.msk [vmem:[%s170_s17 + $0x8] sm:$0xff] %vm7142_vm5, %v7140_v53  ;;  %v7131_v10 = vadd.f32 %v7126_v63, %v10202_v22 }
 0xf4c   : > { %v7141_v5 = vadd.f32 %v7212_v49, %v7131_v10 }
 0xf4e   : > { %7146 = vst.msk [vmem:[%s170_s17 + $0x10] sm:$0x1] %vm7145_vm6, %v7141_v5 }
 0xf4f PF: > { %s13_s12 = sadd.s32 1, %s9053_s12  }
 0xf50   : > { %p10_p4 = scmp.ge.s32.totalorder %s13_s12, 4  }
 0xf52   :  { %12 = sbr.rel (!%p10_p4) target bundleno = 1 (0x1), region = 65 }

</bundles_post_ra>
